<compile_context>
chip_gen: v6e
topology: v6e:2x2x1
jax: 0.10.0
libtpu: 0.0.40
codegen_flags: <defaults>
</compile_context>

<pallas_src>
import functools
import numpy as np

import jax
import jax.numpy as jnp
from jax.experimental import pallas as pl
from jax.experimental.pallas import tpu as pltpu

_EPS = 1e-5


def _query_vmem_capacity():
    try:
        info = pltpu.get_tpu_info()
        return int(getattr(info, "vmem_capacity_bytes", 64 * 1024 * 1024))
    except Exception:
        return 64 * 1024 * 1024  # conservative fallback (v7x per-TC size)


_VMEM_CAP = _query_vmem_capacity()
# Generation-aware scoped-VMEM limit: ~3/4 of physical (v5e/v6e ~96 MiB, v7x ~48 MiB).
_VMEM_LIMIT = min(int(_VMEM_CAP * 3 // 4), 100 * 1024 * 1024)
# Bigger row tiles when VMEM is plentiful (128 MiB chips), conservative on v7x.
_TILE_TARGET = 512 if _VMEM_CAP >= 96 * 1024 * 1024 else 256


# ----------------------------- small math helpers -----------------------------

def _gelu_tanh(x):
    # torch reference GELU: 0.5*x*(1+tanh(sqrt(2/pi)*(x+0.044715*x^3)))
    return 0.5 * x * (1.0 + jnp.tanh(np.sqrt(2.0 / np.pi) * (x + 0.044715 * x * x * x)))


def _ln(x, g, b, eps=_EPS):
    mu = jnp.mean(x, axis=-1, keepdims=True)
    xc = x - mu
    var = jnp.mean(xc * xc, axis=-1, keepdims=True)
    return xc * jax.lax.rsqrt(var + eps) * g + b


def _pick_tile(m, target, min_steps=2):
    """Largest row tile dividing m, multiple of 8, <= target, leaving >= min_steps
    grid steps where possible (keeps both v7x TensorCores busy)."""
    if m % 8 != 0:
        return m  # full-extent fallback; only hit at tiny ragged row counts here
    cap = m // min_steps if m // min_steps >= 8 else m
    cap = min(cap, target)
    cap = max(8, cap - cap % 8)
    t = cap
    while t >= 8:
        if m % t == 0:
            return t
        t -= 8
    return m


def _pick_window_block(num_windows, n_w, win_n, target_rows):
    """Windows per grid step: a multiple of n_w (mask period) dividing num_windows,
    kept <= num_windows // 2 when possible (>= 2 grid steps for v7x megacore),
    grown toward ~target_rows tokens per step for MXU fill."""
    if num_windows >= 2 * n_w:
        max_w = (num_windows // 2) // n_w * n_w
    else:
        max_w = num_windows
    max_w = max(max_w, n_w)
    best = None
    w = n_w
    while w <= max_w:
        if num_windows % w == 0:
            best = w
            if w * win_n >= target_rows:
                break
        w += n_w
    return best if best is not None else num_windows


def _const_spec(shape):
    """Constant (grid-invariant) block: single-buffered, index map always 0."""
    rank = len(shape)
    return pl.BlockSpec(tuple(shape), lambda i: (0,) * rank,
                        pipeline_mode=pl.Buffered(1))


def _compiler_params():
    return pltpu.CompilerParams(dimension_semantics=("parallel",),
                                vmem_limit_bytes=_VMEM_LIMIT)


# ----------------------------- Pallas kernels -----------------------------

def _fused_matmul_kernel(*refs, pre_ln, post_ln, has_bias, act):
    it = iter(refs)
    x_ref = next(it)
    g1_ref = b1_ref = b_ref = g2_ref = b2_ref = None
    if pre_ln:
        g1_ref = next(it)
        b1_ref = next(it)
    w_ref = next(it)
    if has_bias:
        b_ref = next(it)
    if post_ln:
        g2_ref = next(it)
        b2_ref = next(it)
    o_ref = next(it)

    h = x_ref[...].astype(jnp.float32)
    if pre_ln:
        h = _ln(h, g1_ref[...], b1_ref[...])
    y = jnp.dot(h.astype(jnp.bfloat16), w_ref[...],  # weights already bf16
                preferred_element_type=jnp.float32)
    if has_bias:
        y = y + b_ref[...]
    if act == "gelu":
        y = _gelu_tanh(y)
    if post_ln:
        y = _ln(y, g2_ref[...], b2_ref[...])
    o_ref[...] = y.astype(o_ref.dtype)


def fused_matmul(x, w, bias=None, pre_ln=None, post_ln=None, act="none",
                 out_dtype=jnp.bfloat16):
    # x: [M, K], w (bf16): [K, N] -> [M, N]; optional LN before/after, bias, act.
    M, K = x.shape
    N = w.shape[1]
    tm = _pick_tile(M, _TILE_TARGET)

    inputs = [x]
    in_specs = [pl.BlockSpec((tm, K), lambda i: (i, 0))]
    if pre_ln is not None:
        g1, b1 = pre_ln
        inputs += [g1, b1]
        in_specs += [_const_spec(g1.shape), _const_spec(b1.shape)]
    inputs.append(w)
    in_specs.append(_const_spec(w.shape))
    if bias is not None:
        inputs.append(bias)
        in_specs.append(_const_spec(bias.shape))
    if post_ln is not None:
        g2, b2 = post_ln
        inputs += [g2, b2]
        in_specs += [_const_spec(g2.shape), _const_spec(b2.shape)]

    return pl.pallas_call(
        functools.partial(_fused_matmul_kernel,
                          pre_ln=pre_ln is not None, post_ln=post_ln is not None,
                          has_bias=bias is not None, act=act),
        out_shape=jax.ShapeDtypeStruct((M, N), out_dtype),
        grid=(M // tm,),
        in_specs=in_specs,
        out_specs=pl.BlockSpec((tm, N), lambda i: (i, 0)),
        compiler_params=_compiler_params(),
    )(*inputs)


def _ln_mlp_kernel(x_ref, g_ref, b_ref, w1_ref, b1_ref, w2_ref, b2_ref, o_ref):
    x = x_ref[...].astype(jnp.float32)
    h = _ln(x, g_ref[...], b_ref[...]).astype(jnp.bfloat16)
    h = jnp.dot(h, w1_ref[...], preferred_element_type=jnp.float32) + b1_ref[...]
    h = _gelu_tanh(h).astype(jnp.bfloat16)
    y = jnp.dot(h, w2_ref[...], preferred_element_type=jnp.float32) + b2_ref[...]
    o_ref[...] = (x + y).astype(o_ref.dtype)  # fused residual (DropPath = identity)


def ln_mlp(x, g, b, w1, b1, w2, b2):
    M, C = x.shape
    Hd = w1.shape[1]
    # Cap the row tile so the f32 hidden activation + bf16 copies + i/o blocks stay
    # inside the scoped-VMEM budget (matters on v7x's 64 MiB at C=768 / Hd=3072).
    per_row_bytes = Hd * 6 + C * 12
    row_cap = max(8, (int(_VMEM_LIMIT * 0.5) // per_row_bytes) // 8 * 8)
    tm = _pick_tile(M, min(_TILE_TARGET, row_cap))

    return pl.pallas_call(
        _ln_mlp_kernel,
        out_shape=jax.ShapeDtypeStruct((M, C), jnp.bfloat16),
        grid=(M // tm,),
        in_specs=[pl.BlockSpec((tm, C), lambda i: (i, 0)),
                  _const_spec(g.shape), _const_spec(b.shape),
                  _const_spec(w1.shape), _const_spec(b1.shape),
                  _const_spec(w2.shape), _const_spec(b2.shape)],
        out_specs=pl.BlockSpec((tm, C), lambda i: (i, 0)),
        compiler_params=_compiler_params(),
    )(x, g, b, w1, b1, w2, b2)


def _window_attn_kernel(*refs, num_heads, has_mask):
    if has_mask:
        (x_ref, g_ref, b_ref, wq_ref, wk_ref, wv_ref, bq_ref, bk_ref, bv_ref,
         rpb_ref, mask_ref, wp_ref, bp_ref, o_ref) = refs
    else:
        (x_ref, g_ref, b_ref, wq_ref, wk_ref, wv_ref, bq_ref, bk_ref, bv_ref,
         rpb_ref, wp_ref, bp_ref, o_ref) = refs
        mask_ref = None

    Wb, N, C = x_ref.shape
    H = num_heads
    hd = C // H
    R = Wb * N

    x = x_ref[...].astype(jnp.float32)                       # (Wb, N, C) raw tokens
    xn = _ln(x.reshape(R, C), g_ref[...], b_ref[...])        # norm1 (per token)
    xb = xn.astype(jnp.bfloat16)

    def split_heads(t):
        # (R, C) f32 -> (Wb*H, N, hd) bf16 via layout-preserving reshapes +
        # minor-dim transposes only (hd and N are multiples of the sublane tile).
        t = t.reshape(Wb, N, C)
        t = jnp.swapaxes(t, 1, 2).reshape(Wb, H, hd, N)
        t = jnp.swapaxes(t, 2, 3)
        return t.reshape(Wb * H, N, hd).astype(jnp.bfloat16)

    # Full-width QKV projections (scale already folded into wq / bq).
    q = split_heads(jnp.dot(xb, wq_ref[...], preferred_element_type=jnp.float32)
                    + bq_ref[...])
    k = split_heads(jnp.dot(xb, wk_ref[...], preferred_element_type=jnp.float32)
                    + bk_ref[...])
    v = split_heads(jnp.dot(xb, wv_ref[...], preferred_element_type=jnp.float32)
                    + bv_ref[...])

    # Batched (window x head) scores.
    s = jnp.einsum('bnd,bmd->bnm', q, k, preferred_element_type=jnp.float32)
    s = s.reshape(Wb, H, N, N) + rpb_ref[...][None, :, :, :]   # rel-pos bias
    if has_mask:
        s = s + mask_ref[...][:, None, :, :]                    # shift mask
    s = s - jnp.max(s, axis=-1, keepdims=True)
    p = jnp.exp(s)
    p = p / jnp.sum(p, axis=-1, keepdims=True)                  # exact softmax divide
    p = p.reshape(Wb * H, N, N).astype(jnp.bfloat16)

    o = jnp.einsum('bnm,bmd->bnd', p, v, preferred_element_type=jnp.float32)
    o = o.reshape(Wb, H, N, hd)
    o = jnp.swapaxes(o, 2, 3).reshape(Wb, C, N)
    o = jnp.swapaxes(o, 1, 2).reshape(R, C).astype(jnp.bfloat16)

    # ONE full-width output projection + fused residual.
    y = jnp.dot(o, wp_ref[...], preferred_element_type=jnp.float32) + bp_ref[...]
    o_ref[...] = (x + y.reshape(Wb, N, C)).astype(o_ref.dtype)


def window_attention_block(x_windows, bp, num_heads, mask_np):
    # x_windows: [B_, N, C] raw rolled+partitioned tokens (bf16); LN, QKV,
    # softmax, projection and the residual add are all fused inside the kernel.
    B_, N, C = x_windows.shape
    n_w = 1 if mask_np is None else mask_np.shape[0]
    Wb = _pick_window_block(B_, n_w, N, _TILE_TARGET)
    has_mask = mask_np is not None

    # TODO(synk): at C < 128 the (Wb, N, C) output tile is lane-padded; a fully
    # lane-dense (Wb, N*C) layout would need an in-kernel lane-split reshape,
    # omitted here in favour of guaranteed-supported layout ops.
    args = [x_windows, bp['norm1_g'], bp['norm1_b'],
            bp['wq'], bp['wk'], bp['wv'], bp['bq'], bp['bk'], bp['bv'],
            bp['rel_bias']]
    in_specs = [pl.BlockSpec((Wb, N, C), lambda i: (i, 0, 0))]
    in_specs += [_const_spec(a.shape) for a in args[1:]]
    if has_mask:
        # Mask tiled only to Wb (grid-invariant, Buffered(1)); no [H,Wb,N,N] blowup.
        mask_tiled = jnp.asarray(np.tile(mask_np, (Wb // n_w, 1, 1)), jnp.float32)
        args.append(mask_tiled)
        in_specs.append(_const_spec(mask_tiled.shape))
    args += [bp['proj_w'], bp['proj_b']]
    in_specs += [_const_spec(bp['proj_w'].shape), _const_spec(bp['proj_b'].shape)]

    return pl.pallas_call(
        functools.partial(_window_attn_kernel, num_heads=num_heads, has_mask=has_mask),
        out_shape=jax.ShapeDtypeStruct((B_, N, C), jnp.bfloat16),
        grid=(B_ // Wb,),
        in_specs=in_specs,
        out_specs=pl.BlockSpec((Wb, N, C), lambda i: (i, 0, 0)),
        compiler_params=_compiler_params(),
    )(*args)


# ----------------------------- glue helpers -----------------------------

def _make_divisible(v, divisor, min_value=None):
    if min_value is None:
        min_value = divisor
    new_v = max(min_value, int(v + divisor / 2) // divisor * divisor)
    if new_v < 0.9 * v:
        new_v += divisor
    return new_v


def window_partition(x, ws):
    B, H, W, C = x.shape
    x = x.reshape(B, H // ws, ws, W // ws, ws, C)
    return x.transpose(0, 1, 3, 2, 4, 5).reshape(-1, ws, ws, C)


def window_reverse(windows, ws, H, W):
    B = windows.shape[0] // ((H // ws) * (W // ws))
    x = windows.reshape(B, H // ws, W // ws, ws, ws, -1)
    return x.transpose(0, 1, 3, 2, 4, 5).reshape(B, H, W, -1)


@functools.lru_cache(maxsize=None)
def relative_position_index(ws):
    coords_h = np.arange(ws)
    coords_w = np.arange(ws)
    coords = np.stack(np.meshgrid(coords_h, coords_w, indexing='ij'))
    coords_flatten = coords.reshape(2, -1)
    rel = coords_flatten[:, :, None] - coords_flatten[:, None, :]
    rel = rel.transpose(1, 2, 0).copy()
    rel[:, :, 0] += ws - 1
    rel[:, :, 1] += ws - 1
    rel[:, :, 0] *= 2 * ws - 1
    return rel.sum(-1)


@functools.lru_cache(maxsize=None)
def compute_attn_mask(H, W, ws, shift):
    img_mask = np.zeros((1, H, W, 1), dtype=np.float32)
    h_slices = (slice(0, -ws), slice(-ws, -shift), slice(-shift, None))
    w_slices = (slice(0, -ws), slice(-ws, -shift), slice(-shift, None))
    cnt = 0
    for h in h_slices:
        for w in w_slices:
            img_mask[:, h, w, :] = cnt
            cnt += 1
    mw = img_mask.reshape(1, H // ws, ws, W // ws, ws, 1)
    mw = mw.transpose(0, 1, 3, 2, 4, 5).reshape(-1, ws * ws)
    attn_mask = mw[:, None, :] - mw[:, :, None]
    return np.where(attn_mask != 0, -100.0, 0.0).astype(np.float32)


# ----------------------------- model pieces -----------------------------

def swin_block(x, bp, input_resolution, num_heads, window_size, shift_size):
    H, W = input_resolution
    B, L, C = x.shape
    if min(input_resolution) <= window_size:
        shift_size = 0
        window_size = min(input_resolution)

    _H, _W = _make_divisible(H, window_size), _make_divisible(W, window_size)
    # TODO(synk): bicubic F.interpolate resize path not implemented; with these
    # resolutions (_H, _W) == (H, W), so the resize is an exact identity.
    assert (_H, _W) == (H, W)

    xs = x.reshape(B, H, W, C)
    if shift_size > 0:
        xs = jnp.roll(xs, shift=(-shift_size, -shift_size), axis=(1, 2))
        mask_np = compute_attn_mask(_H, _W, window_size, shift_size)
    else:
        mask_np = None

    # TODO(synk): the roll + window partition/reverse remain XLA data-movement ops
    # (now on bf16); an in-kernel scalar-prefetch gather would remove these two
    # full-feature-map HBM passes per shifted block.
    x_windows = window_partition(xs, window_size).reshape(-1, window_size * window_size, C)

    attn_windows = window_attention_block(x_windows, bp, num_heads, mask_np)

    attn_windows = attn_windows.reshape(-1, window_size, window_size, C)
    xs = window_reverse(attn_windows, window_size, _H, _W)
    if shift_size > 0:
        xs = jnp.roll(xs, shift=(shift_size, shift_size), axis=(1, 2))
    x = xs.reshape(B, H * W, C)  # == shortcut + attention branch (residual fused in kernel)

    # fused LN(norm2) -> fc1 -> GELU -> fc2 -> + residual
    y = ln_mlp(x.reshape(B * L, C), bp['norm2_g'], bp['norm2_b'],
               bp['fc1_w'], bp['fc1_b'], bp['fc2_w'], bp['fc2_b'])
    return y.reshape(B, L, C)


def patch_embed(x, pe, patch_size, embed_dim):
    # x: [B, C, H, W] f32 -> [B, Hp*Wp, embed_dim] bf16; conv-as-matmul fused with LN.
    B, C, H, W = x.shape
    ph, pw = H // patch_size, W // patch_size
    xp = x.reshape(B, C, ph, patch_size, pw, patch_size)
    xp = xp.transpose(0, 2, 4, 1, 3, 5).reshape(B * ph * pw, C * patch_size * patch_size)
    y = fused_matmul(xp, pe['w'], bias=pe['b'], post_ln=(pe['norm_g'], pe['norm_b']))
    return y.reshape(B, ph * pw, embed_dim)


def patch_merging(x, ds, input_resolution):
    H, W = input_resolution
    B, L, C = x.shape
    # 2x2 neighborhood gather; channel order matches torch.cat([x0, x1, x2, x3], -1).
    xv = x.reshape(B, H // 2, 2, W // 2, 2, C)
    xc = xv.transpose(0, 1, 3, 4, 2, 5).reshape(B * (H // 2) * (W // 2), 4 * C)
    y = fused_matmul(xc, ds['red_w'], pre_ln=(ds['norm_g'], ds['norm_b']))  # no bias
    return y.reshape(B, (H // 2) * (W // 2), 2 * C)


def swin_forward(x, prep, cfg):
    x = patch_embed(x, prep['patch_embed'], cfg['patch_size'], cfg['embed_dim'])
    pr = cfg['patches_resolution']
    interval_outs = []
    for i_layer in range(cfg['num_layers']):
        res = (pr[0] // 2 ** i_layer, pr[1] // 2 ** i_layer)
        lp = prep['layers'][i_layer]
        # Faithful to the reference BasicLayer.forward: every block sees the SAME
        # layer input (x_ = blk(x)); only the last block's output is kept.  Under
        # jit, XLA dead-code-eliminates the unused earlier blocks.
        x_ = x
        for d in range(cfg['depths'][i_layer]):
            shift = 0 if d % 2 == 0 else cfg['window_size'] // 2
            x_ = swin_block(x, lp['blocks'][d], res, cfg['num_heads'][i_layer],
                            cfg['window_size'], shift)
        if lp['downsample'] is not None:
            x = patch_merging(x_, lp['downsample'], res)
        else:
            x = x_
        if i_layer != 0:
            interval_outs.append(x_)

    outs = []
    for i, layer in enumerate(interval_outs):
        H = pr[0] // 2 ** (i + 1)
        W = pr[1] // 2 ** (i + 1)
        B, L, C = layer.shape
        outs.append(layer.reshape(B, H, W, C).transpose(0, 3, 1, 2).astype(jnp.float32))
    return outs


# ----------------------------- params init & prep -----------------------------

def init_params(key, cfg):
    keys = iter(jax.random.split(key, 512))

    def nrm(shape):
        return 0.02 * jax.random.normal(next(keys), shape, jnp.float32)

    def ones(n):
        return jnp.ones((n,), jnp.float32)

    def zeros(n):
        return jnp.zeros((n,), jnp.float32)

    ed = cfg['embed_dim']
    ps = cfg['patch_size']
    params = {
        'patch_embed': {
            'proj_w': nrm((ed, cfg['in_chans'], ps, ps)),
            'proj_b': zeros(ed),
            'norm_g': ones(ed),
            'norm_b': zeros(ed),
        },
        'layers': [],
    }
    pr = cfg['patches_resolution']
    for i_layer in range(cfg['num_layers']):
        dim = int(ed * 2 ** i_layer)
        res = (pr[0] // 2 ** i_layer, pr[1] // 2 ** i_layer)
        eff_ws = cfg['window_size'] if min(res) > cfg['window_size'] else min(res)
        hidden = int(dim * cfg['mlp_ratio'])
        nh = cfg['num_heads'][i_layer]
        blocks = []
        for _ in range(cfg['depths'][i_layer]):
            blocks.append({
                'norm1_g': ones(dim), 'norm1_b': zeros(dim),
                'attn': {
                    'qkv_w': nrm((dim, 3 * dim)), 'qkv_b': zeros(3 * dim),
                    'proj_w': nrm((dim, dim)), 'proj_b': zeros(dim),
                    'rpb_table': nrm(((2 * eff_ws - 1) ** 2, nh)),
                },
                'norm2_g': ones(dim), 'norm2_b': zeros(dim),
                'fc1_w': nrm((dim, hidden)), 'fc1_b': zeros(hidden),
                'fc2_w': nrm((hidden, dim)), 'fc2_b': zeros(dim),
            })
        layer = {'blocks': blocks, 'downsample': None}
        if i_layer < cfg['num_layers'] - 1:
            layer['downsample'] = {
                'norm_g': ones(4 * dim), 'norm_b': zeros(4 * dim),
                'red_w': nrm((4 * dim, 2 * dim)),
            }
        params['layers'].append(layer)
    return params


def prepare_params(params, cfg):
    """One-time, pre-jit parameter prep: bf16 weight casts, scale folding into the
    Q projection, rel-pos bias gather, (1, C) reshapes.  Nothing here runs on the
    per-block critical path of the jitted forward."""
    f32, bf16 = jnp.float32, jnp.bfloat16
    ed = cfg['embed_dim']
    ps = cfg['patch_size']
    inc = cfg['in_chans']
    pe = params['patch_embed']
    prep = {
        'patch_embed': {
            'w': pe['proj_w'].reshape(ed, inc * ps * ps).T.astype(bf16),
            'b': pe['proj_b'].reshape(1, ed).astype(bf16),
            'norm_g': pe['norm_g'].reshape(1, ed).astype(f32),
            'norm_b': pe['norm_b'].reshape(1, ed).astype(f32),
        },
        'layers': [],
    }
    pr = cfg['patches_resolution']
    for i_layer in range(cfg['num_layers']):
        dim = int(ed * 2 ** i_layer)
        res = (pr[0] // 2 ** i_layer, pr[1] // 2 ** i_layer)
        ws = cfg['window_size'] if min(res) > cfg['window_size'] else min(res)
        N = ws * ws
        nh = cfg['num_heads'][i_layer]
        hd = dim // nh
        scale = hd ** (-0.5)
        rpi = relative_position_index(ws).reshape(-1)
        lp = params['layers'][i_layer]
        blocks = []
        for bp in lp['blocks']:
            qkv_w = bp['attn']['qkv_w']
            qkv_b = bp['attn']['qkv_b']
            rel = bp['attn']['rpb_table'][rpi].reshape(N, N, nh).transpose(2, 0, 1)
            blocks.append({
                'norm1_g': bp['norm1_g'].reshape(1, dim).astype(f32),
                'norm1_b': bp['norm1_b'].reshape(1, dim).astype(f32),
                'wq': (qkv_w[:, :dim] * scale).astype(bf16),
                'wk': qkv_w[:, dim:2 * dim].astype(bf16),
                'wv': qkv_w[:, 2 * dim:].astype(bf16),
                'bq': (qkv_b[:dim] * scale).reshape(1, dim).astype(bf16),
                'bk': qkv_b[dim:2 * dim].reshape(1, dim).astype(bf16),
                'bv': qkv_b[2 * dim:].reshape(1, dim).astype(bf16),
                'rel_bias': rel.astype(f32),
                'proj_w': bp['attn']['proj_w'].astype(bf16),
                'proj_b': bp['attn']['proj_b'].reshape(1, dim).astype(bf16),
                'norm2_g': bp['norm2_g'].reshape(1, dim).astype(f32),
                'norm2_b': bp['norm2_b'].reshape(1, dim).astype(f32),
                'fc1_w': bp['fc1_w'].astype(bf16),
                'fc1_b': bp['fc1_b'].reshape(1, -1).astype(bf16),
                'fc2_w': bp['fc2_w'].astype(bf16),
                'fc2_b': bp['fc2_b'].reshape(1, dim).astype(bf16),
            })
        layer = {'blocks': blocks, 'downsample': None}
        if lp['downsample'] is not None:
            ds = lp['downsample']
            layer['downsample'] = {
                'norm_g': ds['norm_g'].reshape(1, 4 * dim).astype(f32),
                'norm_b': ds['norm_b'].reshape(1, 4 * dim).astype(f32),
                'red_w': ds['red_w'].astype(bf16),
            }
        prep['layers'].append(layer)
    return prep


# ----------------------------- main -----------------------------

if __name__ == "__main__":
    cfg = dict(
        img_size=(32, 32), patch_size=4, in_chans=3, embed_dim=32,
        depths=[2, 2], num_heads=[2, 4], window_size=4, mlp_ratio=4.0,
    )
    cfg['num_layers'] = len(cfg['depths'])
    cfg['patches_resolution'] = (cfg['img_size'][0] // cfg['patch_size'],
                                 cfg['img_size'][1] // cfg['patch_size'])

    key = jax.random.PRNGKey(0)
    k_param, k_x = jax.random.split(key)
    params = init_params(k_param, cfg)
    prep = prepare_params(params, cfg)   # hoisted constant prep (bf16 casts, scale fold)

    x = jax.random.normal(
        k_x, (2, cfg['in_chans'], cfg['img_size'][0], cfg['img_size'][1]), jnp.float32)

    fwd = jax.jit(functools.partial(swin_forward, cfg=cfg))
    outs = fwd(x, prep)
    outs = jax.block_until_ready(outs)

    # Layer-1 feature map: [B, C, H, W] = [2, 64, 4, 4]
    assert outs[0].shape == (2, 64, 4, 4), outs[0].shape
    assert np.isfinite(np.asarray(outs[0])).all()
    print("KERNEL_OK")
</pallas_src>

<mosaic_0001>
module attributes {stable_mosaic.version = 11 : i64} {
  func.func @_fused_matmul_kernel(%arg0: i32, %arg1: memref<64x48xf32, #tpu.memory_space<vmem>>, %arg2: memref<48x32xbf16, #tpu.memory_space<vmem>>, %arg3: memref<1x32xbf16, #tpu.memory_space<vmem>>, %arg4: memref<1x32xf32, #tpu.memory_space<vmem>>, %arg5: memref<1x32xf32, #tpu.memory_space<vmem>>, %arg6: memref<64x32xbf16, #tpu.memory_space<vmem>>) attributes {dimension_semantics = [#tpu.dimension_semantics<parallel>], iteration_bounds = array<i64: 2>, scalar_prefetch = 0 : i64, scratch_operands = 0 : i64, tpu.core_type = #tpu.core_type<tc>, window_params = [{transform_indices = @transform_0, window_bounds = array<i64: 64, 48>}, {pipeline_mode = #tpu.pipeline_mode<synchronous>, transform_indices = @transform_1, window_bounds = array<i64: 48, 32>}, {pipeline_mode = #tpu.pipeline_mode<synchronous>, transform_indices = @transform_2, window_bounds = array<i64: 1, 32>}, {pipeline_mode = #tpu.pipeline_mode<synchronous>, transform_indices = @transform_3, window_bounds = array<i64: 1, 32>}, {pipeline_mode = #tpu.pipeline_mode<synchronous>, transform_indices = @transform_4, window_bounds = array<i64: 1, 32>}, {transform_indices = @transform_5, window_bounds = array<i64: 64, 32>}]} {
    %c0 = arith.constant 0 : index
    %c0_0 = arith.constant 0 : index
    %0 = vector.load %arg1[%c0, %c0_0] : memref<64x48xf32, #tpu.memory_space<vmem>>, vector<64x48xf32>
    %1 = arith.truncf %0 : vector<64x48xf32> to vector<64x48xbf16>
    %c0_1 = arith.constant 0 : index
    %c0_2 = arith.constant 0 : index
    %2 = vector.load %arg2[%c0_1, %c0_2] : memref<48x32xbf16, #tpu.memory_space<vmem>>, vector<48x32xbf16>
    %cst = arith.constant dense<0.000000e+00> : vector<64x32xf32>
    %3 = tpu.matmul %1, %2, %cst {dimension_numbers = #tpu.dot_dimension_numbers<[1], [0], [0], [1], [0, 0, 1, 1], [], []>} : vector<64x48xbf16>, vector<48x32xbf16>, vector<64x32xf32> -> vector<64x32xf32>
    %c0_3 = arith.constant 0 : index
    %c0_4 = arith.constant 0 : index
    %4 = vector.load %arg3[%c0_3, %c0_4] : memref<1x32xbf16, #tpu.memory_space<vmem>>, vector<1x32xbf16>
    %5 = arith.extf %4 : vector<1x32xbf16> to vector<1x32xf32>
    %6 = vector.broadcast %5 : vector<1x32xf32> to vector<64x32xf32>
    %7 = arith.addf %3, %6 : vector<64x32xf32>
    %c0_5 = arith.constant 0 : index
    %c0_6 = arith.constant 0 : index
    %8 = vector.load %arg4[%c0_5, %c0_6] : memref<1x32xf32, #tpu.memory_space<vmem>>, vector<1x32xf32>
    %c0_7 = arith.constant 0 : index
    %c0_8 = arith.constant 0 : index
    %9 = vector.load %arg5[%c0_7, %c0_8] : memref<1x32xf32, #tpu.memory_space<vmem>>, vector<1x32xf32>
    %cst_9 = arith.constant dense<0.000000e+00> : vector<64xf32>
    %10 = vector.multi_reduction <add>, %7, %cst_9 [1] : vector<64x32xf32> to vector<64xf32>
    %11 = vector.shape_cast %10 : vector<64xf32> to vector<64x1xf32>
    %cst_10 = arith.constant 3.200000e+01 : f32
    %12 = vector.broadcast %cst_10 : f32 to vector<64x1xf32>
    %13 = arith.divf %11, %12 : vector<64x1xf32>
    %14 = vector.broadcast %13 : vector<64x1xf32> to vector<64x32xf32>
    %15 = arith.subf %7, %14 : vector<64x32xf32>
    %16 = arith.mulf %15, %15 : vector<64x32xf32>
    %cst_11 = arith.constant dense<0.000000e+00> : vector<64xf32>
    %17 = vector.multi_reduction <add>, %16, %cst_11 [1] : vector<64x32xf32> to vector<64xf32>
    %18 = vector.shape_cast %17 : vector<64xf32> to vector<64x1xf32>
    %cst_12 = arith.constant 3.200000e+01 : f32
    %19 = vector.broadcast %cst_12 : f32 to vector<64x1xf32>
    %20 = arith.divf %18, %19 : vector<64x1xf32>
    %cst_13 = arith.constant 9.99999974E-6 : f32
    %21 = vector.broadcast %cst_13 : f32 to vector<64x1xf32>
    %22 = arith.addf %20, %21 : vector<64x1xf32>
    %23 = math.rsqrt %22 : vector<64x1xf32>
    %24 = vector.broadcast %23 : vector<64x1xf32> to vector<64x32xf32>
    %25 = arith.mulf %15, %24 : vector<64x32xf32>
    %26 = vector.broadcast %8 : vector<1x32xf32> to vector<64x32xf32>
    %27 = arith.mulf %25, %26 : vector<64x32xf32>
    %28 = vector.broadcast %9 : vector<1x32xf32> to vector<64x32xf32>
    %29 = arith.addf %27, %28 : vector<64x32xf32>
    %30 = arith.truncf %29 : vector<64x32xf32> to vector<64x32xbf16>
    %c0_14 = arith.constant 0 : index
    %c0_15 = arith.constant 0 : index
    %31 = vector.load %arg6[%c0_14, %c0_15] : memref<64x32xbf16, #tpu.memory_space<vmem>>, vector<64x32xbf16>
    tpu.vector_store %arg6[%c0_14, %c0_15], %30 {strides = array<i32>} : memref<64x32xbf16, #tpu.memory_space<vmem>>, vector<64x32xbf16>,
    return
  }
  func.func @transform_0(%arg0: i32) -> (i32, i32) {
    %c0_i32 = arith.constant 0 : i32
    %c0_i32_0 = arith.constant 0 : i32
    return %arg0, %c0_i32 : i32, i32
  }
  func.func @transform_1(%arg0: i32) -> (i32, i32) {
    %c0_i32 = arith.constant 0 : i32
    %c0_i32_0 = arith.constant 0 : i32
    %c0_i32_1 = arith.constant 0 : i32
    return %c0_i32, %c0_i32_0 : i32, i32
  }
  func.func @transform_2(%arg0: i32) -> (i32, i32) {
    %c0_i32 = arith.constant 0 : i32
    %c0_i32_0 = arith.constant 0 : i32
    %c0_i32_1 = arith.constant 0 : i32
    return %c0_i32, %c0_i32_0 : i32, i32
  }
  func.func @transform_3(%arg0: i32) -> (i32, i32) {
    %c0_i32 = arith.constant 0 : i32
    %c0_i32_0 = arith.constant 0 : i32
    %c0_i32_1 = arith.constant 0 : i32
    return %c0_i32, %c0_i32_0 : i32, i32
  }
  func.func @transform_4(%arg0: i32) -> (i32, i32) {
    %c0_i32 = arith.constant 0 : i32
    %c0_i32_0 = arith.constant 0 : i32
    %c0_i32_1 = arith.constant 0 : i32
    return %c0_i32, %c0_i32_0 : i32, i32
  }
  func.func @transform_5(%arg0: i32) -> (i32, i32) {
    %c0_i32 = arith.constant 0 : i32
    %c0_i32_0 = arith.constant 0 : i32
    return %arg0, %c0_i32 : i32, i32
  }
}

module attributes {stable_mosaic.version = 11 : i64} {
  func.func @_window_attn_kernel(%arg0: i32, %arg1: memref<4x16x32xbf16, #tpu.memory_space<vmem>>, %arg2: memref<1x32xf32, #tpu.memory_space<vmem>>, %arg3: memref<1x32xf32, #tpu.memory_space<vmem>>, %arg4: memref<32x32xbf16, #tpu.memory_space<vmem>>, %arg5: memref<32x32xbf16, #tpu.memory_space<vmem>>, %arg6: memref<32x32xbf16, #tpu.memory_space<vmem>>, %arg7: memref<1x32xbf16, #tpu.memory_space<vmem>>, %arg8: memref<1x32xbf16, #tpu.memory_space<vmem>>, %arg9: memref<1x32xbf16, #tpu.memory_space<vmem>>, %arg10: memref<2x16x16xf32, #tpu.memory_space<vmem>>, %arg11: memref<4x16x16xf32, #tpu.memory_space<vmem>>, %arg12: memref<32x32xbf16, #tpu.memory_space<vmem>>, %arg13: memref<1x32xbf16, #tpu.memory_space<vmem>>, %arg14: memref<4x16x32xbf16, #tpu.memory_space<vmem>>) attributes {dimension_semantics = [#tpu.dimension_semantics<parallel>], iteration_bounds = array<i64: 2>, scalar_prefetch = 0 : i64, scratch_operands = 0 : i64, tpu.core_type = #tpu.core_type<tc>, window_params = [{transform_indices = @transform_0, window_bounds = array<i64: 4, 16, 32>}, {pipeline_mode = #tpu.pipeline_mode<synchronous>, transform_indices = @transform_1, window_bounds = array<i64: 1, 32>}, {pipeline_mode = #tpu.pipeline_mode<synchronous>, transform_indices = @transform_2, window_bounds = array<i64: 1, 32>}, {pipeline_mode = #tpu.pipeline_mode<synchronous>, transform_indices = @transform_3, window_bounds = array<i64: 32, 32>}, {pipeline_mode = #tpu.pipeline_mode<synchronous>, transform_indices = @transform_4, window_bounds = array<i64: 32, 32>}, {pipeline_mode = #tpu.pipeline_mode<synchronous>, transform_indices = @transform_5, window_bounds = array<i64: 32, 32>}, {pipeline_mode = #tpu.pipeline_mode<synchronous>, transform_indices = @transform_6, window_bounds = array<i64: 1, 32>}, {pipeline_mode = #tpu.pipeline_mode<synchronous>, transform_indices = @transform_7, window_bounds = array<i64: 1, 32>}, {pipeline_mode = #tpu.pipeline_mode<synchronous>, transform_indices = @transform_8, window_bounds = array<i64: 1, 32>}, {pipeline_mode = #tpu.pipeline_mode<synchronous>, transform_indices = @transform_9, window_bounds = array<i64: 2, 16, 16>}, {pipeline_mode = #tpu.pipeline_mode<synchronous>, transform_indices = @transform_10, window_bounds = array<i64: 4, 16, 16>}, {pipeline_mode = #tpu.pipeline_mode<synchronous>, transform_indices = @transform_11, window_bounds = array<i64: 32, 32>}, {pipeline_mode = #tpu.pipeline_mode<synchronous>, transform_indices = @transform_12, window_bounds = array<i64: 1, 32>}, {transform_indices = @transform_13, window_bounds = array<i64: 4, 16, 32>}]} {
    %c0 = arith.constant 0 : index
    %c0_0 = arith.constant 0 : index
    %c0_1 = arith.constant 0 : index
    %0 = vector.load %arg1[%c0, %c0_0, %c0_1] : memref<4x16x32xbf16, #tpu.memory_space<vmem>>, vector<4x16x32xbf16>
    %1 = arith.extf %0 : vector<4x16x32xbf16> to vector<4x16x32xf32>
    %2 = vector.shape_cast %1 : vector<4x16x32xf32> to vector<64x32xf32>
    %c0_2 = arith.constant 0 : index
    %c0_3 = arith.constant 0 : index
    %3 = vector.load %arg2[%c0_2, %c0_3] : memref<1x32xf32, #tpu.memory_space<vmem>>, vector<1x32xf32>
    %c0_4 = arith.constant 0 : index
    %c0_5 = arith.constant 0 : index
    %4 = vector.load %arg3[%c0_4, %c0_5] : memref<1x32xf32, #tpu.memory_space<vmem>>, vector<1x32xf32>
    %cst = arith.constant dense<0.000000e+00> : vector<64xf32>
    %5 = vector.multi_reduction <add>, %2, %cst [1] : vector<64x32xf32> to vector<64xf32>
    %6 = vector.shape_cast %5 : vector<64xf32> to vector<64x1xf32>
    %cst_6 = arith.constant 3.200000e+01 : f32
    %7 = vector.broadcast %cst_6 : f32 to vector<64x1xf32>
    %8 = arith.divf %6, %7 : vector<64x1xf32>
    %9 = vector.broadcast %8 : vector<64x1xf32> to vector<64x32xf32>
    %10 = arith.subf %2, %9 : vector<64x32xf32>
    %11 = arith.mulf %10, %10 : vector<64x32xf32>
    %cst_7 = arith.constant dense<0.000000e+00> : vector<64xf32>
    %12 = vector.multi_reduction <add>, %11, %cst_7 [1] : vector<64x32xf32> to vector<64xf32>
    %13 = vector.shape_cast %12 : vector<64xf32> to vector<64x1xf32>
    %cst_8 = arith.constant 3.200000e+01 : f32
    %14 = vector.broadcast %cst_8 : f32 to vector<64x1xf32>
    %15 = arith.divf %13, %14 : vector<64x1xf32>
    %cst_9 = arith.constant 9.99999974E-6 : f32
    %16 = vector.broadcast %cst_9 : f32 to vector<64x1xf32>
    %17 = arith.addf %15, %16 : vector<64x1xf32>
    %18 = math.rsqrt %17 : vector<64x1xf32>
    %19 = vector.broadcast %18 : vector<64x1xf32> to vector<64x32xf32>
    %20 = arith.mulf %10, %19 : vector<64x32xf32>
    %21 = vector.broadcast %3 : vector<1x32xf32> to vector<64x32xf32>
    %22 = arith.mulf %20, %21 : vector<64x32xf32>
    %23 = vector.broadcast %4 : vector<1x32xf32> to vector<64x32xf32>
    %24 = arith.addf %22, %23 : vector<64x32xf32>
    %25 = arith.truncf %24 : vector<64x32xf32> to vector<64x32xbf16>
    %c0_10 = arith.constant 0 : index
    %c0_11 = arith.constant 0 : index
    %26 = vector.load %arg4[%c0_10, %c0_11] : memref<32x32xbf16, #tpu.memory_space<vmem>>, vector<32x32xbf16>
    %cst_12 = arith.constant dense<0.000000e+00> : vector<64x32xf32>
    %27 = tpu.matmul %25, %26, %cst_12 {dimension_numbers = #tpu.dot_dimension_numbers<[1], [0], [0], [1], [0, 0, 1, 1], [], []>} : vector<64x32xbf16>, vector<32x32xbf16>, vector<64x32xf32> -> vector<64x32xf32>
    %c0_13 = arith.constant 0 : index
    %c0_14 = arith.constant 0 : index
    %28 = vector.load %arg7[%c0_13, %c0_14] : memref<1x32xbf16, #tpu.memory_space<vmem>>, vector<1x32xbf16>
    %29 = arith.extf %28 : vector<1x32xbf16> to vector<1x32xf32>
    %30 = vector.broadcast %29 : vector<1x32xf32> to vector<64x32xf32>
    %31 = arith.addf %27, %30 : vector<64x32xf32>
    %32 = vector.shape_cast %31 : vector<64x32xf32> to vector<4x16x32xf32>
    %33 = tpu.transpose %32, [0, 2, 1] : vector<4x16x32xf32> -> vector<4x32x16xf32>
    %34 = vector.shape_cast %33 : vector<4x32x16xf32> to vector<4x2x16x16xf32>
    %35 = tpu.transpose %34, [0, 1, 3, 2] : vector<4x2x16x16xf32> -> vector<4x2x16x16xf32>
    %36 = vector.shape_cast %35 : vector<4x2x16x16xf32> to vector<8x16x16xf32>
    %37 = arith.truncf %36 : vector<8x16x16xf32> to vector<8x16x16xbf16>
    %c0_15 = arith.constant 0 : index
    %c0_16 = arith.constant 0 : index
    %38 = vector.load %arg5[%c0_15, %c0_16] : memref<32x32xbf16, #tpu.memory_space<vmem>>, vector<32x32xbf16>
    %cst_17 = arith.constant dense<0.000000e+00> : vector<64x32xf32>
    %39 = tpu.matmul %25, %38, %cst_17 {dimension_numbers = #tpu.dot_dimension_numbers<[1], [0], [0], [1], [0, 0, 1, 1], [], []>} : vector<64x32xbf16>, vector<32x32xbf16>, vector<64x32xf32> -> vector<64x32xf32>
    %c0_18 = arith.constant 0 : index
    %c0_19 = arith.constant 0 : index
    %40 = vector.load %arg8[%c0_18, %c0_19] : memref<1x32xbf16, #tpu.memory_space<vmem>>, vector<1x32xbf16>
    %41 = arith.extf %40 : vector<1x32xbf16> to vector<1x32xf32>
    %42 = vector.broadcast %41 : vector<1x32xf32> to vector<64x32xf32>
    %43 = arith.addf %39, %42 : vector<64x32xf32>
    %44 = vector.shape_cast %43 : vector<64x32xf32> to vector<4x16x32xf32>
    %45 = tpu.transpose %44, [0, 2, 1] : vector<4x16x32xf32> -> vector<4x32x16xf32>
    %46 = vector.shape_cast %45 : vector<4x32x16xf32> to vector<4x2x16x16xf32>
    %47 = tpu.transpose %46, [0, 1, 3, 2] : vector<4x2x16x16xf32> -> vector<4x2x16x16xf32>
    %48 = vector.shape_cast %47 : vector<4x2x16x16xf32> to vector<8x16x16xf32>
    %49 = arith.truncf %48 : vector<8x16x16xf32> to vector<8x16x16xbf16>
    %c0_20 = arith.constant 0 : index
    %c0_21 = arith.constant 0 : index
    %50 = vector.load %arg6[%c0_20, %c0_21] : memref<32x32xbf16, #tpu.memory_space<vmem>>, vector<32x32xbf16>
    %cst_22 = arith.constant dense<0.000000e+00> : vector<64x32xf32>
    %51 = tpu.matmul %25, %50, %cst_22 {dimension_numbers = #tpu.dot_dimension_numbers<[1], [0], [0], [1], [0, 0, 1, 1], [], []>} : vector<64x32xbf16>, vector<32x32xbf16>, vector<64x32xf32> -> vector<64x32xf32>
    %c0_23 = arith.constant 0 : index
    %c0_24 = arith.constant 0 : index
    %52 = vector.load %arg9[%c0_23, %c0_24] : memref<1x32xbf16, #tpu.memory_space<vmem>>, vector<1x32xbf16>
    %53 = arith.extf %52 : vector<1x32xbf16> to vector<1x32xf32>
    %54 = vector.broadcast %53 : vector<1x32xf32> to vector<64x32xf32>
    %55 = arith.addf %51, %54 : vector<64x32xf32>
    %56 = vector.shape_cast %55 : vector<64x32xf32> to vector<4x16x32xf32>
    %57 = tpu.transpose %56, [0, 2, 1] : vector<4x16x32xf32> -> vector<4x32x16xf32>
    %58 = vector.shape_cast %57 : vector<4x32x16xf32> to vector<4x2x16x16xf32>
    %59 = tpu.transpose %58, [0, 1, 3, 2] : vector<4x2x16x16xf32> -> vector<4x2x16x16xf32>
    %60 = vector.shape_cast %59 : vector<4x2x16x16xf32> to vector<8x16x16xf32>
    %61 = arith.truncf %60 : vector<8x16x16xf32> to vector<8x16x16xbf16>
    "tpu.trace_start"() <{level = 10 : i32, message = "bnd,bmd->bnm"}> : () -> ()
    %cst_25 = arith.constant dense<0.000000e+00> : vector<8x16x16xf32>
    %62 = tpu.matmul %37, %49, %cst_25 {dimension_numbers = #tpu.dot_dimension_numbers<[2], [2], [1], [1], [0, 0, 0, 1, 1, 1], [0], [0]>} : vector<8x16x16xbf16>, vector<8x16x16xbf16>, vector<8x16x16xf32> -> vector<8x16x16xf32>
    "tpu.trace_stop"() : () -> ()
    %63 = vector.shape_cast %62 : vector<8x16x16xf32> to vector<4x2x16x16xf32>
    %c0_26 = arith.constant 0 : index
    %c0_27 = arith.constant 0 : index
    %c0_28 = arith.constant 0 : index
    %64 = vector.load %arg10[%c0_26, %c0_27, %c0_28] : memref<2x16x16xf32, #tpu.memory_space<vmem>>, vector<2x16x16xf32>
    %65 = vector.shape_cast %64 : vector<2x16x16xf32> to vector<1x2x16x16xf32>
    %66 = vector.broadcast %65 : vector<1x2x16x16xf32> to vector<4x2x16x16xf32>
    %67 = arith.addf %63, %66 : vector<4x2x16x16xf32>
    %c0_29 = arith.constant 0 : index
    %c0_30 = arith.constant 0 : index
    %c0_31 = arith.constant 0 : index
    %68 = vector.load %arg11[%c0_29, %c0_30, %c0_31] : memref<4x16x16xf32, #tpu.memory_space<vmem>>, vector<4x16x16xf32>
    %69 = vector.shape_cast %68 : vector<4x16x16xf32> to vector<4x1x16x16xf32>
    %70 = vector.broadcast %69 : vector<4x1x16x16xf32> to vector<4x2x16x16xf32>
    %71 = arith.addf %67, %70 : vector<4x2x16x16xf32>
    %cst_32 = arith.constant dense<0xFF800000> : vector<4x2x16xf32>
    %72 = vector.multi_reduction <maximumf>, %71, %cst_32 [3] : vector<4x2x16x16xf32> to vector<4x2x16xf32>
    %73 = vector.shape_cast %72 : vector<4x2x16xf32> to vector<4x2x16x1xf32>
    %74 = vector.broadcast %73 : vector<4x2x16x1xf32> to vector<4x2x16x16xf32>
    %75 = arith.subf %71, %74 : vector<4x2x16x16xf32>
    %76 = math.exp %75 : vector<4x2x16x16xf32>
    %cst_33 = arith.constant dense<0.000000e+00> : vector<4x2x16xf32>
    %77 = vector.multi_reduction <add>, %76, %cst_33 [3] : vector<4x2x16x16xf32> to vector<4x2x16xf32>
    %78 = vector.shape_cast %77 : vector<4x2x16xf32> to vector<4x2x16x1xf32>
    %79 = vector.broadcast %78 : vector<4x2x16x1xf32> to vector<4x2x16x16xf32>
    %80 = arith.divf %76, %79 : vector<4x2x16x16xf32>
    %81 = vector.shape_cast %80 : vector<4x2x16x16xf32> to vector<8x16x16xf32>
    %82 = arith.truncf %81 : vector<8x16x16xf32> to vector<8x16x16xbf16>
    "tpu.trace_start"() <{level = 10 : i32, message = "bnm,bmd->bnd"}> : () -> ()
    %cst_34 = arith.constant dense<0.000000e+00> : vector<8x16x16xf32>
    %83 = tpu.matmul %82, %61, %cst_34 {dimension_numbers = #tpu.dot_dimension_numbers<[2], [1], [1], [2], [0, 0, 0, 1, 1, 2], [0], [0]>} : vector<8x16x16xbf16>, vector<8x16x16xbf16>, vector<8x16x16xf32> -> vector<8x16x16xf32>
    "tpu.trace_stop"() : () -> ()
    %84 = vector.shape_cast %83 : vector<8x16x16xf32> to vector<4x2x16x16xf32>
    %85 = tpu.transpose %84, [0, 1, 3, 2] : vector<4x2x16x16xf32> -> vector<4x2x16x16xf32>
    %86 = vector.shape_cast %85 : vector<4x2x16x16xf32> to vector<4x32x16xf32>
    %87 = tpu.transpose %86, [0, 2, 1] : vector<4x32x16xf32> -> vector<4x16x32xf32>
    %88 = vector.shape_cast %87 : vector<4x16x32xf32> to vector<64x32xf32>
    %89 = arith.truncf %88 : vector<64x32xf32> to vector<64x32xbf16>
    %c0_35 = arith.constant 0 : index
    %c0_36 = arith.constant 0 : index
    %90 = vector.load %arg12[%c0_35, %c0_36] : memref<32x32xbf16, #tpu.memory_space<vmem>>, vector<32x32xbf16>
    %cst_37 = arith.constant dense<0.000000e+00> : vector<64x32xf32>
    %91 = tpu.matmul %89, %90, %cst_37 {dimension_numbers = #tpu.dot_dimension_numbers<[1], [0], [0], [1], [0, 0, 1, 1], [], []>} : vector<64x32xbf16>, vector<32x32xbf16>, vector<64x32xf32> -> vector<64x32xf32>
    %c0_38 = arith.constant 0 : index
    %c0_39 = arith.constant 0 : index
    %92 = vector.load %arg13[%c0_38, %c0_39] : memref<1x32xbf16, #tpu.memory_space<vmem>>, vector<1x32xbf16>
    %93 = arith.extf %92 : vector<1x32xbf16> to vector<1x32xf32>
    %94 = vector.broadcast %93 : vector<1x32xf32> to vector<64x32xf32>
    %95 = arith.addf %91, %94 : vector<64x32xf32>
    %96 = vector.shape_cast %95 : vector<64x32xf32> to vector<4x16x32xf32>
    %97 = arith.addf %1, %96 : vector<4x16x32xf32>
    %98 = arith.truncf %97 : vector<4x16x32xf32> to vector<4x16x32xbf16>
    %c0_40 = arith.constant 0 : index
    %c0_41 = arith.constant 0 : index
    %c0_42 = arith.constant 0 : index
    %99 = vector.load %arg14[%c0_40, %c0_41, %c0_42] : memref<4x16x32xbf16, #tpu.memory_space<vmem>>, vector<4x16x32xbf16>
    tpu.vector_store %arg14[%c0_40, %c0_41, %c0_42], %98 {strides = array<i32>} : memref<4x16x32xbf16, #tpu.memory_space<vmem>>, vector<4x16x32xbf16>,
    return
  }
  func.func @transform_0(%arg0: i32) -> (i32, i32, i32) {
    %c0_i32 = arith.constant 0 : i32
    %c0_i32_0 = arith.constant 0 : i32
    %c0_i32_1 = arith.constant 0 : i32
    return %arg0, %c0_i32, %c0_i32_0 : i32, i32, i32
  }
  func.func @transform_1(%arg0: i32) -> (i32, i32) {
    %c0_i32 = arith.constant 0 : i32
    %c0_i32_0 = arith.constant 0 : i32
    %c0_i32_1 = arith.constant 0 : i32
    return %c0_i32, %c0_i32_0 : i32, i32
  }
  func.func @transform_2(%arg0: i32) -> (i32, i32) {
    %c0_i32 = arith.constant 0 : i32
    %c0_i32_0 = arith.constant 0 : i32
    %c0_i32_1 = arith.constant 0 : i32
    return %c0_i32, %c0_i32_0 : i32, i32
  }
  func.func @transform_3(%arg0: i32) -> (i32, i32) {
    %c0_i32 = arith.constant 0 : i32
    %c0_i32_0 = arith.constant 0 : i32
    %c0_i32_1 = arith.constant 0 : i32
    return %c0_i32, %c0_i32_0 : i32, i32
  }
  func.func @transform_4(%arg0: i32) -> (i32, i32) {
    %c0_i32 = arith.constant 0 : i32
    %c0_i32_0 = arith.constant 0 : i32
    %c0_i32_1 = arith.constant 0 : i32
    return %c0_i32, %c0_i32_0 : i32, i32
  }
  func.func @transform_5(%arg0: i32) -> (i32, i32) {
    %c0_i32 = arith.constant 0 : i32
    %c0_i32_0 = arith.constant 0 : i32
    %c0_i32_1 = arith.constant 0 : i32
    return %c0_i32, %c0_i32_0 : i32, i32
  }
  func.func @transform_6(%arg0: i32) -> (i32, i32) {
    %c0_i32 = arith.constant 0 : i32
    %c0_i32_0 = arith.constant 0 : i32
    %c0_i32_1 = arith.constant 0 : i32
    return %c0_i32, %c0_i32_0 : i32, i32
  }
  func.func @transform_7(%arg0: i32) -> (i32, i32) {
    %c0_i32 = arith.constant 0 : i32
    %c0_i32_0 = arith.constant 0 : i32
    %c0_i32_1 = arith.constant 0 : i32
    return %c0_i32, %c0_i32_0 : i32, i32
  }
  func.func @transform_8(%arg0: i32) -> (i32, i32) {
    %c0_i32 = arith.constant 0 : i32
    %c0_i32_0 = arith.constant 0 : i32
    %c0_i32_1 = arith.constant 0 : i32
    return %c0_i32, %c0_i32_0 : i32, i32
  }
  func.func @transform_9(%arg0: i32) -> (i32, i32, i32) {
    %c0_i32 = arith.constant 0 : i32
    %c0_i32_0 = arith.constant 0 : i32
    %c0_i32_1 = arith.constant 0 : i32
    %c0_i32_2 = arith.constant 0 : i32
    return %c0_i32, %c0_i32_0, %c0_i32_1 : i32, i32, i32
  }
  func.func @transform_10(%arg0: i32) -> (i32, i32, i32) {
    %c0_i32 = arith.constant 0 : i32
    %c0_i32_0 = arith.constant 0 : i32
    %c0_i32_1 = arith.constant 0 : i32
    %c0_i32_2 = arith.constant 0 : i32
    return %c0_i32, %c0_i32_0, %c0_i32_1 : i32, i32, i32
  }
  func.func @transform_11(%arg0: i32) -> (i32, i32) {
    %c0_i32 = arith.constant 0 : i32
    %c0_i32_0 = arith.constant 0 : i32
    %c0_i32_1 = arith.constant 0 : i32
    return %c0_i32, %c0_i32_0 : i32, i32
  }
  func.func @transform_12(%arg0: i32) -> (i32, i32) {
    %c0_i32 = arith.constant 0 : i32
    %c0_i32_0 = arith.constant 0 : i32
    %c0_i32_1 = arith.constant 0 : i32
    return %c0_i32, %c0_i32_0 : i32, i32
  }
  func.func @transform_13(%arg0: i32) -> (i32, i32, i32) {
    %c0_i32 = arith.constant 0 : i32
    %c0_i32_0 = arith.constant 0 : i32
    %c0_i32_1 = arith.constant 0 : i32
    return %arg0, %c0_i32, %c0_i32_0 : i32, i32, i32
  }
}

module attributes {stable_mosaic.version = 11 : i64} {
  func.func @_ln_mlp_kernel(%arg0: i32, %arg1: memref<64x32xbf16, #tpu.memory_space<vmem>>, %arg2: memref<1x32xf32, #tpu.memory_space<vmem>>, %arg3: memref<1x32xf32, #tpu.memory_space<vmem>>, %arg4: memref<32x128xbf16, #tpu.memory_space<vmem>>, %arg5: memref<1x128xbf16, #tpu.memory_space<vmem>>, %arg6: memref<128x32xbf16, #tpu.memory_space<vmem>>, %arg7: memref<1x32xbf16, #tpu.memory_space<vmem>>, %arg8: memref<64x32xbf16, #tpu.memory_space<vmem>>) attributes {dimension_semantics = [#tpu.dimension_semantics<parallel>], iteration_bounds = array<i64: 2>, scalar_prefetch = 0 : i64, scratch_operands = 0 : i64, tpu.core_type = #tpu.core_type<tc>, window_params = [{transform_indices = @transform_0, window_bounds = array<i64: 64, 32>}, {pipeline_mode = #tpu.pipeline_mode<synchronous>, transform_indices = @transform_1, window_bounds = array<i64: 1, 32>}, {pipeline_mode = #tpu.pipeline_mode<synchronous>, transform_indices = @transform_2, window_bounds = array<i64: 1, 32>}, {pipeline_mode = #tpu.pipeline_mode<synchronous>, transform_indices = @transform_3, window_bounds = array<i64: 32, 128>}, {pipeline_mode = #tpu.pipeline_mode<synchronous>, transform_indices = @transform_4, window_bounds = array<i64: 1, 128>}, {pipeline_mode = #tpu.pipeline_mode<synchronous>, transform_indices = @transform_5, window_bounds = array<i64: 128, 32>}, {pipeline_mode = #tpu.pipeline_mode<synchronous>, transform_indices = @transform_6, window_bounds = array<i64: 1, 32>}, {transform_indices = @transform_7, window_bounds = array<i64: 64, 32>}]} {
    %c0 = arith.constant 0 : index
    %c0_0 = arith.constant 0 : index
    %0 = vector.load %arg1[%c0, %c0_0] : memref<64x32xbf16, #tpu.memory_space<vmem>>, vector<64x32xbf16>
    %1 = arith.extf %0 : vector<64x32xbf16> to vector<64x32xf32>
    %c0_1 = arith.constant 0 : index
    %c0_2 = arith.constant 0 : index
    %2 = vector.load %arg2[%c0_1, %c0_2] : memref<1x32xf32, #tpu.memory_space<vmem>>, vector<1x32xf32>
    %c0_3 = arith.constant 0 : index
    %c0_4 = arith.constant 0 : index
    %3 = vector.load %arg3[%c0_3, %c0_4] : memref<1x32xf32, #tpu.memory_space<vmem>>, vector<1x32xf32>
    %cst = arith.constant dense<0.000000e+00> : vector<64xf32>
    %4 = vector.multi_reduction <add>, %1, %cst [1] : vector<64x32xf32> to vector<64xf32>
    %5 = vector.shape_cast %4 : vector<64xf32> to vector<64x1xf32>
    %cst_5 = arith.constant 3.200000e+01 : f32
    %6 = vector.broadcast %cst_5 : f32 to vector<64x1xf32>
    %7 = arith.divf %5, %6 : vector<64x1xf32>
    %8 = vector.broadcast %7 : vector<64x1xf32> to vector<64x32xf32>
    %9 = arith.subf %1, %8 : vector<64x32xf32>
    %10 = arith.mulf %9, %9 : vector<64x32xf32>
    %cst_6 = arith.constant dense<0.000000e+00> : vector<64xf32>
    %11 = vector.multi_reduction <add>, %10, %cst_6 [1] : vector<64x32xf32> to vector<64xf32>
    %12 = vector.shape_cast %11 : vector<64xf32> to vector<64x1xf32>
    %cst_7 = arith.constant 3.200000e+01 : f32
    %13 = vector.broadcast %cst_7 : f32 to vector<64x1xf32>
    %14 = arith.divf %12, %13 : vector<64x1xf32>
    %cst_8 = arith.constant 9.99999974E-6 : f32
    %15 = vector.broadcast %cst_8 : f32 to vector<64x1xf32>
    %16 = arith.addf %14, %15 : vector<64x1xf32>
    %17 = math.rsqrt %16 : vector<64x1xf32>
    %18 = vector.broadcast %17 : vector<64x1xf32> to vector<64x32xf32>
    %19 = arith.mulf %9, %18 : vector<64x32xf32>
    %20 = vector.broadcast %2 : vector<1x32xf32> to vector<64x32xf32>
    %21 = arith.mulf %19, %20 : vector<64x32xf32>
    %22 = vector.broadcast %3 : vector<1x32xf32> to vector<64x32xf32>
    %23 = arith.addf %21, %22 : vector<64x32xf32>
    %24 = arith.truncf %23 : vector<64x32xf32> to vector<64x32xbf16>
    %c0_9 = arith.constant 0 : index
    %c0_10 = arith.constant 0 : index
    %25 = vector.load %arg4[%c0_9, %c0_10] : memref<32x128xbf16, #tpu.memory_space<vmem>>, vector<32x128xbf16>
    %cst_11 = arith.constant dense<0.000000e+00> : vector<64x128xf32>
    %26 = tpu.matmul %24, %25, %cst_11 {dimension_numbers = #tpu.dot_dimension_numbers<[1], [0], [0], [1], [0, 0, 1, 1], [], []>} : vector<64x32xbf16>, vector<32x128xbf16>, vector<64x128xf32> -> vector<64x128xf32>
    %c0_12 = arith.constant 0 : index
    %c0_13 = arith.constant 0 : index
    %27 = vector.load %arg5[%c0_12, %c0_13] : memref<1x128xbf16, #tpu.memory_space<vmem>>, vector<1x128xbf16>
    %28 = arith.extf %27 : vector<1x128xbf16> to vector<1x128xf32>
    %29 = vector.broadcast %28 : vector<1x128xf32> to vector<64x128xf32>
    %30 = arith.addf %26, %29 : vector<64x128xf32>
    %cst_14 = arith.constant 5.000000e-01 : f32
    %31 = vector.broadcast %cst_14 : f32 to vector<64x128xf32>
    %32 = arith.mulf %31, %30 : vector<64x128xf32>
    %cst_15 = arith.constant 4.471500e-02 : f32
    %33 = vector.broadcast %cst_15 : f32 to vector<64x128xf32>
    %34 = arith.mulf %33, %30 : vector<64x128xf32>
    %35 = arith.mulf %34, %30 : vector<64x128xf32>
    %36 = arith.mulf %35, %30 : vector<64x128xf32>
    %37 = arith.addf %30, %36 : vector<64x128xf32>
    %cst_16 = arith.constant 0.797884583 : f32
    %38 = vector.broadcast %cst_16 : f32 to vector<64x128xf32>
    %39 = arith.mulf %38, %37 : vector<64x128xf32>
    %40 = math.tanh %39 : vector<64x128xf32>
    %cst_17 = arith.constant 1.000000e+00 : f32
    %41 = vector.broadcast %cst_17 : f32 to vector<64x128xf32>
    %42 = arith.addf %41, %40 : vector<64x128xf32>
    %43 = arith.mulf %32, %42 : vector<64x128xf32>
    %44 = arith.truncf %43 : vector<64x128xf32> to vector<64x128xbf16>
    %c0_18 = arith.constant 0 : index
    %c0_19 = arith.constant 0 : index
    %45 = vector.load %arg6[%c0_18, %c0_19] : memref<128x32xbf16, #tpu.memory_space<vmem>>, vector<128x32xbf16>
    %cst_20 = arith.constant dense<0.000000e+00> : vector<64x32xf32>
    %46 = tpu.matmul %44, %45, %cst_20 {dimension_numbers = #tpu.dot_dimension_numbers<[1], [0], [0], [1], [0, 0, 1, 1], [], []>} : vector<64x128xbf16>, vector<128x32xbf16>, vector<64x32xf32> -> vector<64x32xf32>
    %c0_21 = arith.constant 0 : index
    %c0_22 = arith.constant 0 : index
    %47 = vector.load %arg7[%c0_21, %c0_22] : memref<1x32xbf16, #tpu.memory_space<vmem>>, vector<1x32xbf16>
    %48 = arith.extf %47 : vector<1x32xbf16> to vector<1x32xf32>
    %49 = vector.broadcast %48 : vector<1x32xf32> to vector<64x32xf32>
    %50 = arith.addf %46, %49 : vector<64x32xf32>
    %51 = arith.addf %1, %50 : vector<64x32xf32>
    %52 = arith.truncf %51 : vector<64x32xf32> to vector<64x32xbf16>
    %c0_23 = arith.constant 0 : index
    %c0_24 = arith.constant 0 : index
    %53 = vector.load %arg8[%c0_23, %c0_24] : memref<64x32xbf16, #tpu.memory_space<vmem>>, vector<64x32xbf16>
    tpu.vector_store %arg8[%c0_23, %c0_24], %52 {strides = array<i32>} : memref<64x32xbf16, #tpu.memory_space<vmem>>, vector<64x32xbf16>,
    return
  }
  func.func @transform_0(%arg0: i32) -> (i32, i32) {
    %c0_i32 = arith.constant 0 : i32
    %c0_i32_0 = arith.constant 0 : i32
    return %arg0, %c0_i32 : i32, i32
  }
  func.func @transform_1(%arg0: i32) -> (i32, i32) {
    %c0_i32 = arith.constant 0 : i32
    %c0_i32_0 = arith.constant 0 : i32
    %c0_i32_1 = arith.constant 0 : i32
    return %c0_i32, %c0_i32_0 : i32, i32
  }
  func.func @transform_2(%arg0: i32) -> (i32, i32) {
    %c0_i32 = arith.constant 0 : i32
    %c0_i32_0 = arith.constant 0 : i32
    %c0_i32_1 = arith.constant 0 : i32
    return %c0_i32, %c0_i32_0 : i32, i32
  }
  func.func @transform_3(%arg0: i32) -> (i32, i32) {
    %c0_i32 = arith.constant 0 : i32
    %c0_i32_0 = arith.constant 0 : i32
    %c0_i32_1 = arith.constant 0 : i32
    return %c0_i32, %c0_i32_0 : i32, i32
  }
  func.func @transform_4(%arg0: i32) -> (i32, i32) {
    %c0_i32 = arith.constant 0 : i32
    %c0_i32_0 = arith.constant 0 : i32
    %c0_i32_1 = arith.constant 0 : i32
    return %c0_i32, %c0_i32_0 : i32, i32
  }
  func.func @transform_5(%arg0: i32) -> (i32, i32) {
    %c0_i32 = arith.constant 0 : i32
    %c0_i32_0 = arith.constant 0 : i32
    %c0_i32_1 = arith.constant 0 : i32
    return %c0_i32, %c0_i32_0 : i32, i32
  }
  func.func @transform_6(%arg0: i32) -> (i32, i32) {
    %c0_i32 = arith.constant 0 : i32
    %c0_i32_0 = arith.constant 0 : i32
    %c0_i32_1 = arith.constant 0 : i32
    return %c0_i32, %c0_i32_0 : i32, i32
  }
  func.func @transform_7(%arg0: i32) -> (i32, i32) {
    %c0_i32 = arith.constant 0 : i32
    %c0_i32_0 = arith.constant 0 : i32
    return %arg0, %c0_i32 : i32, i32
  }
}

module attributes {stable_mosaic.version = 11 : i64} {
  func.func @_window_attn_kernel(%arg0: i32, %arg1: memref<1x16x64xbf16, #tpu.memory_space<vmem>>, %arg2: memref<1x64xf32, #tpu.memory_space<vmem>>, %arg3: memref<1x64xf32, #tpu.memory_space<vmem>>, %arg4: memref<64x64xbf16, #tpu.memory_space<vmem>>, %arg5: memref<64x64xbf16, #tpu.memory_space<vmem>>, %arg6: memref<64x64xbf16, #tpu.memory_space<vmem>>, %arg7: memref<1x64xbf16, #tpu.memory_space<vmem>>, %arg8: memref<1x64xbf16, #tpu.memory_space<vmem>>, %arg9: memref<1x64xbf16, #tpu.memory_space<vmem>>, %arg10: memref<4x16x16xf32, #tpu.memory_space<vmem>>, %arg11: memref<64x64xbf16, #tpu.memory_space<vmem>>, %arg12: memref<1x64xbf16, #tpu.memory_space<vmem>>, %arg13: memref<1x16x64xbf16, #tpu.memory_space<vmem>>) attributes {dimension_semantics = [#tpu.dimension_semantics<parallel>], iteration_bounds = array<i64: 2>, scalar_prefetch = 0 : i64, scratch_operands = 0 : i64, tpu.core_type = #tpu.core_type<tc>, window_params = [{transform_indices = @transform_0, window_bounds = array<i64: 1, 16, 64>}, {pipeline_mode = #tpu.pipeline_mode<synchronous>, transform_indices = @transform_1, window_bounds = array<i64: 1, 64>}, {pipeline_mode = #tpu.pipeline_mode<synchronous>, transform_indices = @transform_2, window_bounds = array<i64: 1, 64>}, {pipeline_mode = #tpu.pipeline_mode<synchronous>, transform_indices = @transform_3, window_bounds = array<i64: 64, 64>}, {pipeline_mode = #tpu.pipeline_mode<synchronous>, transform_indices = @transform_4, window_bounds = array<i64: 64, 64>}, {pipeline_mode = #tpu.pipeline_mode<synchronous>, transform_indices = @transform_5, window_bounds = array<i64: 64, 64>}, {pipeline_mode = #tpu.pipeline_mode<synchronous>, transform_indices = @transform_6, window_bounds = array<i64: 1, 64>}, {pipeline_mode = #tpu.pipeline_mode<synchronous>, transform_indices = @transform_7, window_bounds = array<i64: 1, 64>}, {pipeline_mode = #tpu.pipeline_mode<synchronous>, transform_indices = @transform_8, window_bounds = array<i64: 1, 64>}, {pipeline_mode = #tpu.pipeline_mode<synchronous>, transform_indices = @transform_9, window_bounds = array<i64: 4, 16, 16>}, {pipeline_mode = #tpu.pipeline_mode<synchronous>, transform_indices = @transform_10, window_bounds = array<i64: 64, 64>}, {pipeline_mode = #tpu.pipeline_mode<synchronous>, transform_indices = @transform_11, window_bounds = array<i64: 1, 64>}, {transform_indices = @transform_12, window_bounds = array<i64: 1, 16, 64>}]} {
    %c0 = arith.constant 0 : index
    %c0_0 = arith.constant 0 : index
    %c0_1 = arith.constant 0 : index
    %0 = vector.load %arg1[%c0, %c0_0, %c0_1] : memref<1x16x64xbf16, #tpu.memory_space<vmem>>, vector<1x16x64xbf16>
    %1 = arith.extf %0 : vector<1x16x64xbf16> to vector<1x16x64xf32>
    %2 = vector.shape_cast %1 : vector<1x16x64xf32> to vector<16x64xf32>
    %c0_2 = arith.constant 0 : index
    %c0_3 = arith.constant 0 : index
    %3 = vector.load %arg2[%c0_2, %c0_3] : memref<1x64xf32, #tpu.memory_space<vmem>>, vector<1x64xf32>
    %c0_4 = arith.constant 0 : index
    %c0_5 = arith.constant 0 : index
    %4 = vector.load %arg3[%c0_4, %c0_5] : memref<1x64xf32, #tpu.memory_space<vmem>>, vector<1x64xf32>
    %cst = arith.constant dense<0.000000e+00> : vector<16xf32>
    %5 = vector.multi_reduction <add>, %2, %cst [1] : vector<16x64xf32> to vector<16xf32>
    %6 = vector.shape_cast %5 : vector<16xf32> to vector<16x1xf32>
    %cst_6 = arith.constant 6.400000e+01 : f32
    %7 = vector.broadcast %cst_6 : f32 to vector<16x1xf32>
    %8 = arith.divf %6, %7 : vector<16x1xf32>
    %9 = vector.broadcast %8 : vector<16x1xf32> to vector<16x64xf32>
    %10 = arith.subf %2, %9 : vector<16x64xf32>
    %11 = arith.mulf %10, %10 : vector<16x64xf32>
    %cst_7 = arith.constant dense<0.000000e+00> : vector<16xf32>
    %12 = vector.multi_reduction <add>, %11, %cst_7 [1] : vector<16x64xf32> to vector<16xf32>
    %13 = vector.shape_cast %12 : vector<16xf32> to vector<16x1xf32>
    %cst_8 = arith.constant 6.400000e+01 : f32
    %14 = vector.broadcast %cst_8 : f32 to vector<16x1xf32>
    %15 = arith.divf %13, %14 : vector<16x1xf32>
    %cst_9 = arith.constant 9.99999974E-6 : f32
    %16 = vector.broadcast %cst_9 : f32 to vector<16x1xf32>
    %17 = arith.addf %15, %16 : vector<16x1xf32>
    %18 = math.rsqrt %17 : vector<16x1xf32>
    %19 = vector.broadcast %18 : vector<16x1xf32> to vector<16x64xf32>
    %20 = arith.mulf %10, %19 : vector<16x64xf32>
    %21 = vector.broadcast %3 : vector<1x64xf32> to vector<16x64xf32>
    %22 = arith.mulf %20, %21 : vector<16x64xf32>
    %23 = vector.broadcast %4 : vector<1x64xf32> to vector<16x64xf32>
    %24 = arith.addf %22, %23 : vector<16x64xf32>
    %25 = arith.truncf %24 : vector<16x64xf32> to vector<16x64xbf16>
    %c0_10 = arith.constant 0 : index
    %c0_11 = arith.constant 0 : index
    %26 = vector.load %arg4[%c0_10, %c0_11] : memref<64x64xbf16, #tpu.memory_space<vmem>>, vector<64x64xbf16>
    %cst_12 = arith.constant dense<0.000000e+00> : vector<16x64xf32>
    %27 = tpu.matmul %25, %26, %cst_12 {dimension_numbers = #tpu.dot_dimension_numbers<[1], [0], [0], [1], [0, 0, 1, 1], [], []>} : vector<16x64xbf16>, vector<64x64xbf16>, vector<16x64xf32> -> vector<16x64xf32>
    %c0_13 = arith.constant 0 : index
    %c0_14 = arith.constant 0 : index
    %28 = vector.load %arg7[%c0_13, %c0_14] : memref<1x64xbf16, #tpu.memory_space<vmem>>, vector<1x64xbf16>
    %29 = arith.extf %28 : vector<1x64xbf16> to vector<1x64xf32>
    %30 = vector.broadcast %29 : vector<1x64xf32> to vector<16x64xf32>
    %31 = arith.addf %27, %30 : vector<16x64xf32>
    %32 = vector.shape_cast %31 : vector<16x64xf32> to vector<1x16x64xf32>
    %33 = tpu.transpose %32, [0, 2, 1] : vector<1x16x64xf32> -> vector<1x64x16xf32>
    %34 = vector.shape_cast %33 : vector<1x64x16xf32> to vector<1x4x16x16xf32>
    %35 = tpu.transpose %34, [0, 1, 3, 2] : vector<1x4x16x16xf32> -> vector<1x4x16x16xf32>
    %36 = vector.shape_cast %35 : vector<1x4x16x16xf32> to vector<4x16x16xf32>
    %37 = arith.truncf %36 : vector<4x16x16xf32> to vector<4x16x16xbf16>
    %c0_15 = arith.constant 0 : index
    %c0_16 = arith.constant 0 : index
    %38 = vector.load %arg5[%c0_15, %c0_16] : memref<64x64xbf16, #tpu.memory_space<vmem>>, vector<64x64xbf16>
    %cst_17 = arith.constant dense<0.000000e+00> : vector<16x64xf32>
    %39 = tpu.matmul %25, %38, %cst_17 {dimension_numbers = #tpu.dot_dimension_numbers<[1], [0], [0], [1], [0, 0, 1, 1], [], []>} : vector<16x64xbf16>, vector<64x64xbf16>, vector<16x64xf32> -> vector<16x64xf32>
    %c0_18 = arith.constant 0 : index
    %c0_19 = arith.constant 0 : index
    %40 = vector.load %arg8[%c0_18, %c0_19] : memref<1x64xbf16, #tpu.memory_space<vmem>>, vector<1x64xbf16>
    %41 = arith.extf %40 : vector<1x64xbf16> to vector<1x64xf32>
    %42 = vector.broadcast %41 : vector<1x64xf32> to vector<16x64xf32>
    %43 = arith.addf %39, %42 : vector<16x64xf32>
    %44 = vector.shape_cast %43 : vector<16x64xf32> to vector<1x16x64xf32>
    %45 = tpu.transpose %44, [0, 2, 1] : vector<1x16x64xf32> -> vector<1x64x16xf32>
    %46 = vector.shape_cast %45 : vector<1x64x16xf32> to vector<1x4x16x16xf32>
    %47 = tpu.transpose %46, [0, 1, 3, 2] : vector<1x4x16x16xf32> -> vector<1x4x16x16xf32>
    %48 = vector.shape_cast %47 : vector<1x4x16x16xf32> to vector<4x16x16xf32>
    %49 = arith.truncf %48 : vector<4x16x16xf32> to vector<4x16x16xbf16>
    %c0_20 = arith.constant 0 : index
    %c0_21 = arith.constant 0 : index
    %50 = vector.load %arg6[%c0_20, %c0_21] : memref<64x64xbf16, #tpu.memory_space<vmem>>, vector<64x64xbf16>
    %cst_22 = arith.constant dense<0.000000e+00> : vector<16x64xf32>
    %51 = tpu.matmul %25, %50, %cst_22 {dimension_numbers = #tpu.dot_dimension_numbers<[1], [0], [0], [1], [0, 0, 1, 1], [], []>} : vector<16x64xbf16>, vector<64x64xbf16>, vector<16x64xf32> -> vector<16x64xf32>
    %c0_23 = arith.constant 0 : index
    %c0_24 = arith.constant 0 : index
    %52 = vector.load %arg9[%c0_23, %c0_24] : memref<1x64xbf16, #tpu.memory_space<vmem>>, vector<1x64xbf16>
    %53 = arith.extf %52 : vector<1x64xbf16> to vector<1x64xf32>
    %54 = vector.broadcast %53 : vector<1x64xf32> to vector<16x64xf32>
    %55 = arith.addf %51, %54 : vector<16x64xf32>
    %56 = vector.shape_cast %55 : vector<16x64xf32> to vector<1x16x64xf32>
    %57 = tpu.transpose %56, [0, 2, 1] : vector<1x16x64xf32> -> vector<1x64x16xf32>
    %58 = vector.shape_cast %57 : vector<1x64x16xf32> to vector<1x4x16x16xf32>
    %59 = tpu.transpose %58, [0, 1, 3, 2] : vector<1x4x16x16xf32> -> vector<1x4x16x16xf32>
    %60 = vector.shape_cast %59 : vector<1x4x16x16xf32> to vector<4x16x16xf32>
    %61 = arith.truncf %60 : vector<4x16x16xf32> to vector<4x16x16xbf16>
    "tpu.trace_start"() <{level = 10 : i32, message = "bnd,bmd->bnm"}> : () -> ()
    %cst_25 = arith.constant dense<0.000000e+00> : vector<4x16x16xf32>
    %62 = tpu.matmul %37, %49, %cst_25 {dimension_numbers = #tpu.dot_dimension_numbers<[2], [2], [1], [1], [0, 0, 0, 1, 1, 1], [0], [0]>} : vector<4x16x16xbf16>, vector<4x16x16xbf16>, vector<4x16x16xf32> -> vector<4x16x16xf32>
    "tpu.trace_stop"() : () -> ()
    %63 = vector.shape_cast %62 : vector<4x16x16xf32> to vector<1x4x16x16xf32>
    %c0_26 = arith.constant 0 : index
    %c0_27 = arith.constant 0 : index
    %c0_28 = arith.constant 0 : index
    %64 = vector.load %arg10[%c0_26, %c0_27, %c0_28] : memref<4x16x16xf32, #tpu.memory_space<vmem>>, vector<4x16x16xf32>
    %65 = vector.shape_cast %64 : vector<4x16x16xf32> to vector<1x4x16x16xf32>
    %66 = arith.addf %63, %65 : vector<1x4x16x16xf32>
    %cst_29 = arith.constant dense<0xFF800000> : vector<1x4x16xf32>
    %67 = vector.multi_reduction <maximumf>, %66, %cst_29 [3] : vector<1x4x16x16xf32> to vector<1x4x16xf32>
    %68 = vector.shape_cast %67 : vector<1x4x16xf32> to vector<1x4x16x1xf32>
    %69 = vector.broadcast %68 : vector<1x4x16x1xf32> to vector<1x4x16x16xf32>
    %70 = arith.subf %66, %69 : vector<1x4x16x16xf32>
    %71 = math.exp %70 : vector<1x4x16x16xf32>
    %cst_30 = arith.constant dense<0.000000e+00> : vector<1x4x16xf32>
    %72 = vector.multi_reduction <add>, %71, %cst_30 [3] : vector<1x4x16x16xf32> to vector<1x4x16xf32>
    %73 = vector.shape_cast %72 : vector<1x4x16xf32> to vector<1x4x16x1xf32>
    %74 = vector.broadcast %73 : vector<1x4x16x1xf32> to vector<1x4x16x16xf32>
    %75 = arith.divf %71, %74 : vector<1x4x16x16xf32>
    %76 = vector.shape_cast %75 : vector<1x4x16x16xf32> to vector<4x16x16xf32>
    %77 = arith.truncf %76 : vector<4x16x16xf32> to vector<4x16x16xbf16>
    "tpu.trace_start"() <{level = 10 : i32, message = "bnm,bmd->bnd"}> : () -> ()
    %cst_31 = arith.constant dense<0.000000e+00> : vector<4x16x16xf32>
    %78 = tpu.matmul %77, %61, %cst_31 {dimension_numbers = #tpu.dot_dimension_numbers<[2], [1], [1], [2], [0, 0, 0, 1, 1, 2], [0], [0]>} : vector<4x16x16xbf16>, vector<4x16x16xbf16>, vector<4x16x16xf32> -> vector<4x16x16xf32>
    "tpu.trace_stop"() : () -> ()
    %79 = vector.shape_cast %78 : vector<4x16x16xf32> to vector<1x4x16x16xf32>
    %80 = tpu.transpose %79, [0, 1, 3, 2] : vector<1x4x16x16xf32> -> vector<1x4x16x16xf32>
    %81 = vector.shape_cast %80 : vector<1x4x16x16xf32> to vector<1x64x16xf32>
    %82 = tpu.transpose %81, [0, 2, 1] : vector<1x64x16xf32> -> vector<1x16x64xf32>
    %83 = vector.shape_cast %82 : vector<1x16x64xf32> to vector<16x64xf32>
    %84 = arith.truncf %83 : vector<16x64xf32> to vector<16x64xbf16>
    %c0_32 = arith.constant 0 : index
    %c0_33 = arith.constant 0 : index
    %85 = vector.load %arg11[%c0_32, %c0_33] : memref<64x64xbf16, #tpu.memory_space<vmem>>, vector<64x64xbf16>
    %cst_34 = arith.constant dense<0.000000e+00> : vector<16x64xf32>
    %86 = tpu.matmul %84, %85, %cst_34 {dimension_numbers = #tpu.dot_dimension_numbers<[1], [0], [0], [1], [0, 0, 1, 1], [], []>} : vector<16x64xbf16>, vector<64x64xbf16>, vector<16x64xf32> -> vector<16x64xf32>
    %c0_35 = arith.constant 0 : index
    %c0_36 = arith.constant 0 : index
    %87 = vector.load %arg12[%c0_35, %c0_36] : memref<1x64xbf16, #tpu.memory_space<vmem>>, vector<1x64xbf16>
    %88 = arith.extf %87 : vector<1x64xbf16> to vector<1x64xf32>
    %89 = vector.broadcast %88 : vector<1x64xf32> to vector<16x64xf32>
    %90 = arith.addf %86, %89 : vector<16x64xf32>
    %91 = vector.shape_cast %90 : vector<16x64xf32> to vector<1x16x64xf32>
    %92 = arith.addf %1, %91 : vector<1x16x64xf32>
    %93 = arith.truncf %92 : vector<1x16x64xf32> to vector<1x16x64xbf16>
    %c0_37 = arith.constant 0 : index
    %c0_38 = arith.constant 0 : index
    %c0_39 = arith.constant 0 : index
    %94 = vector.load %arg13[%c0_37, %c0_38, %c0_39] : memref<1x16x64xbf16, #tpu.memory_space<vmem>>, vector<1x16x64xbf16>
    tpu.vector_store %arg13[%c0_37, %c0_38, %c0_39], %93 {strides = array<i32>} : memref<1x16x64xbf16, #tpu.memory_space<vmem>>, vector<1x16x64xbf16>,
    return
  }
  func.func @transform_0(%arg0: i32) -> (i32, i32, i32) {
    %c0_i32 = arith.constant 0 : i32
    %c0_i32_0 = arith.constant 0 : i32
    %c0_i32_1 = arith.constant 0 : i32
    return %arg0, %c0_i32, %c0_i32_0 : i32, i32, i32
  }
  func.func @transform_1(%arg0: i32) -> (i32, i32) {
    %c0_i32 = arith.constant 0 : i32
    %c0_i32_0 = arith.constant 0 : i32
    %c0_i32_1 = arith.constant 0 : i32
    return %c0_i32, %c0_i32_0 : i32, i32
  }
  func.func @transform_2(%arg0: i32) -> (i32, i32) {
    %c0_i32 = arith.constant 0 : i32
    %c0_i32_0 = arith.constant 0 : i32
    %c0_i32_1 = arith.constant 0 : i32
    return %c0_i32, %c0_i32_0 : i32, i32
  }
  func.func @transform_3(%arg0: i32) -> (i32, i32) {
    %c0_i32 = arith.constant 0 : i32
    %c0_i32_0 = arith.constant 0 : i32
    %c0_i32_1 = arith.constant 0 : i32
    return %c0_i32, %c0_i32_0 : i32, i32
  }
  func.func @transform_4(%arg0: i32) -> (i32, i32) {
    %c0_i32 = arith.constant 0 : i32
    %c0_i32_0 = arith.constant 0 : i32
    %c0_i32_1 = arith.constant 0 : i32
    return %c0_i32, %c0_i32_0 : i32, i32
  }
  func.func @transform_5(%arg0: i32) -> (i32, i32) {
    %c0_i32 = arith.constant 0 : i32
    %c0_i32_0 = arith.constant 0 : i32
    %c0_i32_1 = arith.constant 0 : i32
    return %c0_i32, %c0_i32_0 : i32, i32
  }
  func.func @transform_6(%arg0: i32) -> (i32, i32) {
    %c0_i32 = arith.constant 0 : i32
    %c0_i32_0 = arith.constant 0 : i32
    %c0_i32_1 = arith.constant 0 : i32
    return %c0_i32, %c0_i32_0 : i32, i32
  }
  func.func @transform_7(%arg0: i32) -> (i32, i32) {
    %c0_i32 = arith.constant 0 : i32
    %c0_i32_0 = arith.constant 0 : i32
    %c0_i32_1 = arith.constant 0 : i32
    return %c0_i32, %c0_i32_0 : i32, i32
  }
  func.func @transform_8(%arg0: i32) -> (i32, i32) {
    %c0_i32 = arith.constant 0 : i32
    %c0_i32_0 = arith.constant 0 : i32
    %c0_i32_1 = arith.constant 0 : i32
    return %c0_i32, %c0_i32_0 : i32, i32
  }
  func.func @transform_9(%arg0: i32) -> (i32, i32, i32) {
    %c0_i32 = arith.constant 0 : i32
    %c0_i32_0 = arith.constant 0 : i32
    %c0_i32_1 = arith.constant 0 : i32
    %c0_i32_2 = arith.constant 0 : i32
    return %c0_i32, %c0_i32_0, %c0_i32_1 : i32, i32, i32
  }
  func.func @transform_10(%arg0: i32) -> (i32, i32) {
    %c0_i32 = arith.constant 0 : i32
    %c0_i32_0 = arith.constant 0 : i32
    %c0_i32_1 = arith.constant 0 : i32
    return %c0_i32, %c0_i32_0 : i32, i32
  }
  func.func @transform_11(%arg0: i32) -> (i32, i32) {
    %c0_i32 = arith.constant 0 : i32
    %c0_i32_0 = arith.constant 0 : i32
    %c0_i32_1 = arith.constant 0 : i32
    return %c0_i32, %c0_i32_0 : i32, i32
  }
  func.func @transform_12(%arg0: i32) -> (i32, i32, i32) {
    %c0_i32 = arith.constant 0 : i32
    %c0_i32_0 = arith.constant 0 : i32
    %c0_i32_1 = arith.constant 0 : i32
    return %arg0, %c0_i32, %c0_i32_0 : i32, i32, i32
  }
}

module attributes {stable_mosaic.version = 11 : i64} {
  func.func @_fused_matmul_kernel(%arg0: i32, %arg1: memref<16x128xbf16, #tpu.memory_space<vmem>>, %arg2: memref<1x128xf32, #tpu.memory_space<vmem>>, %arg3: memref<1x128xf32, #tpu.memory_space<vmem>>, %arg4: memref<128x64xbf16, #tpu.memory_space<vmem>>, %arg5: memref<16x64xbf16, #tpu.memory_space<vmem>>) attributes {dimension_semantics = [#tpu.dimension_semantics<parallel>], iteration_bounds = array<i64: 2>, scalar_prefetch = 0 : i64, scratch_operands = 0 : i64, tpu.core_type = #tpu.core_type<tc>, window_params = [{transform_indices = @transform_0, window_bounds = array<i64: 16, 128>}, {pipeline_mode = #tpu.pipeline_mode<synchronous>, transform_indices = @transform_1, window_bounds = array<i64: 1, 128>}, {pipeline_mode = #tpu.pipeline_mode<synchronous>, transform_indices = @transform_2, window_bounds = array<i64: 1, 128>}, {pipeline_mode = #tpu.pipeline_mode<synchronous>, transform_indices = @transform_3, window_bounds = array<i64: 128, 64>}, {transform_indices = @transform_4, window_bounds = array<i64: 16, 64>}]} {
    %c0 = arith.constant 0 : index
    %c0_0 = arith.constant 0 : index
    %0 = vector.load %arg1[%c0, %c0_0] : memref<16x128xbf16, #tpu.memory_space<vmem>>, vector<16x128xbf16>
    %1 = arith.extf %0 : vector<16x128xbf16> to vector<16x128xf32>
    %c0_1 = arith.constant 0 : index
    %c0_2 = arith.constant 0 : index
    %2 = vector.load %arg2[%c0_1, %c0_2] : memref<1x128xf32, #tpu.memory_space<vmem>>, vector<1x128xf32>
    %c0_3 = arith.constant 0 : index
    %c0_4 = arith.constant 0 : index
    %3 = vector.load %arg3[%c0_3, %c0_4] : memref<1x128xf32, #tpu.memory_space<vmem>>, vector<1x128xf32>
    %cst = arith.constant dense<0.000000e+00> : vector<16xf32>
    %4 = vector.multi_reduction <add>, %1, %cst [1] : vector<16x128xf32> to vector<16xf32>
    %5 = vector.shape_cast %4 : vector<16xf32> to vector<16x1xf32>
    %cst_5 = arith.constant 1.280000e+02 : f32
    %6 = vector.broadcast %cst_5 : f32 to vector<16x1xf32>
    %7 = arith.divf %5, %6 : vector<16x1xf32>
    %8 = vector.broadcast %7 : vector<16x1xf32> to vector<16x128xf32>
    %9 = arith.subf %1, %8 : vector<16x128xf32>
    %10 = arith.mulf %9, %9 : vector<16x128xf32>
    %cst_6 = arith.constant dense<0.000000e+00> : vector<16xf32>
    %11 = vector.multi_reduction <add>, %10, %cst_6 [1] : vector<16x128xf32> to vector<16xf32>
    %12 = vector.shape_cast %11 : vector<16xf32> to vector<16x1xf32>
    %cst_7 = arith.constant 1.280000e+02 : f32
    %13 = vector.broadcast %cst_7 : f32 to vector<16x1xf32>
    %14 = arith.divf %12, %13 : vector<16x1xf32>
    %cst_8 = arith.constant 9.99999974E-6 : f32
    %15 = vector.broadcast %cst_8 : f32 to vector<16x1xf32>
    %16 = arith.addf %14, %15 : vector<16x1xf32>
    %17 = math.rsqrt %16 : vector<16x1xf32>
    %18 = vector.broadcast %17 : vector<16x1xf32> to vector<16x128xf32>
    %19 = arith.mulf %9, %18 : vector<16x128xf32>
    %20 = vector.broadcast %2 : vector<1x128xf32> to vector<16x128xf32>
    %21 = arith.mulf %19, %20 : vector<16x128xf32>
    %22 = vector.broadcast %3 : vector<1x128xf32> to vector<16x128xf32>
    %23 = arith.addf %21, %22 : vector<16x128xf32>
    %24 = arith.truncf %23 : vector<16x128xf32> to vector<16x128xbf16>
    %c0_9 = arith.constant 0 : index
    %c0_10 = arith.constant 0 : index
    %25 = vector.load %arg4[%c0_9, %c0_10] : memref<128x64xbf16, #tpu.memory_space<vmem>>, vector<128x64xbf16>
    %cst_11 = arith.constant dense<0.000000e+00> : vector<16x64xf32>
    %26 = tpu.matmul %24, %25, %cst_11 {dimension_numbers = #tpu.dot_dimension_numbers<[1], [0], [0], [1], [0, 0, 1, 1], [], []>} : vector<16x128xbf16>, vector<128x64xbf16>, vector<16x64xf32> -> vector<16x64xf32>
    %27 = arith.truncf %26 : vector<16x64xf32> to vector<16x64xbf16>
    %c0_12 = arith.constant 0 : index
    %c0_13 = arith.constant 0 : index
    %28 = vector.load %arg5[%c0_12, %c0_13] : memref<16x64xbf16, #tpu.memory_space<vmem>>, vector<16x64xbf16>
    tpu.vector_store %arg5[%c0_12, %c0_13], %27 {strides = array<i32>} : memref<16x64xbf16, #tpu.memory_space<vmem>>, vector<16x64xbf16>,
    return
  }
  func.func @transform_0(%arg0: i32) -> (i32, i32) {
    %c0_i32 = arith.constant 0 : i32
    %c0_i32_0 = arith.constant 0 : i32
    return %arg0, %c0_i32 : i32, i32
  }
  func.func @transform_1(%arg0: i32) -> (i32, i32) {
    %c0_i32 = arith.constant 0 : i32
    %c0_i32_0 = arith.constant 0 : i32
    %c0_i32_1 = arith.constant 0 : i32
    return %c0_i32, %c0_i32_0 : i32, i32
  }
  func.func @transform_2(%arg0: i32) -> (i32, i32) {
    %c0_i32 = arith.constant 0 : i32
    %c0_i32_0 = arith.constant 0 : i32
    %c0_i32_1 = arith.constant 0 : i32
    return %c0_i32, %c0_i32_0 : i32, i32
  }
  func.func @transform_3(%arg0: i32) -> (i32, i32) {
    %c0_i32 = arith.constant 0 : i32
    %c0_i32_0 = arith.constant 0 : i32
    %c0_i32_1 = arith.constant 0 : i32
    return %c0_i32, %c0_i32_0 : i32, i32
  }
  func.func @transform_4(%arg0: i32) -> (i32, i32) {
    %c0_i32 = arith.constant 0 : i32
    %c0_i32_0 = arith.constant 0 : i32
    return %arg0, %c0_i32 : i32, i32
  }
}

module attributes {stable_mosaic.version = 11 : i64} {
  func.func @_ln_mlp_kernel(%arg0: i32, %arg1: memref<16x64xbf16, #tpu.memory_space<vmem>>, %arg2: memref<1x64xf32, #tpu.memory_space<vmem>>, %arg3: memref<1x64xf32, #tpu.memory_space<vmem>>, %arg4: memref<64x256xbf16, #tpu.memory_space<vmem>>, %arg5: memref<1x256xbf16, #tpu.memory_space<vmem>>, %arg6: memref<256x64xbf16, #tpu.memory_space<vmem>>, %arg7: memref<1x64xbf16, #tpu.memory_space<vmem>>, %arg8: memref<16x64xbf16, #tpu.memory_space<vmem>>) attributes {dimension_semantics = [#tpu.dimension_semantics<parallel>], iteration_bounds = array<i64: 2>, scalar_prefetch = 0 : i64, scratch_operands = 0 : i64, tpu.core_type = #tpu.core_type<tc>, window_params = [{transform_indices = @transform_0, window_bounds = array<i64: 16, 64>}, {pipeline_mode = #tpu.pipeline_mode<synchronous>, transform_indices = @transform_1, window_bounds = array<i64: 1, 64>}, {pipeline_mode = #tpu.pipeline_mode<synchronous>, transform_indices = @transform_2, window_bounds = array<i64: 1, 64>}, {pipeline_mode = #tpu.pipeline_mode<synchronous>, transform_indices = @transform_3, window_bounds = array<i64: 64, 256>}, {pipeline_mode = #tpu.pipeline_mode<synchronous>, transform_indices = @transform_4, window_bounds = array<i64: 1, 256>}, {pipeline_mode = #tpu.pipeline_mode<synchronous>, transform_indices = @transform_5, window_bounds = array<i64: 256, 64>}, {pipeline_mode = #tpu.pipeline_mode<synchronous>, transform_indices = @transform_6, window_bounds = array<i64: 1, 64>}, {transform_indices = @transform_7, window_bounds = array<i64: 16, 64>}]} {
    %c0 = arith.constant 0 : index
    %c0_0 = arith.constant 0 : index
    %0 = vector.load %arg1[%c0, %c0_0] : memref<16x64xbf16, #tpu.memory_space<vmem>>, vector<16x64xbf16>
    %1 = arith.extf %0 : vector<16x64xbf16> to vector<16x64xf32>
    %c0_1 = arith.constant 0 : index
    %c0_2 = arith.constant 0 : index
    %2 = vector.load %arg2[%c0_1, %c0_2] : memref<1x64xf32, #tpu.memory_space<vmem>>, vector<1x64xf32>
    %c0_3 = arith.constant 0 : index
    %c0_4 = arith.constant 0 : index
    %3 = vector.load %arg3[%c0_3, %c0_4] : memref<1x64xf32, #tpu.memory_space<vmem>>, vector<1x64xf32>
    %cst = arith.constant dense<0.000000e+00> : vector<16xf32>
    %4 = vector.multi_reduction <add>, %1, %cst [1] : vector<16x64xf32> to vector<16xf32>
    %5 = vector.shape_cast %4 : vector<16xf32> to vector<16x1xf32>
    %cst_5 = arith.constant 6.400000e+01 : f32
    %6 = vector.broadcast %cst_5 : f32 to vector<16x1xf32>
    %7 = arith.divf %5, %6 : vector<16x1xf32>
    %8 = vector.broadcast %7 : vector<16x1xf32> to vector<16x64xf32>
    %9 = arith.subf %1, %8 : vector<16x64xf32>
    %10 = arith.mulf %9, %9 : vector<16x64xf32>
    %cst_6 = arith.constant dense<0.000000e+00> : vector<16xf32>
    %11 = vector.multi_reduction <add>, %10, %cst_6 [1] : vector<16x64xf32> to vector<16xf32>
    %12 = vector.shape_cast %11 : vector<16xf32> to vector<16x1xf32>
    %cst_7 = arith.constant 6.400000e+01 : f32
    %13 = vector.broadcast %cst_7 : f32 to vector<16x1xf32>
    %14 = arith.divf %12, %13 : vector<16x1xf32>
    %cst_8 = arith.constant 9.99999974E-6 : f32
    %15 = vector.broadcast %cst_8 : f32 to vector<16x1xf32>
    %16 = arith.addf %14, %15 : vector<16x1xf32>
    %17 = math.rsqrt %16 : vector<16x1xf32>
    %18 = vector.broadcast %17 : vector<16x1xf32> to vector<16x64xf32>
    %19 = arith.mulf %9, %18 : vector<16x64xf32>
    %20 = vector.broadcast %2 : vector<1x64xf32> to vector<16x64xf32>
    %21 = arith.mulf %19, %20 : vector<16x64xf32>
    %22 = vector.broadcast %3 : vector<1x64xf32> to vector<16x64xf32>
    %23 = arith.addf %21, %22 : vector<16x64xf32>
    %24 = arith.truncf %23 : vector<16x64xf32> to vector<16x64xbf16>
    %c0_9 = arith.constant 0 : index
    %c0_10 = arith.constant 0 : index
    %25 = vector.load %arg4[%c0_9, %c0_10] : memref<64x256xbf16, #tpu.memory_space<vmem>>, vector<64x256xbf16>
    %cst_11 = arith.constant dense<0.000000e+00> : vector<16x256xf32>
    %26 = tpu.matmul %24, %25, %cst_11 {dimension_numbers = #tpu.dot_dimension_numbers<[1], [0], [0], [1], [0, 0, 1, 1], [], []>} : vector<16x64xbf16>, vector<64x256xbf16>, vector<16x256xf32> -> vector<16x256xf32>
    %c0_12 = arith.constant 0 : index
    %c0_13 = arith.constant 0 : index
    %27 = vector.load %arg5[%c0_12, %c0_13] : memref<1x256xbf16, #tpu.memory_space<vmem>>, vector<1x256xbf16>
    %28 = arith.extf %27 : vector<1x256xbf16> to vector<1x256xf32>
    %29 = vector.broadcast %28 : vector<1x256xf32> to vector<16x256xf32>
    %30 = arith.addf %26, %29 : vector<16x256xf32>
    %cst_14 = arith.constant 5.000000e-01 : f32
    %31 = vector.broadcast %cst_14 : f32 to vector<16x256xf32>
    %32 = arith.mulf %31, %30 : vector<16x256xf32>
    %cst_15 = arith.constant 4.471500e-02 : f32
    %33 = vector.broadcast %cst_15 : f32 to vector<16x256xf32>
    %34 = arith.mulf %33, %30 : vector<16x256xf32>
    %35 = arith.mulf %34, %30 : vector<16x256xf32>
    %36 = arith.mulf %35, %30 : vector<16x256xf32>
    %37 = arith.addf %30, %36 : vector<16x256xf32>
    %cst_16 = arith.constant 0.797884583 : f32
    %38 = vector.broadcast %cst_16 : f32 to vector<16x256xf32>
    %39 = arith.mulf %38, %37 : vector<16x256xf32>
    %40 = math.tanh %39 : vector<16x256xf32>
    %cst_17 = arith.constant 1.000000e+00 : f32
    %41 = vector.broadcast %cst_17 : f32 to vector<16x256xf32>
    %42 = arith.addf %41, %40 : vector<16x256xf32>
    %43 = arith.mulf %32, %42 : vector<16x256xf32>
    %44 = arith.truncf %43 : vector<16x256xf32> to vector<16x256xbf16>
    %c0_18 = arith.constant 0 : index
    %c0_19 = arith.constant 0 : index
    %45 = vector.load %arg6[%c0_18, %c0_19] : memref<256x64xbf16, #tpu.memory_space<vmem>>, vector<256x64xbf16>
    %cst_20 = arith.constant dense<0.000000e+00> : vector<16x64xf32>
    %46 = tpu.matmul %44, %45, %cst_20 {dimension_numbers = #tpu.dot_dimension_numbers<[1], [0], [0], [1], [0, 0, 1, 1], [], []>} : vector<16x256xbf16>, vector<256x64xbf16>, vector<16x64xf32> -> vector<16x64xf32>
    %c0_21 = arith.constant 0 : index
    %c0_22 = arith.constant 0 : index
    %47 = vector.load %arg7[%c0_21, %c0_22] : memref<1x64xbf16, #tpu.memory_space<vmem>>, vector<1x64xbf16>
    %48 = arith.extf %47 : vector<1x64xbf16> to vector<1x64xf32>
    %49 = vector.broadcast %48 : vector<1x64xf32> to vector<16x64xf32>
    %50 = arith.addf %46, %49 : vector<16x64xf32>
    %51 = arith.addf %1, %50 : vector<16x64xf32>
    %52 = arith.truncf %51 : vector<16x64xf32> to vector<16x64xbf16>
    %c0_23 = arith.constant 0 : index
    %c0_24 = arith.constant 0 : index
    %53 = vector.load %arg8[%c0_23, %c0_24] : memref<16x64xbf16, #tpu.memory_space<vmem>>, vector<16x64xbf16>
    tpu.vector_store %arg8[%c0_23, %c0_24], %52 {strides = array<i32>} : memref<16x64xbf16, #tpu.memory_space<vmem>>, vector<16x64xbf16>,
    return
  }
  func.func @transform_0(%arg0: i32) -> (i32, i32) {
    %c0_i32 = arith.constant 0 : i32
    %c0_i32_0 = arith.constant 0 : i32
    return %arg0, %c0_i32 : i32, i32
  }
  func.func @transform_1(%arg0: i32) -> (i32, i32) {
    %c0_i32 = arith.constant 0 : i32
    %c0_i32_0 = arith.constant 0 : i32
    %c0_i32_1 = arith.constant 0 : i32
    return %c0_i32, %c0_i32_0 : i32, i32
  }
  func.func @transform_2(%arg0: i32) -> (i32, i32) {
    %c0_i32 = arith.constant 0 : i32
    %c0_i32_0 = arith.constant 0 : i32
    %c0_i32_1 = arith.constant 0 : i32
    return %c0_i32, %c0_i32_0 : i32, i32
  }
  func.func @transform_3(%arg0: i32) -> (i32, i32) {
    %c0_i32 = arith.constant 0 : i32
    %c0_i32_0 = arith.constant 0 : i32
    %c0_i32_1 = arith.constant 0 : i32
    return %c0_i32, %c0_i32_0 : i32, i32
  }
  func.func @transform_4(%arg0: i32) -> (i32, i32) {
    %c0_i32 = arith.constant 0 : i32
    %c0_i32_0 = arith.constant 0 : i32
    %c0_i32_1 = arith.constant 0 : i32
    return %c0_i32, %c0_i32_0 : i32, i32
  }
  func.func @transform_5(%arg0: i32) -> (i32, i32) {
    %c0_i32 = arith.constant 0 : i32
    %c0_i32_0 = arith.constant 0 : i32
    %c0_i32_1 = arith.constant 0 : i32
    return %c0_i32, %c0_i32_0 : i32, i32
  }
  func.func @transform_6(%arg0: i32) -> (i32, i32) {
    %c0_i32 = arith.constant 0 : i32
    %c0_i32_0 = arith.constant 0 : i32
    %c0_i32_1 = arith.constant 0 : i32
    return %c0_i32, %c0_i32_0 : i32, i32
  }
  func.func @transform_7(%arg0: i32) -> (i32, i32) {
    %c0_i32 = arith.constant 0 : i32
    %c0_i32_0 = arith.constant 0 : i32
    return %arg0, %c0_i32 : i32, i32
  }
}

</mosaic_0001>

<bundles_post_ra>
// kernel: swin_forward.6
= control target key start
LH: loop header
LB: loop body
LE: loop exit
PB: predicated region body
PF: predicated region fallthrough
CT: control target
= control target key end

     0   :  { %s710_s18 = smov 0   ;;  %s827_s0 = inlined_call_operand.vmem [shape: f32[128,48], index: 0, kind: input, shape index: {}]   ;;  %s828_s1 = inlined_call_operand.vmem [shape: bf16[48,32], index: 1, kind: input, shape index: {}]   ;;  %s829_s2 = inlined_call_operand.vmem [shape: bf16[1,32], index: 2, kind: input, shape index: {}]   ;;  %s830_s3 = inlined_call_operand.vmem [shape: f32[1,32], index: 3, kind: input, shape index: {}]   ;;  %s831_s4 = inlined_call_operand.vmem [shape: f32[1,32], index: 4, kind: input, shape index: {}]   ;;  %s832_s5 = inlined_call_operand.vmem [shape: bf16[128,32], index: 5, kind: output, shape index: {}]  }
   0x1 LB: > { %s582_s19 = sadd.s32 4294967295, %s678_s18   ;;  %p586_p0 = scmp.ge.s32.totalorder %s678_s18, 1  ;;  %s678_s18 = sphi %s710_s18, %s15_s18  }
   0x2   : > { %p188_p1 = scmp.lt.s32.totalorder %s678_s18, 3 }
   0x4   : > { %p189_p2 = pnand %p586_p0, %p188_p1 }
   0x5   : > { %s587_s22 = sshll.u32 (!%p189_p2), %s582_s19, 3 }
   0x6   : > { %192 = sbr.rel (%p189_p2) target bundleno = 548 (0x224), region = 40  ;;  %p217_p3 = scmp.lt.s32.totalorder (!%p189_p2), %s587_s22, 15 }
   0xb   : > { %v653_v0 = vld [vmem:[%s828_s1 + $0x10] sm:$0xff]   ;;  %v654_v1 = vld [vmem:[%s828_s1 + $0x8] sm:$0xff]   ;;  %s834_s22 = smov (!%p217_p3, %s587_s22), 15  ;;  %v655_v2 = vld [vmem:[%s828_s1] sm:$0xff]   ;;  %vm271_vm0 = vcmask 392192   ;;  %v249_v15 = vlaneseq  ;;  %vm351_vm1 = vcmask 261120  }
   0xc   : > { %625 = vmatprep.subr.bf16.mxu0 %v653_v0  ;;  %639 = vmatprep.subr.bf16.mxu1 %v653_v0  ;;  %s588_s27 = sshll.u32 %s834_s22, 3  ;;  %v247_v17 = vld [vmem:[%s829_s2] sm:$0x1]  ;;  %s590_s12 = sshll.u32 %s834_s22, 2  ;;  %vm517_vm2 = vcmask 257024  }
   0xd   : > { %626 = vmatpush3.bf16.msra.mxu0 %v653_v0  ;;  %642 = vmatpush3.bf16.msra.mxu1 %v653_v0  ;;  %s220_s30 = scalar_lea.vmem %s827_s0, %s588_s27  ;;  %v250_v16 = vshrl.u32 %v249_v15, 7  ;;  %v248_v18 = vunpack.c.l.bf16 %v247_v17  ;;  %s800_s15 = scalar_lea.vmem %s832_s5, %s590_s12 }
   0xe   : > { %627 = vmatprep.subr.bf16.mxu0 %v654_v1  ;;  %640 = vmatprep.subr.bf16.mxu1 %v654_v1  ;;  %v229_v3 = vld [vmem:[%s220_s30] sm:$0xff]  ;;  %v230_v4 = vld [vmem:[%s220_s30 + $0x8] sm:$0xff]  ;;  %v231_v8 = vld [vmem:[%s220_s30 + $0x10] sm:$0xff] }
   0xf   : > { %v233_v5 = vld [vmem:[%s220_s30 + $0x20] sm:$0xff]  ;;  %v237_v6 = vpack.c.bf16 %v230_v4, %v229_v3  ;;  %v234_v7 = vld [vmem:[%s220_s30 + $0x28] sm:$0xff]  ;;  %v232_v9 = vld [vmem:[%s220_s30 + $0x18] sm:$0xff]  ;;  %v251_v19 = vsub.s32 0, %v250_v16 }
  0x10   : > { %v239_v10 = vpack.c.bf16 %v234_v7, %v233_v5  ;;  %v235_v11 = vld [vmem:[%s220_s30 + $0x30] sm:$0xff]  ;;  %v236_v12 = vld [vmem:[%s220_s30 + $0x38] sm:$0xff]  ;;  %v238_v13 = vpack.c.bf16 %v232_v9, %v231_v8 }
  0x11   : > { %628 = vmatpush3.bf16.msra.mxu0 %v654_v1  ;;  %643 = vmatpush3.bf16.msra.mxu1 %v654_v1  ;;  %v240_v14 = vpack.c.bf16 %v236_v12, %v235_v11  ;;  %v252_v20 = vrot.slane %v248_v18, %v251_v19 }
  0x12   : > { %629 = vmatprep.subr.bf16.mxu0 %v655_v2  ;;  %641 = vmatprep.subr.bf16.mxu1 %v655_v2 }
  0x13   : > { %631 = vmatprep.mubr.msk.bf16.mxu0 %vm271_vm0, %v237_v6  ;;  %635 = vmatprep.mubr.msk.bf16.mxu1 %vm271_vm0, %v239_v10 }
  0x15   : > { %630 = vmatpush3.bf16.msra.mxu0 %v655_v2  ;;  %644 = vmatpush3.bf16.msra.mxu1 %v655_v2 }
  0x18   : > { %632 = vmatmul.mubr.msk.bf16.vlgmr.msra.gmra.mxu0 %vm271_vm0, %v238_v13  ;;  %636 = vmatmul.mubr.msk.bf16.vlgmr.msra.gmra.mxu1 %vm271_vm0, %v240_v14 }
  0xd8   : > { %v633_v21 = vpop.f32.mrf.mxu0  ;;  %v637_v22 = vpop.f32.mrf.mxu1 }
  0xd9   : > { %v327_v23 = vadd.f32 %v633_v21, %v252_v20  ;;  %v343_v41 = vadd.f32 %v637_v22, %v252_v20 }
  0xda   : > { %v318_v24 = vpop.f32.mrf.mxu0  ;;  %v334_v25 = vpop.f32.mrf.mxu1 }
  0xdb   : > { %v319_v26 = vadd.f32 %v318_v24, %v252_v20  ;;  %v358_v27 = vsel %vm351_vm1, %v327_v23, 0.0  ;;  %v335_v30 = vadd.f32 %v334_v25, %v252_v20  ;;  %v370_v44 = vsel %vm351_vm1, %v343_v41, 0.0 }
  0xdc   : > { %v638_v28 = vpop.f32.mrf.mxu1  ;;  %359 = vadd.xlane.f32.xlu1 %v358_v27  ;;  %v634_v29 = vpop.f32.mrf.mxu0 }
  0xdd   : > { %v330_v31 = vadd.f32 %v634_v29, %v252_v20  ;;  %v352_v32 = vsel %vm351_vm1, %v319_v26, 0.0  ;;  %v364_v38 = vsel %vm351_vm1, %v335_v30, 0.0  ;;  %v346_v39 = vadd.f32 %v638_v28, %v252_v20 }
  0xde   : > { %v321_v33 = vpop.f32.mrf.mxu0  ;;  %v337_v34 = vpop.f32.mrf.mxu1  ;;  %353 = vadd.xlane.f32.xlu0 %v352_v32 }
  0xdf   : > { %v338_v35 = vadd.f32 %v337_v34, %v252_v20  ;;  %v361_v36 = vsel %vm351_vm1, %v330_v31, 0.0  ;;  %v322_v37 = vadd.f32 %v321_v33, %v252_v20  ;;  %v373_v43 = vsel %vm351_vm1, %v346_v39, 0.0 }
  0xe0   : > { %362 = vadd.xlane.f32.xlu1 %v361_v36 }
  0xe1   : > { %v367_v40 = vsel %vm351_vm1, %v338_v35, 0.0  ;;  %v355_v42 = vsel %vm351_vm1, %v322_v37, 0.0 }
  0xe2   : > { %365 = vadd.xlane.f32.xlu0 %v364_v38 }
  0xe4   : > { %368 = vadd.xlane.f32.xlu1 %v367_v40 }
  0xe6   : > { %356 = vadd.xlane.f32.xlu0 %v355_v42 }
  0xe8   : > { %374 = vadd.xlane.f32.xlu1 %v373_v43  ;;  %v598_v43 = vld [vmem:[%s830_s3] ss:$0 sm:$0xff] }
  0xea   : > { %371 = vadd.xlane.f32.xlu0 %v370_v44 }
 0x165   : > { %v360_v45 = vpop.xlane.xlu1 %359 }
 0x166   : > { %v379_v46 = vmul.f32 0.03125, %v360_v45 }
 0x167   : > { %v354_v47 = vpop.xlane.xlu0 %353 }
 0x168   : > { %v748_v48 = vsub.f32 %v327_v23, %v379_v46  ;;  %v377_v49 = vmul.f32 0.03125, %v354_v47  ;;  %v599_v47 = vld [vmem:[%s831_s4] ss:$0 sm:$0xff] }
 0x169   : > { %v363_v50 = vpop.xlane.xlu1 %362 }
 0x16a   : > { %v750_v51 = vsub.f32 %v319_v26, %v377_v49  ;;  %v380_v52 = vmul.f32 0.03125, %v363_v50  ;;  %v395_v53 = vmul.f32 %v748_v48, %v748_v48 }
 0x16b   : > { %v366_v54 = vpop.xlane.xlu0 %365 }
 0x16c   : > { %v754_v55 = vsub.f32 %v330_v31, %v380_v52  ;;  %v381_v56 = vmul.f32 0.03125, %v366_v54  ;;  %v407_v57 = vsel %vm351_vm1, %v395_v53, 0.0  ;;  %v393_v58 = vmul.f32 %v750_v51, %v750_v51 }
 0x16d   : > { %v369_v59 = vpop.xlane.xlu1 %368  ;;  %408 = vadd.xlane.f32.xlu0 %v407_v57 }
 0x16e   : > { %v759_v60 = vsub.f32 %v335_v30, %v381_v56  ;;  %v382_v61 = vmul.f32 0.03125, %v369_v59  ;;  %v396_v62 = vmul.f32 %v754_v55, %v754_v55  ;;  %v401_v2 = vsel %vm351_vm1, %v393_v58, 0.0 }
 0x16f   : > { %v357_v63 = vpop.xlane.xlu0 %356 }
 0x170   : > { %v378_v0 = vmul.f32 0.03125, %v357_v63  ;;  %v410_v1 = vsel %vm351_vm1, %v396_v62, 0.0  ;;  %v397_v3 = vmul.f32 %v759_v60, %v759_v60  ;;  %v767_v5 = vsub.f32 %v338_v35, %v382_v61 }
 0x171   : > { %411 = vadd.xlane.f32.xlu1 %v410_v1  ;;  %v375_v4 = vpop.xlane.xlu1 %374  ;;  %402 = vadd.xlane.f32.xlu0 %v401_v2 }
 0x172   : > { %v769_v6 = vsub.f32 %v322_v37, %v378_v0  ;;  %v384_v7 = vmul.f32 0.03125, %v375_v4  ;;  %v413_v10 = vsel %vm351_vm1, %v397_v3, 0.0  ;;  %v398_v15 = vmul.f32 %v767_v5, %v767_v5 }
 0x173   : > { %v372_v8 = vpop.xlane.xlu0 %371 }
 0x174   : > { %v383_v9 = vmul.f32 0.03125, %v372_v8  ;;  %v394_v11 = vmul.f32 %v769_v6, %v769_v6  ;;  %v774_v12 = vsub.f32 %v346_v39, %v384_v7  ;;  %v416_v17 = vsel %vm351_vm1, %v398_v15, 0.0 }
 0x175   : > { %414 = vadd.xlane.f32.xlu0 %v413_v10 }
 0x176   : > { %v776_v13 = vsub.f32 %v343_v41, %v383_v9  ;;  %v404_v14 = vsel %vm351_vm1, %v394_v11, 0.0  ;;  %v400_v19 = vmul.f32 %v774_v12, %v774_v12 }
 0x177   : > { %405 = vadd.xlane.f32.xlu1 %v404_v14 }
 0x178   : > { %v399_v16 = vmul.f32 %v776_v13, %v776_v13  ;;  %v422_v20 = vsel %vm351_vm1, %v400_v19, 0.0 }
 0x17a   : > { %v419_v18 = vsel %vm351_vm1, %v399_v16, 0.0 }
 0x17b   : > { %417 = vadd.xlane.f32.xlu1 %v416_v17  ;;  %420 = vadd.xlane.f32.xlu0 %v419_v18 }
 0x17f   : > { %423 = vadd.xlane.f32.xlu1 %v422_v20 }
 0x1f6   : > { %v409_v21 = vpop.xlane.xlu0 %408 }
 0x1f7   : > { %v427_v22 = vmul.f32 0.03125, %v409_v21 }
 0x1f9   : > { %v435_v23 = vadd.f32 1e-05, %v427_v22 }
 0x1fa   : > { %v412_v24 = vpop.xlane.xlu1 %411  ;;  %v403_v25 = vpop.xlane.xlu0 %402 }
 0x1fb   : > { %656 = vrsqrt.f32 %v435_v23  ;;  %v428_v26 = vmul.f32 0.03125, %v412_v24  ;;  %v425_v27 = vmul.f32 0.03125, %v403_v25 }
 0x1fd   : > { %v436_v28 = vadd.f32 1e-05, %v428_v26  ;;  %v433_v29 = vadd.f32 1e-05, %v425_v27 }
 0x1fe   : > { %v415_v30 = vpop.xlane.xlu0 %414 }
 0x1ff   : > { %658 = vrsqrt.f32 %v436_v28  ;;  %v429_v31 = vmul.f32 0.03125, %v415_v30 }
 0x200   : > { %660 = vrsqrt.f32 %v433_v29  ;;  %v406_v32 = vpop.xlane.xlu1 %405 }
 0x201   : > { %v437_v33 = vadd.f32 1e-05, %v429_v31  ;;  %v426_v34 = vmul.f32 0.03125, %v406_v32 }
 0x203   : > { %662 = vrsqrt.f32 %v437_v33  ;;  %v434_v35 = vadd.f32 1e-05, %v426_v34 }
 0x204   : > { %v418_v36 = vpop.xlane.xlu1 %417  ;;  %v421_v37 = vpop.xlane.xlu0 %420 }
 0x205   : > { %664 = vrsqrt.f32 %v434_v35  ;;  %v430_v38 = vmul.f32 0.03125, %v418_v36  ;;  %v431_v39 = vmul.f32 0.03125, %v421_v37 }
 0x207   : > { %v438_v40 = vadd.f32 1e-05, %v430_v38  ;;  %v439_v41 = vadd.f32 1e-05, %v431_v39 }
 0x208   : > { %v657_v42 = vpop.eup %656  ;;  %v424_v44 = vpop.xlane.xlu1 %423 }
 0x209   : > { %v451_v45 = vmul.f32 %v657_v42, %v748_v48  ;;  %666 = vrsqrt.f32 %v438_v40  ;;  %v432_v46 = vmul.f32 0.03125, %v424_v44 }
 0x20a   : > { %668 = vrsqrt.f32 %v439_v41 }
 0x20b   : > { %v465_v49 = vmul.f32 %v598_v43, %v451_v45  ;;  %v440_v50 = vadd.f32 1e-05, %v432_v46 }
 0x20c   : > { %v659_v52 = vpop.eup %658 }
 0x20d   : > { %v661_v53 = vpop.eup %660  ;;  %v479_v54 = vadd.f32 %v599_v47, %v465_v49  ;;  %v452_v56 = vmul.f32 %v659_v52, %v754_v55  ;;  %670 = vrsqrt.f32 %v440_v50 }
 0x20e   : > { %v449_v48 = vmul.f32 %v661_v53, %v750_v51 }
 0x20f   : > { %v612_v57 = vpack.c.bf16 %v479_v54, %v479_v54  ;;  %v466_v58 = vmul.f32 %v598_v43, %v452_v56 }
 0x210   : > { %v663_v59 = vpop.eup %662  ;;  %v463_v61 = vmul.f32 %v598_v43, %v449_v48 }
 0x211   : > { %520 = vst.msk [vmem:[%s800_s15 + $0x8] sm:$0xf] %vm517_vm2, %v612_v57  ;;  %v480_v62 = vadd.f32 %v599_v47, %v466_v58  ;;  %v453_v55 = vmul.f32 %v663_v59, %v759_v60 }
 0x212   : > { %v665_v63 = vpop.eup %664  ;;  %v477_v0 = vadd.f32 %v599_v47, %v463_v61 }
 0x213   : > { %v613_v1 = vpack.c.bf16 %v480_v62, %v480_v62  ;;  %v467_v2 = vmul.f32 %v598_v43, %v453_v55  ;;  %v450_v3 = vmul.f32 %v665_v63, %v769_v6 }
 0x214   : > { %v610_v4 = vpack.c.bf16 %v477_v0, %v477_v0 }
 0x215   : > { %521 = vst.msk [vmem:[%s800_s15 + $0xc] sm:$0xf] %vm517_vm2, %v613_v1  ;;  %v481_v51 = vadd.f32 %v599_v47, %v467_v2  ;;  %v464_v7 = vmul.f32 %v598_v43, %v450_v3 }
 0x216   : > { %v667_v8 = vpop.eup %666  ;;  %518 = vst.msk [vmem:[%s800_s15] sm:$0xf] %vm517_vm2, %v610_v4 }
 0x217   : > { %v669_v9 = vpop.eup %668  ;;  %v614_v10 = vpack.c.bf16 %v481_v51, %v481_v51  ;;  %v478_v60 = vadd.f32 %v599_v47, %v464_v7  ;;  %v454_v11 = vmul.f32 %v667_v8, %v767_v5 }
 0x218   : > { %v455_v14 = vmul.f32 %v669_v9, %v776_v13 }
 0x219   : > { %522 = vst.msk [vmem:[%s800_s15 + $0x10] sm:$0xf] %vm517_vm2, %v614_v10  ;;  %v611_v6 = vpack.c.bf16 %v478_v60, %v478_v60  ;;  %v468_v15 = vmul.f32 %v598_v43, %v454_v11 }
 0x21a   : > { %v671_v16 = vpop.eup %670  ;;  %v469_v17 = vmul.f32 %v598_v43, %v455_v14 }
 0x21b   : > { %519 = vst.msk [vmem:[%s800_s15 + $0x4] sm:$0xf] %vm517_vm2, %v611_v6  ;;  %v482_v18 = vadd.f32 %v599_v47, %v468_v15  ;;  %v456_v19 = vmul.f32 %v671_v16, %v774_v12 }
 0x21c   : > { %v483_v20 = vadd.f32 %v599_v47, %v469_v17 }
 0x21d   : > { %v615_v21 = vpack.c.bf16 %v482_v18, %v482_v18  ;;  %v470_v22 = vmul.f32 %v598_v43, %v456_v19 }
 0x21e   : > { %v616_v23 = vpack.c.bf16 %v483_v20, %v483_v20 }
 0x21f   : > { %523 = vst.msk [vmem:[%s800_s15 + $0x14] sm:$0xf] %vm517_vm2, %v615_v21  ;;  %v484_v5 = vadd.f32 %v599_v47, %v470_v22 }
 0x220   : > { %524 = vst.msk [vmem:[%s800_s15 + $0x18] sm:$0xf] %vm517_vm2, %v616_v23 }
 0x221   : > { %v617_v13 = vpack.c.bf16 %v484_v5, %v484_v5 }
 0x223   : > { %525 = vst.msk [vmem:[%s800_s15 + $0x1c] sm:$0xf] %vm517_vm2, %v617_v13 }
 0x224 PF: > { %s15_s18 = sadd.s32 1, %s678_s18  }
 0x225   : > { %p12_p4 = scmp.ge.s32.totalorder %s15_s18, 4  }
 0x227   :  { %14 = sbr.rel (!%p12_p4) target bundleno = 1 (0x1), region = 70 }

// kernel: swin_forward.8
= control target key start
LH: loop header
LB: loop body
LE: loop exit
PB: predicated region body
PF: predicated region fallthrough
CT: control target
= control target key end

     0   :  { %s1068_s24 = smov 0   ;;  %s1287_s0 = inlined_call_operand.vmem [shape: bf16[128,32], index: 0, kind: input, shape index: {}]   ;;  %s1288_s1 = inlined_call_operand.vmem [shape: f32[1,32], index: 1, kind: input, shape index: {}]   ;;  %s1289_s2 = inlined_call_operand.vmem [shape: f32[1,32], index: 2, kind: input, shape index: {}]   ;;  %s1290_s3 = inlined_call_operand.vmem [shape: bf16[32,128], index: 3, kind: input, shape index: {}]   ;;  %s1291_s4 = inlined_call_operand.vmem [shape: bf16[1,128], index: 4, kind: input, shape index: {}]   ;;  %s1292_s5 = inlined_call_operand.vmem [shape: bf16[128,32], index: 5, kind: input, shape index: {}]   ;;  %s1293_s6 = inlined_call_operand.vmem [shape: bf16[1,32], index: 6, kind: input, shape index: {}]   ;;  %s1294_s7 = inlined_call_operand.vmem [shape: bf16[128,32], index: 7, kind: output, shape index: {}]  }
   0x1 LB: > { %s854_s25 = sadd.s32 4294967295, %s1026_s24   ;;  %p858_p0 = scmp.ge.s32.totalorder %s1026_s24, 1  ;;  %s1026_s24 = sphi %s1068_s24, %s17_s24  }
   0x2   : > { %p238_p1 = scmp.lt.s32.totalorder %s1026_s24, 3 }
   0x4   : > { %p239_p2 = pnand %p858_p0, %p238_p1 }
   0x5   : > { %s859_s26 = sshll.u32 (!%p239_p2), %s854_s25, 3 }
   0x6   : > { %242 = sbr.rel (%p239_p2) target bundleno = 782 (0x30e), region = 48  ;;  %p271_p3 = scmp.lt.s32.totalorder (!%p239_p2), %s859_s26, 15 }
   0xb   : > { %s1296_s26 = smov (!%p271_p3, %s859_s26), 15  ;;  %vm301_vm0 = vcmask 261120   ;;  %v978_v60 = vld [vmem:[%s1290_s3 + $0x8] sm:$0xff]   ;;  %v979_v61 = vld [vmem:[%s1290_s3] sm:$0xff]   ;;  %vm789_vm1 = vcmask 257024  }
   0xc   : > { %s860_s27 = sshll.u32 %s1296_s26, 2  ;;  %934 = vmatprep.subr.bf16.mxu0 %v978_v60 }
   0xd   : > { %s274_s30 = scalar_lea.vmem %s1287_s0, %s860_s27  ;;  %935 = vmatpush3.bf16.msra.mxu0 %v978_v60  ;;  %s1259_s18 = scalar_lea.vmem %s1294_s7, %s860_s27 }
   0xe   : > { %v898_v0 = vld [vmem:[%s274_s30] sm:$0xff]   ;;  %v913_v1 = vld [vmem:[%s274_s30 + $0x8] sm:$0xff]   ;;  %v914_v6 = vld [vmem:[%s274_s30 + $0x10] sm:$0xff]   ;;  %936 = vmatprep.subr.bf16.mxu0 %v979_v61 }
   0xf   : > { %v1084_v2 = vunpack.c.l.bf16 %v898_v0  ;;  %v1086_v3 = vunpack.c.l.bf16 %v913_v1  ;;  %v1088_v4 = vunpack.c.h.bf16 %v898_v0  ;;  %v1090_v5 = vunpack.c.h.bf16 %v913_v1  ;;  %v915_v13 = vld [vmem:[%s274_s30 + $0x18] sm:$0xff]  }
  0x10   : > { %v1100_v11 = vunpack.c.l.bf16 %v914_v6  ;;  %v1102_v12 = vunpack.c.h.bf16 %v914_v6  ;;  %v1108_v16 = vunpack.c.l.bf16 %v915_v13  ;;  %v1110_v17 = vunpack.c.h.bf16 %v915_v13 }
  0x11   : > { %v302_v7 = vsel %vm301_vm0, %v1084_v2, 0.0  ;;  %v308_v8 = vsel %vm301_vm0, %v1086_v3, 0.0  ;;  %v305_v9 = vsel %vm301_vm0, %v1088_v4, 0.0  ;;  %v311_v10 = vsel %vm301_vm0, %v1090_v5, 0.0  ;;  %937 = vmatpush3.bf16.msra.mxu0 %v979_v61 }
  0x12   : > { %303 = vadd.xlane.f32.xlu0 %v302_v7  ;;  %309 = vadd.xlane.f32.xlu1 %v308_v8  ;;  %v314_v14 = vsel %vm301_vm0, %v1100_v11, 0.0  ;;  %v317_v15 = vsel %vm301_vm0, %v1102_v12, 0.0  ;;  %v320_v18 = vsel %vm301_vm0, %v1108_v16, 0.0  ;;  %v323_v19 = vsel %vm301_vm0, %v1110_v17, 0.0 }
  0x16   : > { %306 = vadd.xlane.f32.xlu0 %v305_v9  ;;  %312 = vadd.xlane.f32.xlu1 %v311_v10 }
  0x1a   : > { %315 = vadd.xlane.f32.xlu0 %v314_v14  ;;  %318 = vadd.xlane.f32.xlu1 %v317_v15 }
  0x1e   : > { %321 = vadd.xlane.f32.xlu0 %v320_v18  ;;  %324 = vadd.xlane.f32.xlu1 %v323_v19 }
  0x9b   : > { %v304_v20 = vpop.xlane.xlu0 %303  ;;  %v310_v21 = vpop.xlane.xlu1 %309 }
  0x9c   : > { %v327_v22 = vmul.f32 0.03125, %v304_v20  ;;  %v329_v23 = vmul.f32 0.03125, %v310_v21 }
  0x9e   : > { %v1117_v24 = vsub.f32 %v1084_v2, %v327_v22  ;;  %v1120_v25 = vsub.f32 %v1086_v3, %v329_v23 }
  0x9f   : > { %v307_v26 = vpop.xlane.xlu0 %306  ;;  %v313_v27 = vpop.xlane.xlu1 %312 }
  0xa0   : > { %v328_v28 = vmul.f32 0.03125, %v307_v26  ;;  %v330_v29 = vmul.f32 0.03125, %v313_v27  ;;  %v343_v30 = vmul.f32 %v1117_v24, %v1117_v24  ;;  %v345_v31 = vmul.f32 %v1120_v25, %v1120_v25 }
  0xa2   : > { %v1127_v32 = vsub.f32 %v1088_v4, %v328_v28  ;;  %v1130_v33 = vsub.f32 %v1090_v5, %v330_v29  ;;  %v351_v34 = vsel %vm301_vm0, %v343_v30, 0.0  ;;  %v357_v37 = vsel %vm301_vm0, %v345_v31, 0.0 }
  0xa3   : > { %352 = vadd.xlane.f32.xlu0 %v351_v34  ;;  %v316_v35 = vpop.xlane.xlu0 %315  ;;  %v319_v36 = vpop.xlane.xlu1 %318 }
  0xa4   : > { %v331_v38 = vmul.f32 0.03125, %v316_v35  ;;  %v332_v39 = vmul.f32 0.03125, %v319_v36  ;;  %v344_v40 = vmul.f32 %v1127_v32, %v1127_v32  ;;  %v346_v41 = vmul.f32 %v1130_v33, %v1130_v33  ;;  %v863_v36 = vld [vmem:[%s1288_s1] ss:$0 sm:$0xff] }
  0xa6   : > { %v1139_v42 = vsub.f32 %v1100_v11, %v331_v38  ;;  %v1142_v43 = vsub.f32 %v1102_v12, %v332_v39  ;;  %v354_v44 = vsel %vm301_vm0, %v344_v40, 0.0  ;;  %v360_v47 = vsel %vm301_vm0, %v346_v41, 0.0  ;;  %v864_v41 = vld [vmem:[%s1289_s2] ss:$0 sm:$0xff] }
  0xa7   : > { %358 = vadd.xlane.f32.xlu0 %v357_v37  ;;  %355 = vadd.xlane.f32.xlu1 %v354_v44  ;;  %v322_v45 = vpop.xlane.xlu0 %321  ;;  %v325_v46 = vpop.xlane.xlu1 %324 }
  0xa8   : > { %v333_v48 = vmul.f32 0.03125, %v322_v45  ;;  %v334_v49 = vmul.f32 0.03125, %v325_v46  ;;  %v347_v50 = vmul.f32 %v1139_v42, %v1139_v42  ;;  %v348_v51 = vmul.f32 %v1142_v43, %v1142_v43 }
  0xaa   : > { %v1151_v52 = vsub.f32 %v1108_v16, %v333_v48  ;;  %v1154_v53 = vsub.f32 %v1110_v17, %v334_v49  ;;  %v363_v54 = vsel %vm301_vm0, %v347_v50, 0.0  ;;  %v366_v55 = vsel %vm301_vm0, %v348_v51, 0.0 }
  0xab   : > { %361 = vadd.xlane.f32.xlu1 %v360_v47  ;;  %364 = vadd.xlane.f32.xlu0 %v363_v54 }
  0xac   : > { %v349_v56 = vmul.f32 %v1151_v52, %v1151_v52  ;;  %v350_v57 = vmul.f32 %v1154_v53, %v1154_v53 }
  0xae   : > { %v369_v58 = vsel %vm301_vm0, %v349_v56, 0.0  ;;  %v372_v59 = vsel %vm301_vm0, %v350_v57, 0.0 }
  0xaf   : > { %367 = vadd.xlane.f32.xlu1 %v366_v55  ;;  %370 = vadd.xlane.f32.xlu0 %v369_v58 }
  0xb3   : > { %373 = vadd.xlane.f32.xlu1 %v372_v59 }
 0x12c   : > { %v353_v62 = vpop.xlane.xlu0 %352 }
 0x12d   : > { %v375_v63 = vmul.f32 0.03125, %v353_v62 }
 0x12f   : > { %v383_v0 = vadd.f32 1e-05, %v375_v63 }
 0x130   : > { %v356_v1 = vpop.xlane.xlu1 %355  ;;  %v359_v6 = vpop.xlane.xlu0 %358 }
 0x131   : > { %988 = vrsqrt.f32 %v383_v0  ;;  %v376_v7 = vmul.f32 0.03125, %v356_v1  ;;  %v377_v8 = vmul.f32 0.03125, %v359_v6 }
 0x133   : > { %v384_v9 = vadd.f32 1e-05, %v376_v7  ;;  %v385_v10 = vadd.f32 1e-05, %v377_v8 }
 0x134   : > { %v362_v13 = vpop.xlane.xlu1 %361  ;;  %v365_v14 = vpop.xlane.xlu0 %364 }
 0x135   : > { %990 = vrsqrt.f32 %v384_v9  ;;  %v378_v15 = vmul.f32 0.03125, %v362_v13  ;;  %v379_v18 = vmul.f32 0.03125, %v365_v14  ;;  %v983_v13 = vld [vmem:[%s1292_s5 + $0x20] sm:$0xff]   ;;  %v984_v14 = vld [vmem:[%s1292_s5 + $0x18] sm:$0xff]  }
 0x136   : > { %992 = vrsqrt.f32 %v385_v10  ;;  %v982_v10 = vld [vmem:[%s1292_s5 + $0x28] sm:$0xff]  }
 0x137   : > { %v386_v19 = vadd.f32 1e-05, %v378_v15  ;;  %v387_v20 = vadd.f32 1e-05, %v379_v18  ;;  %v985_v15 = vld [vmem:[%s1292_s5 + $0x10] sm:$0xff]   ;;  %v986_v18 = vld [vmem:[%s1292_s5 + $0x8] sm:$0xff]  }
 0x138   : > { %v368_v21 = vpop.xlane.xlu1 %367  ;;  %v371_v22 = vpop.xlane.xlu0 %370 }
 0x139   : > { %994 = vrsqrt.f32 %v386_v19  ;;  %v380_v23 = vmul.f32 0.03125, %v368_v21  ;;  %v381_v26 = vmul.f32 0.03125, %v371_v22  ;;  %v987_v19 = vld [vmem:[%s1292_s5] sm:$0xff]  }
 0x13a   : > { %996 = vrsqrt.f32 %v387_v20  ;;  %v445_v20 = vlaneseq  ;;  %v443_v22 = vld [vmem:[%s1291_s4] sm:$0x1] }
 0x13b   : > { %v388_v27 = vadd.f32 1e-05, %v380_v23  ;;  %v389_v28 = vadd.f32 1e-05, %v381_v26  ;;  %v444_v23 = vunpack.c.l.bf16 %v443_v22 }
 0x13c   : > { %v374_v29 = vpop.xlane.xlu1 %373  ;;  %v1212_v21 = vshrl.u32 %v445_v20, 7 }
 0x13d   : > { %998 = vrsqrt.f32 %v388_v27  ;;  %v382_v30 = vmul.f32 0.03125, %v374_v29 }
 0x13e   : > { %v989_v31 = vpop.eup %988  ;;  %1000 = vrsqrt.f32 %v389_v28  ;;  %v447_v26 = vsub.s32 0, %v1212_v21 }
 0x13f   : > { %v390_v34 = vadd.f32 1e-05, %v382_v30  ;;  %v399_v35 = vmul.f32 %v989_v31, %v1117_v24 }
 0x140   : > { %v448_v27 = vrot.slane %v444_v23, %v447_v26 }
 0x141   : > { %1002 = vrsqrt.f32 %v390_v34  ;;  %v413_v40 = vmul.f32 %v863_v36, %v399_v35 }
 0x142   : > { %v991_v37 = vpop.eup %990 }
 0x143   : > { %v993_v38 = vpop.eup %992  ;;  %v400_v39 = vmul.f32 %v991_v37, %v1127_v32  ;;  %v427_v24 = vadd.f32 %v864_v41, %v413_v40 }
 0x144   : > { %v401_v44 = vmul.f32 %v993_v38, %v1120_v25 }
 0x145   : > { %v414_v45 = vmul.f32 %v863_v36, %v400_v39 }
 0x146   : > { %v995_v46 = vpop.eup %994  ;;  %v415_v50 = vmul.f32 %v863_v36, %v401_v44 }
 0x147   : > { %v997_v47 = vpop.eup %996  ;;  %v428_v48 = vadd.f32 %v864_v41, %v414_v45  ;;  %v402_v49 = vmul.f32 %v995_v46, %v1130_v33 }
 0x148   : > { %v403_v51 = vmul.f32 %v997_v47, %v1139_v42  ;;  %v429_v57 = vadd.f32 %v864_v41, %v415_v50 }
 0x149   : > { %v435_v54 = vpack.c.bf16 %v428_v48, %v427_v24  ;;  %v416_v55 = vmul.f32 %v863_v36, %v402_v49 }
 0x14a   : > { %v999_v32 = vpop.eup %998  ;;  %v417_v59 = vmul.f32 %v863_v36, %v403_v51 }
 0x14b   : > { %v1001_v56 = vpop.eup %1000  ;;  %938 = vmatprep.mubr.msk.bf16.mxu0 %vm301_vm0, %v435_v54  ;;  %v430_v58 = vadd.f32 %v864_v41, %v416_v55  ;;  %v404_v25 = vmul.f32 %v999_v32, %v1142_v43 }
 0x14c   : > { %v405_v60 = vmul.f32 %v1001_v56, %v1151_v52  ;;  %v431_v33 = vadd.f32 %v864_v41, %v417_v59  ;;  %v980_v52 = vld [vmem:[%s1292_s5 + $0x38] sm:$0xff]  }
 0x14d   : > { %v436_v61 = vpack.c.bf16 %v430_v58, %v429_v57  ;;  %v418_v62 = vmul.f32 %v863_v36, %v404_v25  ;;  %946 = vmatprep.subr.bf16.mxu1 %v980_v52 }
 0x14e   : > { %v1003_v63 = vpop.eup %1002  ;;  %v419_v1 = vmul.f32 %v863_v36, %v405_v60  ;;  %947 = vmatpush3.bf16.msra.mxu1 %v980_v52 }
 0x14f   : > { %939 = vmatmul.mubr.msk.bf16.vlgmr.msra.gmra.mxu0 %vm301_vm0, %v436_v61  ;;  %v432_v42 = vadd.f32 %v864_v41, %v418_v62  ;;  %v406_v0 = vmul.f32 %v1003_v63, %v1154_v53  ;;  %v981_v53 = vld [vmem:[%s1292_s5 + $0x30] sm:$0xff]  }
 0x150   : > { %v433_v8 = vadd.f32 %v864_v41, %v419_v1  ;;  %948 = vmatprep.subr.bf16.mxu1 %v981_v53 }
 0x151   : > { %v437_v6 = vpack.c.bf16 %v432_v42, %v431_v33  ;;  %v420_v7 = vmul.f32 %v863_v36, %v406_v0 }
 0x152   : > { %949 = vmatpush3.bf16.msra.mxu1 %v981_v53 }
 0x153   : > { %942 = vmatprep.mubr.msk.bf16.mxu0 %vm301_vm0, %v437_v6  ;;  %v434_v9 = vadd.f32 %v864_v41, %v420_v7  ;;  %950 = vmatprep.subr.bf16.mxu1 %v982_v10 }
 0x155   : > { %v438_v43 = vpack.c.bf16 %v434_v9, %v433_v8 }
 0x156   : > { %951 = vmatpush3.bf16.msra.mxu1 %v982_v10 }
 0x157   : > { %943 = vmatmul.mubr.msk.bf16.gmra.mxu0 %vm301_vm0, %v438_v43  ;;  %952 = vmatprep.subr.bf16.mxu1 %v983_v13 }
 0x15a   : > { %953 = vmatpush3.bf16.msra.mxu1 %v983_v13 }
 0x15b   : > { %954 = vmatprep.subr.bf16.mxu1 %v984_v14 }
 0x15e   : > { %955 = vmatpush3.bf16.msra.mxu1 %v984_v14 }
 0x15f   : > { %956 = vmatprep.subr.bf16.mxu1 %v985_v15 }
 0x162   : > { %957 = vmatpush3.bf16.msra.mxu1 %v985_v15 }
 0x163   : > { %958 = vmatprep.subr.bf16.mxu1 %v986_v18 }
 0x166   : > { %959 = vmatpush3.bf16.msra.mxu1 %v986_v18 }
 0x167   : > { %960 = vmatprep.subr.bf16.mxu1 %v987_v19 }
 0x16a   : > { %961 = vmatpush3.bf16.msra.mxu1 %v987_v19 }
 0x20f   : > { %v940_v28 = vpop.f32.mrf.mxu0 }
 0x210   : > { %v1220_v29 = vadd.f32 %v940_v28, %v448_v27 }
 0x211   : > { %v507_v30 = vpop.f32.mrf.mxu0 }
 0x212   : > { %v548_v31 = vmul.f32 0.044715, %v1220_v29  ;;  %v1223_v34 = vadd.f32 %v507_v30, %v448_v27 }
 0x213   : > { %v941_v35 = vpop.f32.mrf.mxu0 }
 0x214   : > { %v556_v36 = vmul.f32 %v548_v31, %v1220_v29  ;;  %v546_v37 = vmul.f32 0.044715, %v1223_v34  ;;  %v519_v38 = vadd.f32 %v941_v35, %v448_v27 }
 0x215   : > { %v510_v39 = vpop.f32.mrf.mxu0 }
 0x216   : > { %v564_v40 = vmul.f32 %v556_v36, %v1220_v29  ;;  %v549_v41 = vmul.f32 0.044715, %v519_v38  ;;  %v511_v44 = vadd.f32 %v510_v39, %v448_v27  ;;  %v554_v45 = vmul.f32 %v546_v37, %v1223_v34 }
 0x217   : > { %v944_v46 = vpop.f32.mrf.mxu0 }
 0x218   : > { %v557_v47 = vmul.f32 %v549_v41, %v519_v38  ;;  %v547_v24 = vmul.f32 0.044715, %v511_v44  ;;  %v1229_v48 = vadd.f32 %v944_v46, %v448_v27  ;;  %v562_v50 = vmul.f32 %v554_v45, %v1223_v34 }
 0x219   : > { %v523_v49 = vpop.f32.mrf.mxu0  ;;  %v572_v51 = vadd.f32 %v564_v40, %v1220_v29  ;;  %v541_v41 = vmul.f32 0.5, %v519_v38  ;;  %v538_v46 = vmul.f32 0.5, %v1223_v34 }
 0x21a   : > { %v565_v54 = vmul.f32 %v557_v47, %v519_v38  ;;  %v552_v55 = vmul.f32 0.044715, %v1229_v48  ;;  %v1234_v32 = vadd.f32 %v523_v49, %v448_v27  ;;  %v555_v56 = vmul.f32 %v547_v24, %v511_v44 }
 0x21b   : > { %v945_v57 = vpop.f32.mrf.mxu0  ;;  %v570_v58 = vadd.f32 %v562_v50, %v1223_v34  ;;  %v580_v25 = vmul.f32 0.7978846, %v572_v51  ;;  %v539_v47 = vmul.f32 0.5, %v511_v44  ;;  %v540_v49 = vmul.f32 0.5, %v1220_v29 }
 0x21c   : > { %v560_v59 = vmul.f32 %v552_v55, %v1229_v48  ;;  %v550_v60 = vmul.f32 0.044715, %v1234_v32  ;;  %v535_v61 = vadd.f32 %v945_v57, %v448_v27  ;;  %v563_v62 = vmul.f32 %v555_v56, %v511_v44 }
 0x21d   : > { %v526_v63 = vpop.f32.mrf.mxu0  ;;  %v578_v33 = vmul.f32 0.7978846, %v570_v58  ;;  %v573_v42 = vadd.f32 %v565_v54, %v519_v38  ;;  %v542_v38 = vmul.f32 0.5, %v1234_v32 }
 0x21e   : > { %v568_v0 = vmul.f32 %v560_v59, %v1229_v48  ;;  %v558_v1 = vmul.f32 %v550_v60, %v1234_v32  ;;  %v553_v6 = vmul.f32 0.044715, %v535_v61  ;;  %v527_v7 = vadd.f32 %v526_v63, %v448_v27 }
 0x21f   : > { %v571_v8 = vadd.f32 %v563_v62, %v511_v44  ;;  %1004 = vtanh.f32 %v578_v33  ;;  %v581_v9 = vmul.f32 0.7978846, %v573_v42  ;;  %v545_v33 = vmul.f32 0.5, %v535_v61 }
 0x220   : > { %v566_v43 = vmul.f32 %v558_v1, %v1234_v32  ;;  %v561_v52 = vmul.f32 %v553_v6, %v535_v61  ;;  %v551_v53 = vmul.f32 0.044715, %v527_v7  ;;  %1006 = vtanh.f32 %v580_v25 }
 0x221   : > { %v579_v10 = vmul.f32 0.7978846, %v571_v8  ;;  %1008 = vtanh.f32 %v581_v9  ;;  %v576_v13 = vadd.f32 %v568_v0, %v1229_v48  ;;  %v543_v34 = vmul.f32 0.5, %v527_v7 }
 0x222   : > { %v569_v14 = vmul.f32 %v561_v52, %v535_v61  ;;  %v559_v15 = vmul.f32 %v551_v53, %v527_v7  ;;  %v574_v18 = vadd.f32 %v566_v43, %v1234_v32  ;;  %v544_v1 = vmul.f32 0.5, %v1229_v48  ;;  %v630_v32 = vld [vmem:[%s1293_s6] sm:$0x1] }
 0x223   : > { %1010 = vtanh.f32 %v579_v10  ;;  %v584_v19 = vmul.f32 0.7978846, %v576_v13  ;;  %v631_v52 = vunpack.c.l.bf16 %v630_v32 }
 0x224   : > { %v567_v20 = vmul.f32 %v559_v15, %v527_v7  ;;  %v582_v22 = vmul.f32 0.7978846, %v574_v18  ;;  %v577_v23 = vadd.f32 %v569_v14, %v535_v61 }
 0x225   : > { %v635_v61 = vrot.slane %v631_v52, %v447_v26 }
 0x226   : > { %v575_v27 = vadd.f32 %v567_v20, %v527_v7  ;;  %1012 = vtanh.f32 %v582_v22  ;;  %v585_v28 = vmul.f32 0.7978846, %v577_v23 }
 0x227   : > { %1014 = vtanh.f32 %v584_v19 }
 0x228   : > { %v583_v30 = vmul.f32 0.7978846, %v575_v27  ;;  %1016 = vtanh.f32 %v585_v28 }
 0x22a   : > { %1018 = vtanh.f32 %v583_v30 }
 0x22c   : > { %v1005_v31 = vpop.eup %1004 }
 0x22d   : > { %v1007_v35 = vpop.eup %1006  ;;  %v594_v37 = vadd.f32 1.0, %v1005_v31 }
 0x22e   : > { %v1009_v36 = vpop.eup %1008  ;;  %v596_v45 = vadd.f32 1.0, %v1007_v35 }
 0x22f   : > { %v597_v39 = vadd.f32 1.0, %v1009_v36  ;;  %v602_v54 = vmul.f32 %v594_v37, %v538_v46 }
 0x230   : > { %v1011_v40 = vpop.eup %1010  ;;  %v604_v57 = vmul.f32 %v596_v45, %v540_v49 }
 0x231   : > { %v595_v24 = vadd.f32 1.0, %v1011_v40  ;;  %v605_v50 = vmul.f32 %v597_v39, %v541_v41 }
 0x233   : > { %v1013_v51 = vpop.eup %1012  ;;  %v603_v55 = vmul.f32 %v595_v24, %v539_v47  ;;  %v611_v59 = vpack.c.bf16 %v605_v50, %v604_v57 }
 0x234   : > { %v1015_v56 = vpop.eup %1014  ;;  %v598_v60 = vadd.f32 1.0, %v1013_v51 }
 0x235   : > { %v1017_v58 = vpop.eup %1016  ;;  %v610_v25 = vpack.c.bf16 %v603_v55, %v602_v54  ;;  %v600_v29 = vadd.f32 1.0, %v1015_v56 }
 0x236   : > { %v601_v62 = vadd.f32 1.0, %v1017_v58  ;;  %v606_v42 = vmul.f32 %v598_v60, %v542_v38 }
 0x237   : > { %v1019_v63 = vpop.eup %1018  ;;  %962 = vmatprep.mubr.bf16.mxu1 %v610_v25  ;;  %v608_v9 = vmul.f32 %v600_v29, %v544_v1 }
 0x238   : > { %963 = vmatmul.mubr.bf16.vlgmr.msra.gmra.mxu1 %v611_v59  ;;  %v599_v44 = vadd.f32 1.0, %v1019_v63  ;;  %v609_v6 = vmul.f32 %v601_v62, %v545_v33 }
 0x23a   : > { %v607_v0 = vmul.f32 %v599_v44, %v543_v34  ;;  %v613_v43 = vpack.c.bf16 %v609_v6, %v608_v9 }
 0x23c   : > { %v612_v8 = vpack.c.bf16 %v607_v0, %v606_v42 }
 0x23e   : > { %966 = vmatprep.mubr.bf16.mxu1 %v612_v8 }
 0x240   : > { %967 = vmatmul.mubr.bf16.gmra.mxu1 %v613_v43 }
 0x2f8   : > { %v964_v7 = vpop.f32.mrf.mxu1 }
 0x2f9   : > { %v727_v53 = vadd.f32 %v964_v7, %v635_v61 }
 0x2fa   : > { %v718_v10 = vpop.f32.mrf.mxu1 }
 0x2fb   : > { %v751_v13 = vadd.f32 %v1086_v3, %v727_v53  ;;  %v719_v48 = vadd.f32 %v718_v10, %v635_v61 }
 0x2fc   : > { %v965_v14 = vpop.f32.mrf.mxu1 }
 0x2fd   : > { %v891_v15 = vpack.c.bf16 %v751_v13, %v751_v13  ;;  %v749_v21 = vadd.f32 %v1084_v2, %v719_v48  ;;  %v730_v26 = vadd.f32 %v965_v14, %v635_v61 }
 0x2fe   : > { %v721_v18 = vpop.f32.mrf.mxu1 }
 0x2ff   : > { %792 = vst.msk [vmem:[%s1259_s18 + $0x8] sm:$0xf] %vm789_vm1, %v891_v15  ;;  %v889_v3 = vpack.c.bf16 %v749_v21, %v749_v21  ;;  %v752_v19 = vadd.f32 %v1090_v5, %v730_v26  ;;  %v722_v20 = vadd.f32 %v721_v18, %v635_v61 }
 0x300   : > { %v968_v22 = vpop.f32.mrf.mxu1 }
 0x301   : > { %790 = vst.msk [vmem:[%s1259_s18] sm:$0xf] %vm789_vm1, %v889_v3  ;;  %v892_v23 = vpack.c.bf16 %v752_v19, %v752_v19  ;;  %v750_v27 = vadd.f32 %v1088_v4, %v722_v20  ;;  %v743_v28 = vadd.f32 %v968_v22, %v635_v61 }
 0x302   : > { %v734_v30 = vpop.f32.mrf.mxu1 }
 0x303   : > { %793 = vst.msk [vmem:[%s1259_s18 + $0xc] sm:$0xf] %vm789_vm1, %v892_v23  ;;  %v890_v2 = vpack.c.bf16 %v750_v27, %v750_v27  ;;  %v755_v31 = vadd.f32 %v1108_v16, %v743_v28  ;;  %v735_v35 = vadd.f32 %v734_v30, %v635_v61 }
 0x304   : > { %v969_v5 = vpop.f32.mrf.mxu1 }
 0x305   : > { %791 = vst.msk [vmem:[%s1259_s18 + $0x4] sm:$0xf] %vm789_vm1, %v890_v2  ;;  %v895_v36 = vpack.c.bf16 %v755_v31, %v755_v31  ;;  %v753_v37 = vadd.f32 %v1100_v11, %v735_v35  ;;  %v746_v39 = vadd.f32 %v969_v5, %v635_v61 }
 0x306   : > { %v737_v40 = vpop.f32.mrf.mxu1 }
 0x307   : > { %796 = vst.msk [vmem:[%s1259_s18 + $0x18] sm:$0xf] %vm789_vm1, %v895_v36  ;;  %v893_v4 = vpack.c.bf16 %v753_v37, %v753_v37  ;;  %v756_v41 = vadd.f32 %v1110_v17, %v746_v39  ;;  %v738_v45 = vadd.f32 %v737_v40, %v635_v61 }
 0x309   : > { %794 = vst.msk [vmem:[%s1259_s18 + $0x10] sm:$0xf] %vm789_vm1, %v893_v4  ;;  %v896_v46 = vpack.c.bf16 %v756_v41, %v756_v41  ;;  %v754_v16 = vadd.f32 %v1102_v12, %v738_v45 }
 0x30b   : > { %797 = vst.msk [vmem:[%s1259_s18 + $0x1c] sm:$0xf] %vm789_vm1, %v896_v46  ;;  %v894_v47 = vpack.c.bf16 %v754_v16, %v754_v16 }
 0x30d   : > { %795 = vst.msk [vmem:[%s1259_s18 + $0x14] sm:$0xf] %vm789_vm1, %v894_v47 }
 0x30e PF: > { %s17_s24 = sadd.s32 1, %s1026_s24  }
 0x30f   : > { %p14_p4 = scmp.ge.s32.totalorder %s17_s24, 4  }
 0x311   :  { %16 = sbr.rel (!%p14_p4) target bundleno = 1 (0x1), region = 78 }

// kernel: swin_forward.9
= control target key start
LH: loop header
LB: loop body
LE: loop exit
PB: predicated region body
PF: predicated region fallthrough
CT: control target
= control target key end

     0   :  { %s535_s15 = smov 0   ;;  %s589_s0 = inlined_call_operand.vmem [shape: bf16[32,128], index: 0, kind: input, shape index: {}]   ;;  %s590_s1 = inlined_call_operand.vmem [shape: f32[1,128], index: 1, kind: input, shape index: {}]   ;;  %s591_s2 = inlined_call_operand.vmem [shape: f32[1,128], index: 2, kind: input, shape index: {}]   ;;  %s592_s3 = inlined_call_operand.vmem [shape: bf16[128,64], index: 3, kind: input, shape index: {}]   ;;  %s593_s4 = inlined_call_operand.vmem [shape: bf16[32,64], index: 4, kind: output, shape index: {}]  }
   0x1 LB: > { %s420_s16 = sadd.s32 4294967295, %s506_s15   ;;  %p424_p0 = scmp.ge.s32.totalorder %s506_s15, 1  ;;  %s506_s15 = sphi %s535_s15, %s14_s15  }
   0x2   : > { %p163_p1 = scmp.lt.s32.totalorder %s506_s15, 3 }
   0x4   : > { %p164_p2 = pnand %p424_p0, %p163_p1 }
   0x5   : > { %s425_s17 = sshll.u32 (!%p164_p2), %s420_s16, 1 }
   0x6   : > { %167 = sbr.rel (%p164_p2) target bundleno = 529 (0x211), region = 36  ;;  %p190_p3 = scmp.lt.s32.totalorder (!%p164_p2), %s425_s17, 3 }
   0xb   : > { %s595_s17 = smov (!%p190_p3, %s425_s17), 3  ;;  %v488_v3 = vld [vmem:[%s592_s3 + $0x38] sm:$0xff]   ;;  %v508_v4 = vmov 0.0   ;;  %v489_v13 = vld [vmem:[%s592_s3 + $0x30] sm:$0xff]   ;;  %v490_v14 = vld [vmem:[%s592_s3 + $0x28] sm:$0xff]   ;;  %vm509_vm0 = vmmov 0  }
   0xc   : > { %s426_s18 = sshll.u32 %s595_s17, 2  ;;  %458 = vmatprep.subr.bf16.mxu0 %v508_v4  ;;  %v491_v15 = vld [vmem:[%s592_s3 + $0x20] sm:$0xff]   ;;  %474 = vmatprep.mubr.msk.bf16.mxu0 %vm509_vm0, %v508_v4  ;;  %v492_v16 = vld [vmem:[%s592_s3 + $0x18] sm:$0xff]   ;;  %v493_v17 = vld [vmem:[%s592_s3 + $0x10] sm:$0xff]   ;;  %vm361_vm1 = vcmask 519168  }
   0xd   : > { %s193_s21 = scalar_lea.vmem %s589_s0, %s426_s18  ;;  %459 = vmatpush3.bf16.msra.mxu0 %v488_v3  ;;  %v494_v18 = vld [vmem:[%s592_s3 + $0x8] sm:$0xff]   ;;  %v495_v19 = vld [vmem:[%s592_s3] sm:$0xff]  }
   0xe   : > { %v446_v0 = vld [vmem:[%s193_s21] sm:$0xff]   ;;  %460 = vmatprep.subr.bf16.mxu0 %v508_v4  ;;  %s199_s21 = scalar_lea.vmem %s593_s4, %s426_s18 }
   0xf   : > { %v447_v1 = vunpack.c.l.bf16 %v446_v0  ;;  %v448_v2 = vunpack.c.h.bf16 %v446_v0  ;;  %v429_v28 = vld [vmem:[%s590_s1] ss:$0 sm:$0xff] }
  0x10   : > { %v430_v32 = vld [vmem:[%s591_s2] ss:$0 sm:$0xff] }
  0x11   : > { %208 = vadd.xlane.f32.xlu0 %v447_v1  ;;  %461 = vmatpush3.bf16.msra.mxu0 %v489_v13 }
  0x12   : > { %462 = vmatprep.subr.bf16.mxu0 %v508_v4 }
  0x15   : > { %210 = vadd.xlane.f32.xlu0 %v448_v2  ;;  %463 = vmatpush3.bf16.msra.mxu0 %v490_v14 }
  0x16   : > { %464 = vmatprep.subr.bf16.mxu0 %v508_v4 }
  0x19   : > { %465 = vmatpush3.bf16.msra.mxu0 %v491_v15 }
  0x1a   : > { %466 = vmatprep.subr.bf16.mxu0 %v508_v4 }
  0x1d   : > { %467 = vmatpush3.bf16.msra.mxu0 %v492_v16 }
  0x1e   : > { %468 = vmatprep.subr.bf16.mxu0 %v508_v4 }
  0x21   : > { %469 = vmatpush3.bf16.msra.mxu0 %v493_v17 }
  0x22   : > { %470 = vmatprep.subr.bf16.mxu0 %v508_v4 }
  0x25   : > { %471 = vmatpush3.bf16.msra.mxu0 %v494_v18 }
  0x26   : > { %472 = vmatprep.subr.bf16.mxu0 %v508_v4 }
  0x29   : > { %473 = vmatpush3.bf16.msra.mxu0 %v495_v19 }
  0x9a   : > { %v209_v5 = vpop.xlane.xlu0 %208 }
  0x9b   : > { %v213_v6 = vmul.f32 0.0078125, %v209_v5 }
  0x9d   : > { %v215_v7 = vsub.f32 %v447_v1, %v213_v6 }
  0x9e   : > { %v211_v8 = vpop.xlane.xlu0 %210 }
  0x9f   : > { %v214_v9 = vmul.f32 0.0078125, %v211_v8  ;;  %v217_v10 = vmul.f32 %v215_v7, %v215_v7 }
  0xa1   : > { %v216_v11 = vsub.f32 %v448_v2, %v214_v9  ;;  %219 = vadd.xlane.f32.xlu1 %v217_v10 }
  0xa3   : > { %v218_v12 = vmul.f32 %v216_v11, %v216_v11 }
  0xa5   : > { %221 = vadd.xlane.f32.xlu1 %v218_v12 }
 0x12a   : > { %v220_v20 = vpop.xlane.xlu1 %219 }
 0x12b   : > { %v223_v21 = vmul.f32 0.0078125, %v220_v20 }
 0x12d   : > { %v225_v22 = vadd.f32 1e-05, %v223_v21 }
 0x12e   : > { %v222_v23 = vpop.xlane.xlu1 %221 }
 0x12f   : > { %496 = vrsqrt.f32 %v225_v22  ;;  %v224_v24 = vmul.f32 0.0078125, %v222_v23 }
 0x131   : > { %v226_v25 = vadd.f32 1e-05, %v224_v24 }
 0x133   : > { %498 = vrsqrt.f32 %v226_v25 }
 0x13c   : > { %v497_v26 = vpop.eup %496 }
 0x13d   : > { %v229_v27 = vmul.f32 %v497_v26, %v215_v7 }
 0x13f   : > { %v237_v31 = vmul.f32 %v429_v28, %v229_v27 }
 0x140   : > { %v499_v29 = vpop.eup %498 }
 0x141   : > { %v230_v30 = vmul.f32 %v499_v29, %v216_v11  ;;  %v245_v34 = vadd.f32 %v430_v32, %v237_v31 }
 0x143   : > { %v238_v33 = vmul.f32 %v429_v28, %v230_v30 }
 0x145   : > { %v246_v35 = vadd.f32 %v430_v32, %v238_v33 }
 0x147   : > { %v247_v36 = vpack.c.bf16 %v246_v35, %v245_v34 }
 0x149   : > { %475 = vmatmul.mubr.bf16.vlgmr.msra.gmra.mxu0 %v247_v36 }
 0x209   : > { %v346_v37 = vpop.f32.mrf.mxu0 }
 0x20a   : > { %v443_v38 = vpack.c.bf16 %v346_v37, %v346_v37 }
 0x20b   : > { %v476_v39 = vpop.f32.mrf.mxu0 }
 0x20c   : > { %362 = vst.msk [vmem:[%s199_s21] sm:$0xf] %vm361_vm1, %v443_v38 }
 0x20d   : > { %v349_v40 = vpop.f32.mrf.mxu0 }
 0x20e   : > { %v444_v41 = vpack.c.bf16 %v349_v40, %v349_v40 }
 0x20f   : > { %v477_v42 = vpop.f32.mrf.mxu0 }
 0x210   : > { %363 = vst.msk [vmem:[%s199_s21 + $0x4] sm:$0xf] %vm361_vm1, %v444_v41 }
 0x211 PF: > { %s14_s15 = sadd.s32 1, %s506_s15  }
 0x212   : > { %p11_p4 = scmp.ge.s32.totalorder %s14_s15, 4  }
 0x214   :  { %13 = sbr.rel (!%p11_p4) target bundleno = 1 (0x1), region = 66 }

// kernel: swin_forward.7
= control target key start
LH: loop header
LB: loop body
LE: loop exit
PB: predicated region body
PF: predicated region fallthrough
CT: control target
= control target key end

     0   :  { %s4390_s25 = smov 0   ;;  %s4938_s0 = inlined_call_operand.vmem [shape: bf16[8,16,32], index: 0, kind: input, shape index: {}]   ;;  %s4939_s1 = inlined_call_operand.vmem [shape: f32[1,32], index: 1, kind: input, shape index: {}]   ;;  %s4940_s2 = inlined_call_operand.vmem [shape: f32[1,32], index: 2, kind: input, shape index: {}]   ;;  %s4941_s3 = inlined_call_operand.vmem [shape: bf16[32,32], index: 3, kind: input, shape index: {}]   ;;  %s4942_s4 = inlined_call_operand.vmem [shape: bf16[32,32], index: 4, kind: input, shape index: {}]   ;;  %s4943_s5 = inlined_call_operand.vmem [shape: bf16[32,32], index: 5, kind: input, shape index: {}]   ;;  %s4944_s6 = inlined_call_operand.vmem [shape: bf16[1,32], index: 6, kind: input, shape index: {}]   ;;  %s4945_s7 = inlined_call_operand.vmem [shape: bf16[1,32], index: 7, kind: input, shape index: {}]   ;;  %s4946_s8 = inlined_call_operand.vmem [shape: bf16[1,32], index: 8, kind: input, shape index: {}]   ;;  %s4947_s9 = inlined_call_operand.vmem [shape: f32[2,16,16], index: 9, kind: input, shape index: {}]   ;;  %s4948_s10 = inlined_call_operand.vmem [shape: f32[4,16,16], index: 10, kind: input, shape index: {}]   ;;  %s4949_s11 = inlined_call_operand.vmem [shape: bf16[32,32], index: 11, kind: input, shape index: {}]   ;;  %s4950_s12 = inlined_call_operand.vmem [shape: bf16[1,32], index: 12, kind: input, shape index: {}]   ;;  %s4951_s13 = inlined_call_operand.vmem [shape: bf16[8,16,32], index: 13, kind: output, shape index: {}]  }
   0x1 LB: > { %s3606_s26 = sadd.s32 4294967295, %s4316_s25   ;;  %p3610_p0 = scmp.ge.s32.totalorder %s4316_s25, 1  ;;  %s4316_s25 = sphi %s4390_s25, %s23_s25  }
   0x2   : > { %p389_p1 = scmp.lt.s32.totalorder %s4316_s25, 3 }
   0x4   : > { %p390_p2 = pnand %p3610_p0, %p389_p1 }
   0x5   : > { %s3611_s27 = sshll.u32 (!%p390_p2), %s3606_s26, 2 }
   0x6   : > { %393 = sbr.rel (%p390_p2) target bundleno = 2068 (0x814), region = 72  ;;  %p436_p3 = scmp.lt.s32.totalorder (!%p390_p2), %s3611_s27, 7 }
   0xb   : > { %s4953_s27 = smov (!%p436_p3, %s3611_s27), 7  ;;  %vm468_vm0 = vcmask 261120   ;;  %v4222_v60 = vld [vmem:[%s4941_s3 + $0x8] sm:$0xff]   ;;  %v4223_v61 = vld [vmem:[%s4941_s3] sm:$0xff]   ;;  %vm4319_vm1 = vmmov 0   ;;  %vm2055_vm2 = vcmask 130048  }
   0xc   : > { %s3669_s28 = sshll.u32 %s4953_s27, 3  ;;  %3898 = vmatprep.subr.bf16.mxu1 %v4222_v60  ;;  %3754 = vmatprep.subr.bf16.mxu0 %v4222_v60  ;;  %v4495_v62 = vld [vmem:[%s4942_s4 + $0x8] sm:$0xff]   ;;  %vm3539_vm3 = vcmask 257024  }
   0xd   : > { %s440_s14 = scalar_lea.vmem %s4938_s0, %s3669_s28  ;;  %3900 = vmatpush3.bf16.msra.mxu1 %v4222_v60  ;;  %3755 = vmatpush3.bf16.msra.mxu0 %v4222_v60  ;;  %v4501_v63 = vld [vmem:[%s4943_s5 + $0x8] sm:$0xff]   ;;  %s4911_s30 = scalar_lea.vmem %s4951_s13, %s3669_s28 }
   0xe   : > { %v3696_v0 = vld [vmem:[%s440_s14 + $0x10] sm:$0xff]   ;;  %v3697_v1 = vld [vmem:[%s440_s14 + $0x18] sm:$0xff]   ;;  %v3680_v6 = vld [vmem:[%s440_s14] sm:$0xff]   ;;  %3899 = vmatprep.subr.bf16.mxu1 %v4223_v61  ;;  %3756 = vmatprep.subr.bf16.mxu0 %v4223_v61 }
   0xf   : > { %v4406_v2 = vunpack.c.l.bf16 %v3696_v0  ;;  %v4408_v3 = vunpack.c.l.bf16 %v3697_v1  ;;  %v4410_v4 = vunpack.c.h.bf16 %v3696_v0  ;;  %v4412_v5 = vunpack.c.h.bf16 %v3697_v1  ;;  %v3695_v13 = vld [vmem:[%s440_s14 + $0x8] sm:$0xff]  }
  0x10   : > { %v4422_v11 = vunpack.c.l.bf16 %v3680_v6  ;;  %v4424_v12 = vunpack.c.h.bf16 %v3680_v6  ;;  %v4430_v16 = vunpack.c.l.bf16 %v3695_v13  ;;  %v4432_v17 = vunpack.c.h.bf16 %v3695_v13 }
  0x11   : > { %v481_v7 = vsel %vm468_vm0, %v4406_v2, 0.0  ;;  %v487_v8 = vsel %vm468_vm0, %v4408_v3, 0.0  ;;  %v484_v9 = vsel %vm468_vm0, %v4410_v4, 0.0  ;;  %v490_v10 = vsel %vm468_vm0, %v4412_v5, 0.0  ;;  %3901 = vmatpush3.bf16.msra.mxu1 %v4223_v61  ;;  %3757 = vmatpush3.bf16.msra.mxu0 %v4223_v61 }
  0x12   : > { %482 = vadd.xlane.f32.xlu0 %v481_v7  ;;  %488 = vadd.xlane.f32.xlu1 %v487_v8  ;;  %v469_v14 = vsel %vm468_vm0, %v4422_v11, 0.0  ;;  %v472_v15 = vsel %vm468_vm0, %v4424_v12, 0.0  ;;  %v475_v18 = vsel %vm468_vm0, %v4430_v16, 0.0  ;;  %v478_v19 = vsel %vm468_vm0, %v4432_v17, 0.0 }
  0x13   : > { %3766 = vmatprep.subr.bf16.mxu1 %v4495_v62  ;;  %3778 = vmatprep.subr.bf16.mxu0 %v4501_v63 }
  0x16   : > { %485 = vadd.xlane.f32.xlu0 %v484_v9  ;;  %491 = vadd.xlane.f32.xlu1 %v490_v10 }
  0x1a   : > { %470 = vadd.xlane.f32.xlu0 %v469_v14  ;;  %473 = vadd.xlane.f32.xlu1 %v472_v15 }
  0x1e   : > { %476 = vadd.xlane.f32.xlu0 %v475_v18  ;;  %479 = vadd.xlane.f32.xlu1 %v478_v19 }
  0x9b   : > { %v483_v20 = vpop.xlane.xlu0 %482  ;;  %v489_v21 = vpop.xlane.xlu1 %488 }
  0x9c   : > { %v498_v22 = vmul.f32 0.03125, %v483_v20  ;;  %v500_v23 = vmul.f32 0.03125, %v489_v21 }
  0x9e   : > { %v4439_v24 = vsub.f32 %v4406_v2, %v498_v22  ;;  %v4442_v25 = vsub.f32 %v4408_v3, %v500_v23 }
  0x9f   : > { %v486_v26 = vpop.xlane.xlu0 %485  ;;  %v492_v27 = vpop.xlane.xlu1 %491 }
  0xa0   : > { %v499_v28 = vmul.f32 0.03125, %v486_v26  ;;  %v501_v29 = vmul.f32 0.03125, %v492_v27  ;;  %v514_v30 = vmul.f32 %v4439_v24, %v4439_v24  ;;  %v516_v31 = vmul.f32 %v4442_v25, %v4442_v25 }
  0xa2   : > { %v4449_v32 = vsub.f32 %v4410_v4, %v499_v28  ;;  %v4452_v33 = vsub.f32 %v4412_v5, %v501_v29  ;;  %v530_v34 = vsel %vm468_vm0, %v514_v30, 0.0  ;;  %v536_v37 = vsel %vm468_vm0, %v516_v31, 0.0 }
  0xa3   : > { %531 = vadd.xlane.f32.xlu0 %v530_v34  ;;  %v471_v35 = vpop.xlane.xlu0 %470  ;;  %v474_v36 = vpop.xlane.xlu1 %473 }
  0xa4   : > { %v494_v38 = vmul.f32 0.03125, %v471_v35  ;;  %v515_v39 = vmul.f32 %v4449_v32, %v4449_v32  ;;  %v495_v40 = vmul.f32 0.03125, %v474_v36  ;;  %v517_v41 = vmul.f32 %v4452_v33, %v4452_v33 }
  0xa6   : > { %v4461_v42 = vsub.f32 %v4422_v11, %v494_v38  ;;  %v533_v43 = vsel %vm468_vm0, %v515_v39, 0.0  ;;  %v4465_v44 = vsub.f32 %v4424_v12, %v495_v40  ;;  %v539_v46 = vsel %vm468_vm0, %v517_v41, 0.0  ;;  %v3617_v38 = vld [vmem:[%s4939_s1] ss:$0 sm:$0xff] }
  0xa7   : > { %534 = vadd.xlane.f32.xlu1 %v533_v43  ;;  %537 = vadd.xlane.f32.xlu0 %v536_v37  ;;  %v477_v45 = vpop.xlane.xlu0 %476  ;;  %v480_v47 = vpop.xlane.xlu1 %479 }
  0xa8   : > { %v496_v48 = vmul.f32 0.03125, %v477_v45  ;;  %v497_v49 = vmul.f32 0.03125, %v480_v47  ;;  %v510_v50 = vmul.f32 %v4461_v42, %v4461_v42  ;;  %v511_v51 = vmul.f32 %v4465_v44, %v4465_v44  ;;  %v3618_v45 = vld [vmem:[%s4940_s2] ss:$0 sm:$0xff] }
  0xaa   : > { %v4473_v52 = vsub.f32 %v4430_v16, %v496_v48  ;;  %v4476_v53 = vsub.f32 %v4432_v17, %v497_v49  ;;  %v518_v54 = vsel %vm468_vm0, %v510_v50, 0.0  ;;  %v521_v55 = vsel %vm468_vm0, %v511_v51, 0.0 }
  0xab   : > { %540 = vadd.xlane.f32.xlu1 %v539_v46  ;;  %519 = vadd.xlane.f32.xlu0 %v518_v54 }
  0xac   : > { %v512_v56 = vmul.f32 %v4473_v52, %v4473_v52  ;;  %v513_v57 = vmul.f32 %v4476_v53, %v4476_v53 }
  0xae   : > { %v524_v58 = vsel %vm468_vm0, %v512_v56, 0.0  ;;  %v527_v59 = vsel %vm468_vm0, %v513_v57, 0.0 }
  0xaf   : > { %522 = vadd.xlane.f32.xlu1 %v521_v55  ;;  %525 = vadd.xlane.f32.xlu0 %v524_v58 }
  0xb3   : > { %528 = vadd.xlane.f32.xlu1 %v527_v59 }
 0x12c   : > { %v532_v0 = vpop.xlane.xlu0 %531 }
 0x12d   : > { %v546_v1 = vmul.f32 0.03125, %v532_v0 }
 0x12f   : > { %v554_v6 = vadd.f32 1e-05, %v546_v1 }
 0x130   : > { %v535_v7 = vpop.xlane.xlu1 %534  ;;  %v538_v8 = vpop.xlane.xlu0 %537 }
 0x131   : > { %4230 = vrsqrt.f32 %v554_v6  ;;  %v547_v9 = vmul.f32 0.03125, %v535_v7  ;;  %v548_v10 = vmul.f32 0.03125, %v538_v8 }
 0x133   : > { %v555_v13 = vadd.f32 1e-05, %v547_v9  ;;  %v556_v14 = vadd.f32 1e-05, %v548_v10 }
 0x134   : > { %v541_v15 = vpop.xlane.xlu1 %540  ;;  %v520_v18 = vpop.xlane.xlu0 %519 }
 0x135   : > { %4232 = vrsqrt.f32 %v555_v13  ;;  %v549_v19 = vmul.f32 0.03125, %v541_v15  ;;  %v542_v20 = vmul.f32 0.03125, %v520_v18  ;;  %v4227_v18 = vld [vmem:[%s4943_s5] sm:$0xff]  }
 0x136   : > { %4234 = vrsqrt.f32 %v556_v14 }
 0x137   : > { %v557_v21 = vadd.f32 1e-05, %v549_v19  ;;  %v550_v22 = vadd.f32 1e-05, %v542_v20 }
 0x138   : > { %v523_v23 = vpop.xlane.xlu1 %522  ;;  %v526_v26 = vpop.xlane.xlu0 %525 }
 0x139   : > { %4236 = vrsqrt.f32 %v557_v21  ;;  %v543_v27 = vmul.f32 0.03125, %v523_v23  ;;  %v544_v28 = vmul.f32 0.03125, %v526_v26 }
 0x13a   : > { %4238 = vrsqrt.f32 %v550_v22 }
 0x13b   : > { %v551_v29 = vadd.f32 1e-05, %v543_v27  ;;  %v552_v30 = vadd.f32 1e-05, %v544_v28 }
 0x13c   : > { %v529_v31 = vpop.xlane.xlu1 %528 }
 0x13d   : > { %4240 = vrsqrt.f32 %v551_v29  ;;  %v545_v34 = vmul.f32 0.03125, %v529_v31 }
 0x13e   : > { %v4231_v35 = vpop.eup %4230  ;;  %4242 = vrsqrt.f32 %v552_v30 }
 0x13f   : > { %v553_v36 = vadd.f32 1e-05, %v545_v34  ;;  %v570_v37 = vmul.f32 %v4231_v35, %v4439_v24 }
 0x141   : > { %4244 = vrsqrt.f32 %v553_v36  ;;  %v584_v43 = vmul.f32 %v3617_v38, %v570_v37 }
 0x142   : > { %v4233_v39 = vpop.eup %4232 }
 0x143   : > { %v4235_v40 = vpop.eup %4234  ;;  %v571_v41 = vmul.f32 %v4233_v39, %v4449_v32  ;;  %v598_v24 = vadd.f32 %v3618_v45, %v584_v43 }
 0x144   : > { %v572_v46 = vmul.f32 %v4235_v40, %v4442_v25 }
 0x145   : > { %v585_v47 = vmul.f32 %v3617_v38, %v571_v41 }
 0x146   : > { %v4237_v48 = vpop.eup %4236  ;;  %v586_v54 = vmul.f32 %v3617_v38, %v572_v46 }
 0x147   : > { %v4239_v49 = vpop.eup %4238  ;;  %v599_v50 = vadd.f32 %v3618_v45, %v585_v47  ;;  %v573_v51 = vmul.f32 %v4237_v48, %v4452_v33  ;;  %v4225_v33 = vld [vmem:[%s4942_s4] sm:$0xff]  }
 0x148   : > { %v566_v55 = vmul.f32 %v4239_v49, %v4461_v42  ;;  %v600_v59 = vadd.f32 %v3618_v45, %v586_v54 }
 0x149   : > { %v604_v56 = vpack.c.bf16 %v599_v50, %v598_v24  ;;  %v587_v57 = vmul.f32 %v3617_v38, %v573_v51 }
 0x14a   : > { %v4241_v32 = vpop.eup %4240  ;;  %v580_v61 = vmul.f32 %v3617_v38, %v566_v55 }
 0x14b   : > { %v4243_v58 = vpop.eup %4242  ;;  %3762 = vmatprep.mubr.msk.bf16.mxu1 %vm468_vm0, %v604_v56  ;;  %v601_v60 = vadd.f32 %v3618_v45, %v587_v57  ;;  %v567_v25 = vmul.f32 %v4241_v32, %v4465_v44 }
 0x14c   : > { %v568_v0 = vmul.f32 %v4243_v58, %v4473_v52  ;;  %v594_v7 = vadd.f32 %v3618_v45, %v580_v61 }
 0x14d   : > { %v605_v1 = vpack.c.bf16 %v601_v60, %v600_v59  ;;  %v581_v6 = vmul.f32 %v3617_v38, %v567_v25 }
 0x14e   : > { %v4245_v42 = vpop.eup %4244  ;;  %v582_v10 = vmul.f32 %v3617_v38, %v568_v0 }
 0x14f   : > { %3763 = vmatmul.mubr.msk.bf16.vlgmr.msra.gmra.mxu1 %vm468_vm0, %v605_v1  ;;  %v595_v8 = vadd.f32 %v3618_v45, %v581_v6  ;;  %v569_v9 = vmul.f32 %v4245_v42, %v4476_v53  ;;  %v612_v53 = vlaneseq }
 0x150   : > { %3767 = vmatpush3.bf16.msra.mxu1 %v4495_v62  ;;  %v596_v52 = vadd.f32 %v3618_v45, %v582_v10  ;;  %v1101_v62 = vld [vmem:[%s4945_s7] sm:$0x1] }
 0x151   : > { %v602_v44 = vpack.c.bf16 %v595_v8, %v594_v7  ;;  %3768 = vmatprep.subr.bf16.mxu1 %v4225_v33  ;;  %v583_v13 = vmul.f32 %v3617_v38, %v569_v9  ;;  %v613_v19 = vshrl.u32 %v612_v53, 7  ;;  %v1102_v21 = vunpack.c.l.bf16 %v1101_v62 }
 0x153   : > { %3758 = vmatprep.mubr.msk.bf16.mxu0 %vm468_vm0, %v602_v44  ;;  %3770 = vmatprep.mubr.msk.bf16.mxu1 %vm468_vm0, %v602_v44  ;;  %v597_v14 = vadd.f32 %v3618_v45, %v583_v13  ;;  %v4544_v26 = vsub.s32 0, %v613_v19 }
 0x154   : > { %3769 = vmatpush3.bf16.msra.mxu1 %v4225_v33 }
 0x155   : > { %v603_v15 = vpack.c.bf16 %v597_v14, %v596_v52  ;;  %v1106_v28 = vrot.slane %v1102_v21, %v4544_v26 }
 0x157   : > { %3759 = vmatmul.mubr.msk.bf16.vlgmr.msra.gmra.mxu0 %vm468_vm0, %v603_v15  ;;  %3771 = vmatmul.mubr.msk.bf16.vlgmr.msra.gmra.mxu1 %vm468_vm0, %v603_v15 }
 0x158   : > { %3774 = vmatprep.mubr.msk.bf16.mxu1 %vm468_vm0, %v604_v56  ;;  %3779 = vmatpush3.bf16.msra.mxu0 %v4501_v63  ;;  %v610_v63 = vld [vmem:[%s4944_s6] sm:$0x1] }
 0x159   : > { %3782 = vmatprep.mubr.msk.bf16.mxu0 %vm468_vm0, %v602_v44  ;;  %3780 = vmatprep.subr.bf16.mxu0 %v4227_v18  ;;  %v611_v23 = vunpack.c.l.bf16 %v610_v63 }
 0x15b   : > { %v615_v30 = vrot.slane %v611_v23, %v4544_v26 }
 0x15c   : > { %3781 = vmatpush3.bf16.msra.mxu0 %v4227_v18 }
 0x15f   : > { %3775 = vmatmul.mubr.msk.bf16.gmra.mxu1 %vm468_vm0, %v605_v1  ;;  %3783 = vmatmul.mubr.msk.bf16.vlgmr.msra.gmra.mxu0 %vm468_vm0, %v603_v15 }
 0x160   : > { %3786 = vmatprep.mubr.msk.bf16.mxu0 %vm468_vm0, %v604_v56 }
 0x167   : > { %3787 = vmatmul.mubr.msk.bf16.gmra.mxu0 %vm468_vm0, %v605_v1 }
 0x20f   : > { %v3764_v20 = vpop.f32.mrf.mxu1 }
 0x210   : > { %v699_v59 = vadd.f32 %v3764_v20, %v615_v30 }
 0x211   : > { %v690_v22 = vpop.f32.mrf.mxu1 }
 0x212   : > { %v691_v61 = vadd.f32 %v690_v22, %v615_v30  ;;  %v4318_v22 = vmov 0.0  }
 0x213   : > { %v3765_v27 = vpop.f32.mrf.mxu1  ;;  %3790 = vmatprep.subr.bf16.mxu1 %v4318_v22  ;;  %3802 = vmatprep.subr.bf16.mxu0 %v4318_v22 }
 0x214   : > { %v702_v6 = vadd.f32 %v3765_v27, %v615_v30  ;;  %3792 = vmatprep.mubr.msk.bf16.mxu1 %vm4319_vm1, %v4318_v22  ;;  %3804 = vmatprep.mubr.msk.bf16.mxu0 %vm4319_vm1, %v4318_v22 }
 0x215   : > { %v693_v29 = vpop.f32.mrf.mxu1 }
 0x216   : > { %v694_v7 = vadd.f32 %v693_v29, %v615_v30 }
 0x217   : > { %v3760_v31 = vpop.f32.mrf.mxu0  ;;  %v3772_v34 = vpop.f32.mrf.mxu1 }
 0x218   : > { %v683_v35 = vadd.f32 %v3760_v31, %v615_v30  ;;  %v1162_v36 = vadd.f32 %v3772_v34, %v1106_v28 }
 0x219   : > { %v674_v37 = vpop.f32.mrf.mxu0  ;;  %v1153_v38 = vpop.f32.mrf.mxu1 }
 0x21a   : > { %v675_v39 = vadd.f32 %v674_v37, %v615_v30  ;;  %v1154_v40 = vadd.f32 %v1153_v38, %v1106_v28  ;;  %v3936_v41 = vpack.i.bf16 %v683_v35, %v1162_v36 }
 0x21b   : > { %v3761_v43 = vpop.f32.mrf.mxu0  ;;  %v3773_v45 = vpop.f32.mrf.mxu1 }
 0x21c   : > { %v686_v46 = vadd.f32 %v3761_v43, %v615_v30  ;;  %v1165_v47 = vadd.f32 %v3773_v45, %v1106_v28  ;;  %3937 = vxpose.xlu1.b32.start [1/2] (short) (narrow) %v3936_v41, 32  ;;  %v3912_v48 = vpack.i.bf16 %v675_v39, %v1154_v40 }
 0x21d   : > { %v677_v49 = vpop.f32.mrf.mxu0  ;;  %v1156_v24 = vpop.f32.mrf.mxu1 }
 0x21e   : > { %v3938_v50 = vpack.i.bf16 %v686_v46, %v1165_v47  ;;  %v678_v51 = vadd.f32 %v677_v49, %v615_v30  ;;  %v1157_v54 = vadd.f32 %v1156_v24, %v1106_v28  ;;  %3913 = vxpose.xlu0.b32.start [1/2] (short) (narrow) %v3912_v48, 32 }
 0x21f   : > { %v3776_v55 = vpop.f32.mrf.mxu1  ;;  %v4550_v37 = vpop.f32.mrf.mxu0 }
 0x220   : > { %v3914_v56 = vpack.i.bf16 %v678_v51, %v1157_v54  ;;  %3939 = vxpose.xlu1.b32.end [2/2] (short) (narrow) %v3938_v50, 32  ;;  %v1178_v32 = vadd.f32 %v3776_v55, %v1106_v28 }
 0x221   : > { %v1169_v57 = vpop.f32.mrf.mxu1  ;;  %v1632_v45 = vpop.f32.mrf.mxu0 }
 0x222   : > { %3915 = vxpose.xlu0.b32.end [2/2] (short) (narrow) %v3914_v56, 32  ;;  %v1170_v60 = vadd.f32 %v1169_v57, %v1106_v28  ;;  %v3984_v1 = vpack.i.bf16 %v699_v59, %v1178_v32 }
 0x223   : > { %v3777_v58 = vpop.f32.mrf.mxu1  ;;  %v3785_v54 = vpop.f32.mrf.mxu0 }
 0x224   : > { %v1181_v0 = vadd.f32 %v3777_v58, %v1106_v28  ;;  %v3960_v42 = vpack.i.bf16 %v691_v61, %v1170_v60 }
 0x225   : > { %v1172_v25 = vpop.f32.mrf.mxu1 }
 0x226   : > { %v1173_v33 = vadd.f32 %v1172_v25, %v1106_v28  ;;  %v3986_v8 = vpack.i.bf16 %v702_v6, %v1181_v0 }
 0x228   : > { %v3962_v9 = vpack.i.bf16 %v694_v7, %v1173_v33 }
 0x229   : > { %3985 = vxpose.xlu1.b32.start [1/2] (short) (narrow) %v3984_v1, 32  ;;  %v1635_v1 = vpop.f32.mrf.mxu0 }
 0x22b   : > { %3961 = vxpose.xlu0.b32.start [1/2] (short) (narrow) %v3960_v42, 32 }
 0x22d   : > { %3987 = vxpose.xlu1.b32.end [2/2] (short) (narrow) %v3986_v8, 32  ;;  %v3788_v8 = vpop.f32.mrf.mxu0 }
 0x22f   : > { %3963 = vxpose.xlu0.b32.end [2/2] (short) (narrow) %v3962_v9, 32 }
 0x298   : > { %v3940_v10 = vpop.trf.xlu1 }
 0x299   : > { %v3941_v18 = vunpack.i.l.bf16 %v3940_v10  ;;  %v3944_v38 = vunpack.i.h.bf16 %v3940_v10 }
 0x29a   : > { %v3916_v44 = vpop.trf.xlu0 }
 0x29b   : > { %4009 = vxpose.xlu0.b32.start [1/2] (short) (narrow) %v3916_v44, 16 }
 0x29c   : > { %v3945_v13 = vpop.trf.xlu1 }
 0x29d   : > { %v3946_v21 = vunpack.i.l.bf16 %v3945_v13  ;;  %v3949_v46 = vunpack.i.h.bf16 %v3945_v13  ;;  %v1580_v13 = vld [vmem:[%s4946_s8] sm:$0x1] }
 0x29e   : > { %v3921_v52 = vpop.trf.xlu0 }
 0x29f   : > { %4011 = vxpose.xlu0.b32.end [2/2] (short) (narrow) %v3921_v52, 16 }
 0x2a0   : > { %v3950_v14 = vpop.trf.xlu1 }
 0x2a1   : > { %v3951_v53 = vunpack.i.l.bf16 %v3950_v14  ;;  %v3954_v55 = vunpack.i.h.bf16 %v3950_v14  ;;  %v1648_v14 = vpop.f32.mrf.mxu0 }
 0x2a2   : > { %v3926_v15 = vpop.trf.xlu0 }
 0x2a3   : > { %v3927_v62 = vunpack.i.l.bf16 %v3926_v15  ;;  %v3930_v19 = vunpack.i.h.bf16 %v3926_v15 }
 0x2a4   : > { %v3955_v63 = vpop.trf.xlu1 }
 0x2a5   : > { %v3956_v20 = vunpack.i.l.bf16 %v3955_v63  ;;  %v4022_v27 = vpack.i.bf16 %v3941_v18, %v3927_v62  ;;  %v4036_v28 = vpack.i.bf16 %v3951_v53, %v3930_v19  ;;  %v3959_v32 = vunpack.i.h.bf16 %v3955_v63  ;;  %v3789_v62 = vpop.f32.mrf.mxu0 }
 0x2a6   : > { %v3931_v23 = vpop.trf.xlu0  ;;  %v1581_v18 = vunpack.c.l.bf16 %v1580_v13 }
 0x2a7   : > { %v3932_v29 = vunpack.i.l.bf16 %v3931_v23  ;;  %v3935_v30 = vunpack.i.h.bf16 %v3931_v23  ;;  %4023 = vxpose.xlu1.b32.start [1/2] (short) (narrow) %v4022_v27, 16  ;;  %4037 = vxpose.xlu0.b32.start [1/2] (short) (narrow) %v4036_v28, 16 }
 0x2a8   : > { %v3988_v31 = vpop.trf.xlu1  ;;  %v1585_v63 = vrot.slane %v1581_v18, %v4544_v26 }
 0x2a9   : > { %v4024_v34 = vpack.i.bf16 %v3946_v21, %v3932_v29  ;;  %v4038_v35 = vpack.i.bf16 %v3956_v20, %v3935_v30  ;;  %v3989_v50 = vunpack.i.l.bf16 %v3988_v31  ;;  %v3992_v52 = vunpack.i.h.bf16 %v3988_v31  ;;  %v1651_v21 = vpop.f32.mrf.mxu0 }
 0x2aa   : > { %v3964_v36 = vpop.trf.xlu0  ;;  %v1649_v20 = vadd.f32 %v1648_v14, %v1585_v63  ;;  %v1633_v27 = vadd.f32 %v1632_v45, %v1585_v63  ;;  %v1652_v28 = vadd.f32 %v1651_v21, %v1585_v63  ;;  %v1641_v29 = vadd.f32 %v4550_v37, %v1585_v63 }
 0x2ab   : > { %v3965_v39 = vunpack.i.l.bf16 %v3964_v36  ;;  %4025 = vxpose.xlu1.b32.end [2/2] (short) (narrow) %v4024_v34, 16  ;;  %4039 = vxpose.xlu0.b32.end [2/2] (short) (narrow) %v4038_v35, 16  ;;  %v3968_v51 = vunpack.i.h.bf16 %v3964_v36  ;;  %v1636_v30 = vadd.f32 %v1635_v1, %v1585_v63  ;;  %v1644_v34 = vadd.f32 %v3785_v54, %v1585_v63 }
 0x2ac   : > { %v3993_v40 = vpop.trf.xlu1  ;;  %v4106_v31 = vpack.i.bf16 %v1641_v29, %v1633_v27  ;;  %v1657_v36 = vadd.f32 %v3788_v8, %v1585_v63 }
 0x2ad   : > { %v4050_v41 = vpack.i.bf16 %v3965_v39, %v3944_v38  ;;  %v3994_v59 = vunpack.i.l.bf16 %v3993_v40  ;;  %v4064_v25 = vpack.i.bf16 %v3989_v50, %v3968_v51  ;;  %v3997_v53 = vunpack.i.h.bf16 %v3993_v40 }
 0x2ae   : > { %v3969_v43 = vpop.trf.xlu0  ;;  %v4108_v35 = vpack.i.bf16 %v1644_v34, %v1636_v30  ;;  %v1660_v38 = vadd.f32 %v3789_v62, %v1585_v63 }
 0x2af   : > { %v3970_v47 = vunpack.i.l.bf16 %v3969_v43  ;;  %4051 = vxpose.xlu1.b32.start [1/2] (short) (narrow) %v4050_v41, 16  ;;  %v3973_v61 = vunpack.i.h.bf16 %v3969_v43 }
 0x2b0   : > { %v3998_v48 = vpop.trf.xlu1 }
 0x2b1   : > { %v4052_v49 = vpack.i.bf16 %v3970_v47, %v3949_v46  ;;  %v3999_v0 = vunpack.i.l.bf16 %v3998_v48  ;;  %v4066_v7 = vpack.i.bf16 %v3994_v59, %v3973_v61  ;;  %v4002_v19 = vunpack.i.h.bf16 %v3998_v48 }
 0x2b2   : > { %v3974_v24 = vpop.trf.xlu0 }
 0x2b3   : > { %v3975_v56 = vunpack.i.l.bf16 %v3974_v24  ;;  %4053 = vxpose.xlu1.b32.end [2/2] (short) (narrow) %v4052_v49, 16  ;;  %v3978_v33 = vunpack.i.h.bf16 %v3974_v24 }
 0x2b4   : > { %v4003_v57 = vpop.trf.xlu1 }
 0x2b5   : > { %v4078_v58 = vpack.i.bf16 %v3975_v56, %v3954_v55  ;;  %v4004_v10 = vunpack.i.l.bf16 %v4003_v57  ;;  %v4092_v44 = vpack.i.bf16 %v3999_v0, %v3978_v33  ;;  %v4007_v23 = vunpack.i.h.bf16 %v4003_v57 }
 0x2b6   : > { %v3979_v60 = vpop.trf.xlu0 }
 0x2b7   : > { %v3980_v6 = vunpack.i.l.bf16 %v3979_v60  ;;  %4079 = vxpose.xlu0.b32.start [1/2] (short) (narrow) %v4078_v58, 16  ;;  %4065 = vxpose.xlu1.b32.start [1/2] (short) (narrow) %v4064_v25, 16  ;;  %v3983_v9 = vunpack.i.h.bf16 %v3979_v60 }
 0x2b9   : > { %v4080_v42 = vpack.i.bf16 %v3980_v6, %v3959_v32  ;;  %v4094_v15 = vpack.i.bf16 %v4004_v10, %v3983_v9 }
 0x2bb   : > { %4081 = vxpose.xlu0.b32.end [2/2] (short) (narrow) %v4080_v42, 16  ;;  %4067 = vxpose.xlu1.b32.end [2/2] (short) (narrow) %v4066_v7, 16 }
 0x2bf   : > { %4093 = vxpose.xlu0.b32.start [1/2] (short) (narrow) %v4092_v44, 16  ;;  %1025 = vxpose.xlu1.b32.start [1/2] (short) (narrow) %v3992_v52, 16 }
 0x2c3   : > { %4095 = vxpose.xlu0.b32.end [2/2] (short) (narrow) %v4094_v15, 16  ;;  %1026 = vxpose.xlu1.b32.end [2/2] (short) (narrow) %v3997_v53, 16 }
 0x2c7   : > { %1057 = vxpose.xlu0.b32.start [1/2] (short) (narrow) %v4002_v19, 16  ;;  %1727 = vxpose.xlu1.b32.start [1/2] (short) (narrow) %v1649_v20, 32 }
 0x2cb   : > { %1058 = vxpose.xlu0.b32.end [2/2] (short) (narrow) %v4007_v23, 16  ;;  %1728 = vxpose.xlu1.b32.end [2/2] (short) (narrow) %v1652_v28, 32 }
 0x2cf   : > { %4107 = vxpose.xlu0.b32.start [1/2] (short) (narrow) %v4106_v31, 32 }
 0x2d3   : > { %4109 = vxpose.xlu0.b32.end [2/2] (short) (narrow) %v4108_v35, 32 }
 0x2dc   : > { %1759 = vxpose.xlu0.b32.start [1/2] (short) (narrow) %v1657_v36, 32 }
 0x2e0   : > { %1760 = vxpose.xlu0.b32.end [2/2] (short) (narrow) %v1660_v38, 32 }
 0x317   : > { %v4012_v39 = vpop.trf.xlu0 }
 0x318   : > { %v4013_v40 = vunpack.i.l.bf16 %v4012_v39  ;;  %v4016_v48 = vunpack.i.h.bf16 %v4012_v39 }
 0x31b   : > { %v4017_v41 = vpop.trf.xlu0 }
 0x31c   : > { %v4018_v43 = vunpack.i.l.bf16 %v4017_v41  ;;  %v4021_v49 = vunpack.i.h.bf16 %v4017_v41 }
 0x31e   : > { %v1568_v45 = vpack.c.bf16 %v4018_v43, %v4013_v40  ;;  %v1089_v57 = vpack.c.bf16 %v4021_v49, %v4016_v48 }
 0x320   : > { %v2060_v37 = vsel %vm2055_vm2, %v1568_v45, 0 }
 0x321   : > { %3791 = vmatpush3.bf16.xpose.msra.mxu1 %v2060_v37 }
 0x322   : > { %3796 = vmatprep.subr.bf16.mxu1 %v4318_v22 }
 0x323   : > { %v4026_v46 = vpop.trf.xlu1  ;;  %v4040_v47 = vpop.trf.xlu0 }
 0x324   : > { %v4030_v24 = vunpack.i.h.bf16 %v4026_v46  ;;  %v4027_v50 = vunpack.i.l.bf16 %v4026_v46  ;;  %v4044_v60 = vunpack.i.h.bf16 %v4040_v47  ;;  %v4041_v61 = vunpack.i.l.bf16 %v4040_v47 }
 0x327   : > { %v4031_v51 = vpop.trf.xlu1  ;;  %v4045_v56 = vpop.trf.xlu0 }
 0x328   : > { %v4035_v54 = vunpack.i.h.bf16 %v4031_v51  ;;  %v4032_v55 = vunpack.i.l.bf16 %v4031_v51  ;;  %3793 = vmatmul.mubr.msk.bf16.vlgmr.msra.gmra.mxu1 %vm2055_vm2, %v1089_v57  ;;  %v4049_v25 = vunpack.i.h.bf16 %v4045_v56  ;;  %v4046_v6 = vunpack.i.l.bf16 %v4045_v56 }
 0x329   : > { %3798 = vmatprep.mubr.msk.bf16.mxu1 %vm4319_vm1, %v4318_v22 }
 0x32a   : > { %v1569_v32 = vpack.c.bf16 %v4032_v55, %v4027_v50  ;;  %v1570_v58 = vpack.c.bf16 %v4035_v54, %v4030_v24  ;;  %v1571_v8 = vpack.c.bf16 %v4049_v25, %v4044_v60  ;;  %v1090_v44 = vpack.c.bf16 %v4046_v6, %v4041_v61 }
 0x32b   : > { %v4054_v59 = vpop.trf.xlu1 }
 0x32c   : > { %v2107_v0 = vsel %vm2055_vm2, %v1569_v32, 0  ;;  %v2154_v1 = vsel %vm2055_vm2, %v1570_v58, 0  ;;  %v4058_v33 = vunpack.i.h.bf16 %v4054_v59  ;;  %v4055_v42 = vunpack.i.l.bf16 %v4054_v59 }
 0x32d   : > { %3797 = vmatpush3.bf16.xpose.msra.mxu1 %v2107_v0  ;;  %3803 = vmatpush3.bf16.xpose.msra.mxu0 %v2154_v1  ;;  %v2201_v18 = vsel %vm2055_vm2, %v1571_v8, 0 }
 0x32e   : > { %3808 = vmatprep.subr.bf16.mxu1 %v4318_v22  ;;  %3814 = vmatprep.subr.bf16.mxu0 %v4318_v22 }
 0x32f   : > { %v4059_v7 = vpop.trf.xlu1 }
 0x330   : > { %v4063_v9 = vunpack.i.h.bf16 %v4059_v7  ;;  %v4060_v10 = vunpack.i.l.bf16 %v4059_v7 }
 0x332   : > { %v1091_v13 = vpack.c.bf16 %v4060_v10, %v4055_v42  ;;  %v1572_v14 = vpack.c.bf16 %v4063_v9, %v4058_v33  ;;  %v4624_v10 = vld [vmem:[%s4947_s9] sm:$0xff] }
 0x333   : > { %v4082_v52 = vpop.trf.xlu0  ;;  %v4068_v15 = vpop.trf.xlu1 }
 0x334   : > { %v4086_v53 = vunpack.i.h.bf16 %v4082_v52  ;;  %v4083_v62 = vunpack.i.l.bf16 %v4082_v52  ;;  %3799 = vmatmul.mubr.msk.bf16.vlgmr.msra.gmra.mxu1 %vm2055_vm2, %v1090_v44  ;;  %3805 = vmatmul.mubr.msk.bf16.vlgmr.msra.gmra.mxu0 %vm2055_vm2, %v1091_v13  ;;  %v2248_v19 = vsel %vm2055_vm2, %v1572_v14, 0  ;;  %v4072_v63 = vunpack.i.h.bf16 %v4068_v15  ;;  %v2452_v13 = vld [vmem:[%s4948_s10] sm:$0xff] }
 0x335   : > { %v4069_v20 = vunpack.i.l.bf16 %v4068_v15  ;;  %3809 = vmatpush3.bf16.xpose.msra.mxu1 %v2201_v18  ;;  %3815 = vmatpush3.bf16.xpose.msra.mxu0 %v2248_v19  ;;  %v4638_v19 = vld [vmem:[%s4947_s9 + $0x8] sm:$0xff] }
 0x336   : > { %3816 = vmatprep.mubr.msk.bf16.mxu0 %vm4319_vm1, %v4318_v22  ;;  %3810 = vmatprep.mubr.msk.bf16.mxu1 %vm4319_vm1, %v4318_v22 }
 0x337   : > { %v4087_v21 = vpop.trf.xlu0  ;;  %v4073_v23 = vpop.trf.xlu1  ;;  %3820 = vmatprep.subr.bf16.mxu1 %v4318_v22  ;;  %3826 = vmatprep.subr.bf16.mxu0 %v4318_v22 }
 0x338   : > { %v4091_v27 = vunpack.i.h.bf16 %v4087_v21  ;;  %v4088_v28 = vunpack.i.l.bf16 %v4087_v21  ;;  %v4077_v29 = vunpack.i.h.bf16 %v4073_v23  ;;  %v4074_v30 = vunpack.i.l.bf16 %v4073_v23  ;;  %v2454_v23 = vld [vmem:[%s4948_s10 + $0x10] sm:$0xff] }
 0x33a   : > { %v1092_v31 = vpack.c.bf16 %v4088_v28, %v4083_v62  ;;  %v1573_v34 = vpack.c.bf16 %v4091_v27, %v4086_v53  ;;  %v1093_v35 = vpack.c.bf16 %v4074_v30, %v4069_v20  ;;  %v1574_v38 = vpack.c.bf16 %v4077_v29, %v4072_v63  ;;  %v4643_v20 = vld [vmem:[%s4947_s9 + $0x10] sm:$0xff] }
 0x33b   : > { %v4096_v36 = vpop.trf.xlu0  ;;  %v1041_v39 = vpop.trf.xlu1 }
 0x33c   : > { %v2295_v40 = vsel %vm2055_vm2, %v1573_v34, 0  ;;  %v2342_v41 = vsel %vm2055_vm2, %v1574_v38, 0  ;;  %v4100_v43 = vunpack.i.h.bf16 %v4096_v36  ;;  %v4097_v45 = vunpack.i.l.bf16 %v4096_v36  ;;  %3811 = vmatmul.mubr.msk.bf16.vlgmr.msra.gmra.mxu1 %vm2055_vm2, %v1092_v31  ;;  %3817 = vmatmul.mubr.msk.bf16.vlgmr.msra.gmra.mxu0 %vm2055_vm2, %v1093_v35  ;;  %v2453_v34 = vld [vmem:[%s4948_s10 + $0x8] sm:$0xff] }
 0x33d   : > { %3821 = vmatpush3.bf16.xpose.msra.mxu1 %v2295_v40  ;;  %3827 = vmatpush3.bf16.xpose.msra.mxu0 %v2342_v41  ;;  %v2455_v40 = vld [vmem:[%s4948_s10 + $0x18] sm:$0xff] }
 0x33e   : > { %3822 = vmatprep.mubr.msk.bf16.mxu1 %vm4319_vm1, %v4318_v22  ;;  %3828 = vmatprep.mubr.msk.bf16.mxu0 %vm4319_vm1, %v4318_v22  ;;  %v4662_v41 = vld [vmem:[%s4947_s9 + $0x18] sm:$0xff] }
 0x33f   : > { %v4101_v46 = vpop.trf.xlu0  ;;  %v1042_v48 = vpop.trf.xlu1  ;;  %3832 = vmatprep.subr.bf16.mxu1 %v4318_v22  ;;  %3838 = vmatprep.subr.bf16.mxu0 %v4318_v22 }
 0x340   : > { %v4105_v37 = vunpack.i.h.bf16 %v4101_v46  ;;  %v4102_v47 = vunpack.i.l.bf16 %v4101_v46  ;;  %v1095_v24 = vpack.c.bf16 %v1042_v48, %v1041_v39 }
 0x342   : > { %v1094_v49 = vpack.c.bf16 %v4102_v47, %v4097_v45  ;;  %v1575_v50 = vpack.c.bf16 %v4105_v37, %v4100_v43 }
 0x343   : > { %v1073_v51 = vpop.trf.xlu0 }
 0x344   : > { %v2389_v54 = vsel %vm2055_vm2, %v1575_v50, 0  ;;  %3823 = vmatmul.mubr.msk.bf16.vlgmr.msra.gmra.mxu1 %vm2055_vm2, %v1094_v49  ;;  %3829 = vmatmul.mubr.msk.bf16.vlgmr.msra.gmra.mxu0 %vm2055_vm2, %v1095_v24 }
 0x345   : > { %3833 = vmatpush3.bf16.xpose.msra.mxu1 %v2389_v54  ;;  %3834 = vmatprep.mubr.msk.bf16.mxu1 %vm4319_vm1, %v4318_v22 }
 0x346   : > { %3844 = vmatprep.subr.bf16.mxu1 %v4318_v22  ;;  %3840 = vmatprep.mubr.msk.bf16.mxu0 %vm4319_vm1, %v4318_v22 }
 0x347   : > { %v1074_v55 = vpop.trf.xlu0 }
 0x348   : > { %v1096_v56 = vpack.c.bf16 %v1074_v55, %v1073_v51  ;;  %v2456_v55 = vld [vmem:[%s4948_s10 + $0x20] sm:$0xff] }
 0x34b   : > { %v4598_v57 = vpop.trf.xlu0 }
 0x34c   : > { %v4111_v32 = vunpack.i.l.bf16 %v4598_v57  ;;  %3835 = vmatmul.mubr.msk.bf16.vlgmr.msra.gmra.mxu1 %vm2055_vm2, %v1096_v56 }
 0x34d   : > { %3846 = vmatprep.mubr.msk.bf16.mxu1 %vm4319_vm1, %v4318_v22 }
 0x34e   : > { %1791 = vxpose.xlu0.b32.start [1/2] (short) (narrow) %v4111_v32, 16 }
 0x34f   : > { %v4602_v58 = vpop.trf.xlu0 }
 0x350   : > { %v4116_v59 = vunpack.i.l.bf16 %v4602_v58 }
 0x352   : > { %1792 = vxpose.xlu0.b32.end [2/2] (short) (narrow) %v4116_v59, 16 }
 0x353   : > { %v4607_v60 = vpop.trf.xlu0 }
 0x354   : > { %v4121_v25 = vunpack.i.l.bf16 %v4607_v60 }
 0x356   : > { %1823 = vxpose.xlu0.b32.start [1/2] (short) (narrow) %v4121_v25, 16 }
 0x357   : > { %v4610_v61 = vpop.trf.xlu0 }
 0x358   : > { %v4126_v0 = vunpack.i.l.bf16 %v4610_v61 }
 0x35a   : > { %1824 = vxpose.xlu0.b32.end [2/2] (short) (narrow) %v4126_v0, 16 }
 0x35b   : > { %v4613_v1 = vpop.trf.xlu0 }
 0x35f   : > { %v4615_v6 = vpop.trf.xlu0 }
 0x363   : > { %v4617_v33 = vpop.trf.xlu0 }
 0x367   : > { %v4619_v42 = vpop.trf.xlu0 }
 0x3ca   : > { %v1807_v7 = vpop.trf.xlu0 }
 0x3ce   : > { %v1808_v8 = vpop.trf.xlu0 }
 0x3cf   : > { %v2047_v9 = vpack.c.bf16 %v1808_v8, %v1807_v7 }
 0x3d1   : > { %3839 = vmatpush3.bf16.msra.mxu0 %v2047_v9 }
 0x3d2   : > { %3850 = vmatprep.subr.bf16.mxu0 %v4318_v22  ;;  %v1839_v29 = vpop.trf.xlu0 }
 0x3d6   : > { %v1840_v24 = vpop.trf.xlu0 }
 0x3d7   : > { %v2048_v56 = vpack.c.bf16 %v1840_v24, %v1839_v29 }
 0x3d9   : > { %3845 = vmatpush3.bf16.msra.mxu1 %v2048_v56 }
 0x3da   : > { %3856 = vmatprep.subr.bf16.mxu1 %v4318_v22 }
 0x3e8   : > { %v2096_v44 = vpop.f32.mrf.mxu1 }
 0x3e9   : > { %v2436_v52 = vadd.f32 %v4624_v10, %v2096_v44 }
 0x3ea   : > { %v3794_v14 = vpop.f32.mrf.mxu1 }
 0x3eb   : > { %v4631_v15 = vadd.f32 %v2452_v13, %v2436_v52 }
 0x3ec   : > { %v2099_v18 = vpop.f32.mrf.mxu1 }
 0x3ed   : > { %v2476_v53 = vsel %vm2055_vm2, %v4631_v15, -inf  ;;  %v2437_v27 = vadd.f32 %v4638_v19, %v2099_v18 }
 0x3ee   : > { %2477 = vmax.xlane.f32.xlu1 %v2476_v53  ;;  %v3795_v62 = vpop.f32.mrf.mxu1 }
 0x3ef   : > { %v4667_v46 = vadd.f32 %v2453_v34, %v2437_v27 }
 0x3f1   : > { %v2479_v0 = vsel %vm2055_vm2, %v4667_v46, -inf }
 0x3f4   : > { %v2143_v63 = vpop.f32.mrf.mxu1  ;;  %v2190_v21 = vpop.f32.mrf.mxu0 }
 0x3f5   : > { %v2440_v28 = vadd.f32 %v4624_v10, %v2190_v21  ;;  %v2438_v35 = vadd.f32 %v4643_v20, %v2143_v63 }
 0x3f6   : > { %v3800_v30 = vpop.f32.mrf.mxu1  ;;  %v3806_v31 = vpop.f32.mrf.mxu0 }
 0x3f7   : > { %v4654_v36 = vadd.f32 %v2454_v23, %v2440_v28  ;;  %v4671_v49 = vadd.f32 %v2452_v13, %v2438_v35  ;;  %v2458_v31 = vld [vmem:[%s4948_s10 + $0x30] sm:$0xff] }
 0x3f8   : > { %v2146_v38 = vpop.f32.mrf.mxu1  ;;  %v2193_v39 = vpop.f32.mrf.mxu0 }
 0x3f9   : > { %v2441_v43 = vadd.f32 %v4638_v19, %v2193_v39  ;;  %v2488_v45 = vsel %vm2055_vm2, %v4654_v36, -inf  ;;  %v2439_v50 = vadd.f32 %v4662_v41, %v2146_v38  ;;  %v2482_v44 = vsel %vm2055_vm2, %v4671_v49, -inf }
 0x3fa   : > { %v3807_v37 = vpop.f32.mrf.mxu0  ;;  %2489 = vmax.xlane.f32.xlu0 %v2488_v45  ;;  %v3801_v47 = vpop.f32.mrf.mxu1 }
 0x3fb   : > { %v4669_v48 = vadd.f32 %v2455_v40, %v2441_v43  ;;  %v4689_v18 = vadd.f32 %v2453_v34, %v2439_v50 }
 0x3fc   : > { %v2237_v51 = vpop.f32.mrf.mxu1  ;;  %v2284_v54 = vpop.f32.mrf.mxu0 }
 0x3fd   : > { %v2442_v32 = vadd.f32 %v4643_v20, %v2237_v51  ;;  %v2444_v59 = vadd.f32 %v4624_v10, %v2284_v54  ;;  %v2491_v25 = vsel %vm2055_vm2, %v4669_v48, -inf  ;;  %v2485_v30 = vsel %vm2055_vm2, %v4689_v18, -inf }
 0x3fe   : > { %v3818_v7 = vpop.f32.mrf.mxu0  ;;  %2492 = vmax.xlane.f32.xlu1 %v2491_v25  ;;  %2480 = vmax.xlane.f32.xlu0 %v2479_v0  ;;  %v3812_v8 = vpop.f32.mrf.mxu1 }
 0x3ff   : > { %v4683_v9 = vadd.f32 %v2456_v55, %v2444_v59  ;;  %v4687_v13 = vadd.f32 %v2454_v23, %v2442_v32  ;;  %v2457_v23 = vld [vmem:[%s4948_s10 + $0x28] sm:$0xff] }
 0x400   : > { %v2240_v52 = vpop.f32.mrf.mxu1  ;;  %v2287_v14 = vpop.f32.mrf.mxu0 }
 0x401   : > { %v2445_v53 = vadd.f32 %v4638_v19, %v2287_v14  ;;  %v2500_v62 = vsel %vm2055_vm2, %v4683_v9, -inf  ;;  %v2494_v27 = vsel %vm2055_vm2, %v4687_v13, -inf  ;;  %v2443_v34 = vadd.f32 %v4662_v41, %v2240_v52 }
 0x402   : > { %v3819_v63 = vpop.f32.mrf.mxu0  ;;  %2501 = vmax.xlane.f32.xlu0 %v2500_v62  ;;  %2483 = vmax.xlane.f32.xlu1 %v2482_v44  ;;  %v3813_v21 = vpop.f32.mrf.mxu1 }
 0x403   : > { %v4708_v39 = vadd.f32 %v2457_v23, %v2445_v53  ;;  %v4719_v56 = vadd.f32 %v2455_v40, %v2443_v34  ;;  %v4751_v34 = vpop.trf.xlu1 }
 0x404   : > { %v2331_v28 = vpop.f32.mrf.mxu1  ;;  %v2378_v29 = vpop.f32.mrf.mxu0 }
 0x405   : > { %v2446_v35 = vadd.f32 %v4643_v20, %v2331_v28  ;;  %v2448_v38 = vadd.f32 %v4624_v10, %v2378_v29  ;;  %v2503_v54 = vsel %vm2055_vm2, %v4708_v39, -inf  ;;  %v2497_v40 = vsel %vm2055_vm2, %v4719_v56, -inf }
 0x406   : > { %2486 = vmax.xlane.f32.xlu1 %v2485_v30  ;;  %2495 = vmax.xlane.f32.xlu0 %v2494_v27  ;;  %v3824_v43 = vpop.f32.mrf.mxu1  ;;  %v3830_v45 = vpop.f32.mrf.mxu0  ;;  %v4114_v29 = vunpack.i.h.bf16 %v4598_v57  ;;  %v4119_v30 = vunpack.i.h.bf16 %v4602_v58 }
 0x407   : > { %v4710_v37 = vadd.f32 %v2458_v31, %v2448_v38  ;;  %v4712_v47 = vadd.f32 %v2456_v55, %v2446_v35  ;;  %v2459_v55 = vld [vmem:[%s4948_s10 + $0x38] sm:$0xff]  ;;  %v4753_v35 = vpop.trf.xlu1 }
 0x408   : > { %v2334_v24 = vpop.f32.mrf.mxu1  ;;  %v2381_v50 = vpop.f32.mrf.mxu0 }
 0x409   : > { %v2449_v51 = vadd.f32 %v4638_v19, %v2381_v50  ;;  %v2512_v10 = vsel %vm2055_vm2, %v4710_v37, -inf  ;;  %v2447_v25 = vadd.f32 %v4662_v41, %v2334_v24  ;;  %v2506_v19 = vsel %vm2055_vm2, %v4712_v47, -inf }
 0x40a   : > { %2504 = vmax.xlane.f32.xlu1 %v2503_v54  ;;  %2513 = vmax.xlane.f32.xlu0 %v2512_v10  ;;  %v3825_v32 = vpop.f32.mrf.mxu1  ;;  %v3831_v59 = vpop.f32.mrf.mxu0 }
 0x40b   : > { %v4730_v8 = vadd.f32 %v2459_v55, %v2449_v51  ;;  %v4734_v14 = vadd.f32 %v2457_v23, %v2447_v25  ;;  %v4755_v38 = vpop.trf.xlu1 }
 0x40c   : > { %v2425_v0 = vpop.f32.mrf.mxu1 }
 0x40d   : > { %v2450_v7 = vadd.f32 %v4643_v20, %v2425_v0  ;;  %v2515_v62 = vsel %vm2055_vm2, %v4730_v8, -inf  ;;  %v2509_v27 = vsel %vm2055_vm2, %v4734_v14, -inf }
 0x40e   : > { %2498 = vmax.xlane.f32.xlu1 %v2497_v40  ;;  %2507 = vmax.xlane.f32.xlu0 %v2506_v19  ;;  %v3836_v44 = vpop.f32.mrf.mxu1 }
 0x40f   : > { %v4732_v52 = vadd.f32 %v2458_v31, %v2450_v7  ;;  %v4129_v31 = vunpack.i.h.bf16 %v4610_v61  ;;  %v4757_v43 = vpop.trf.xlu1 }
 0x410   : > { %v2428_v53 = vpop.f32.mrf.mxu1 }
 0x411   : > { %v2518_v63 = vsel %vm2055_vm2, %v4732_v52, -inf  ;;  %v2451_v20 = vadd.f32 %v4662_v41, %v2428_v53  ;;  %v4124_v41 = vunpack.i.h.bf16 %v4607_v60 }
 0x412   : > { %2516 = vmax.xlane.f32.xlu1 %v2515_v62  ;;  %2519 = vmax.xlane.f32.xlu0 %v2518_v63  ;;  %v3837_v21 = vpop.f32.mrf.mxu1 }
 0x413   : > { %v4743_v28 = vadd.f32 %v2459_v55, %v2451_v20 }
 0x415   : > { %v2521_v23 = vsel %vm2055_vm2, %v4743_v28, -inf }
 0x416   : > { %2510 = vmax.xlane.f32.xlu1 %v2509_v27 }
 0x41a   : > { %2522 = vmax.xlane.f32.xlu1 %v2521_v23 }
 0x43f   : > { %1855 = vxpose.xlu0.b32.start [1/2] (short) (narrow) %v4114_v29, 16 }
 0x443   : > { %1856 = vxpose.xlu0.b32.end [2/2] (short) (narrow) %v4119_v30, 16 }
 0x44d   : > { %1887 = vxpose.xlu1.b32.start [1/2] (short) (narrow) %v4124_v41, 16 }
 0x451   : > { %1888 = vxpose.xlu1.b32.end [2/2] (short) (narrow) %v4129_v31, 16 }
 0x477   : > { %v2478_v45 = vpop.xlane.xlu1 %2477 }
 0x478   : > { %v2524_v57 = vsub.f32 %v4631_v15, %v2478_v45 }
 0x47a   : > { %v2540_v24 = vmul.f32 1.442695, %v2524_v57 }
 0x47c   : > { %4246 = vpow2.f32 %v2540_v24 }
 0x483   : > { %v2490_v58 = vpop.xlane.xlu0 %2489 }
 0x484   : > { %v2528_v54 = vsub.f32 %v4654_v36, %v2490_v58 }
 0x487   : > { %v2493_v50 = vpop.xlane.xlu1 %2492  ;;  %v2481_v60 = vpop.xlane.xlu0 %2480 }
 0x488   : > { %v2529_v51 = vsub.f32 %v4669_v48, %v2493_v50  ;;  %v2525_v61 = vsub.f32 %v4667_v46, %v2481_v60  ;;  %v2548_v48 = vmul.f32 1.442695, %v2528_v54 }
 0x489   : > { %v4763_v32 = vpop.eup %4246 }
 0x48a   : > { %v2542_v10 = vmul.f32 1.442695, %v2525_v61  ;;  %v2550_v59 = vmul.f32 1.442695, %v2529_v51  ;;  %v2572_v0 = vsel %vm2055_vm2, %v4763_v32, 0.0 }
 0x48b   : > { %v2502_v55 = vpop.xlane.xlu0 %2501  ;;  %v2484_v25 = vpop.xlane.xlu1 %2483  ;;  %2573 = vadd.xlane.f32.xlu0 %v2572_v0 }
 0x48c   : > { %v2532_v19 = vsub.f32 %v4683_v9, %v2502_v55  ;;  %v2526_v15 = vsub.f32 %v4671_v49, %v2484_v25  ;;  %4248 = vpow2.f32 %v2542_v10 }
 0x48d   : > { %4250 = vpow2.f32 %v2550_v59 }
 0x48e   : > { %v2544_v7 = vmul.f32 1.442695, %v2526_v15  ;;  %v2556_v46 = vmul.f32 1.442695, %v2532_v19 }
 0x48f   : > { %v2487_v36 = vpop.xlane.xlu1 %2486  ;;  %v2496_v40 = vpop.xlane.xlu0 %2495 }
 0x490   : > { %v2527_v44 = vsub.f32 %v4689_v18, %v2487_v36  ;;  %v2530_v53 = vsub.f32 %v4687_v13, %v2496_v40  ;;  %4252 = vpow2.f32 %v2544_v7 }
 0x491   : > { %4254 = vpow2.f32 %v2548_v48 }
 0x492   : > { %v2546_v9 = vmul.f32 1.442695, %v2527_v44  ;;  %4256 = vpow2.f32 %v2556_v46  ;;  %v2552_v49 = vmul.f32 1.442695, %v2530_v53 }
 0x493   : > { %v2505_v62 = vpop.xlane.xlu1 %2504  ;;  %v2514_v63 = vpop.xlane.xlu0 %2513 }
 0x494   : > { %v2533_v20 = vsub.f32 %v4708_v39, %v2505_v62  ;;  %4258 = vpow2.f32 %v2546_v9  ;;  %v2536_v21 = vsub.f32 %v4710_v37, %v2514_v63 }
 0x495   : > { %4260 = vpow2.f32 %v2552_v49 }
 0x496   : > { %v2558_v27 = vmul.f32 1.442695, %v2533_v20  ;;  %v2564_v18 = vmul.f32 1.442695, %v2536_v21 }
 0x497   : > { %v2499_v23 = vpop.xlane.xlu1 %2498  ;;  %v2508_v57 = vpop.xlane.xlu0 %2507 }
 0x498   : > { %4262 = vpow2.f32 %v2558_v27  ;;  %v2531_v13 = vsub.f32 %v4719_v56, %v2499_v23  ;;  %v2534_v60 = vsub.f32 %v4712_v47, %v2508_v57 }
 0x499   : > { %v4773_v29 = vpop.eup %4248  ;;  %4264 = vpow2.f32 %v2564_v18 }
 0x49a   : > { %v2575_v30 = vsel %vm2055_vm2, %v4773_v29, 0.0  ;;  %v4778_v41 = vpop.eup %4250  ;;  %v2554_v45 = vmul.f32 1.442695, %v2531_v13  ;;  %v2560_v55 = vmul.f32 1.442695, %v2534_v60 }
 0x49b   : > { %v2517_v31 = vpop.xlane.xlu1 %2516  ;;  %2576 = vadd.xlane.f32.xlu1 %v2575_v30  ;;  %v2587_v56 = vsel %vm2055_vm2, %v4778_v41, 0.0  ;;  %v2520_v0 = vpop.xlane.xlu0 %2519 }
 0x49c   : > { %v2537_v24 = vsub.f32 %v4730_v8, %v2517_v31  ;;  %4266 = vpow2.f32 %v2554_v45  ;;  %v2538_v7 = vsub.f32 %v4732_v52, %v2520_v0 }
 0x49d   : > { %v4780_v39 = vpop.eup %4252 }
 0x49e   : > { %v4782_v37 = vpop.eup %4254  ;;  %v2578_v58 = vsel %vm2055_vm2, %v4780_v39, 0.0  ;;  %v2566_v61 = vmul.f32 1.442695, %v2537_v24  ;;  %v2568_v40 = vmul.f32 1.442695, %v2538_v7 }
 0x49f   : > { %v4789_v50 = vpop.eup %4256  ;;  %2579 = vadd.xlane.f32.xlu0 %v2578_v58  ;;  %2588 = vadd.xlane.f32.xlu1 %v2587_v56  ;;  %v2584_v54 = vsel %vm2055_vm2, %v4782_v37, 0.0  ;;  %v2511_v59 = vpop.xlane.xlu1 %2510 }
 0x4a0   : > { %v2596_v8 = vsel %vm2055_vm2, %v4789_v50, 0.0  ;;  %4268 = vpow2.f32 %v2566_v61  ;;  %v2535_v25 = vsub.f32 %v4734_v14, %v2511_v59 }
 0x4a1   : > { %v4792_v51 = vpop.eup %4258  ;;  %4270 = vpow2.f32 %v2560_v55 }
 0x4a2   : > { %v4798_v10 = vpop.eup %4260  ;;  %v2581_v19 = vsel %vm2055_vm2, %v4792_v51, 0.0  ;;  %v2562_v46 = vmul.f32 1.442695, %v2535_v25 }
 0x4a3   : > { %2585 = vadd.xlane.f32.xlu0 %v2584_v54  ;;  %2597 = vadd.xlane.f32.xlu1 %v2596_v8  ;;  %v2590_v47 = vsel %vm2055_vm2, %v4798_v10, 0.0  ;;  %v2523_v36 = vpop.xlane.xlu1 %2522 }
 0x4a4   : > { %4272 = vpow2.f32 %v2562_v46  ;;  %v2539_v44 = vsub.f32 %v4743_v28, %v2523_v36 }
 0x4a5   : > { %v4805_v15 = vpop.eup %4262  ;;  %4274 = vpow2.f32 %v2568_v40 }
 0x4a6   : > { %v4807_v48 = vpop.eup %4264  ;;  %v2599_v14 = vsel %vm2055_vm2, %v4805_v15, 0.0  ;;  %v2570_v49 = vmul.f32 1.442695, %v2539_v44 }
 0x4a7   : > { %2591 = vadd.xlane.f32.xlu0 %v2590_v47  ;;  %2582 = vadd.xlane.f32.xlu1 %v2581_v19  ;;  %v2608_v53 = vsel %vm2055_vm2, %v4807_v48, 0.0 }
 0x4a8   : > { %4276 = vpow2.f32 %v2570_v49 }
 0x4a9   : > { %v4815_v9 = vpop.eup %4266 }
 0x4aa   : > { %v2593_v52 = vsel %vm2055_vm2, %v4815_v9, 0.0 }
 0x4ab   : > { %2600 = vadd.xlane.f32.xlu1 %v2599_v14 }
 0x4ad   : > { %v4819_v62 = vpop.eup %4268 }
 0x4ae   : > { %v2611_v63 = vsel %vm2055_vm2, %v4819_v62, 0.0  ;;  %v4823_v20 = vpop.eup %4270 }
 0x4af   : > { %2609 = vadd.xlane.f32.xlu1 %v2608_v53  ;;  %v2602_v28 = vsel %vm2055_vm2, %v4823_v20, 0.0 }
 0x4b1   : > { %v4827_v21 = vpop.eup %4272 }
 0x4b2   : > { %v2605_v27 = vsel %vm2055_vm2, %v4827_v21, 0.0  ;;  %v4831_v23 = vpop.eup %4274 }
 0x4b3   : > { %2594 = vadd.xlane.f32.xlu1 %v2593_v52  ;;  %v2614_v18 = vsel %vm2055_vm2, %v4831_v23, 0.0 }
 0x4b5   : > { %v4835_v13 = vpop.eup %4276 }
 0x4b6   : > { %v2617_v30 = vsel %vm2055_vm2, %v4835_v13, 0.0 }
 0x4b7   : > { %2612 = vadd.xlane.f32.xlu1 %v2611_v63 }
 0x4bb   : > { %2603 = vadd.xlane.f32.xlu1 %v2602_v28  ;;  %v1871_v31 = vpop.trf.xlu0 }
 0x4bf   : > { %2606 = vadd.xlane.f32.xlu1 %v2605_v27  ;;  %v1872_v57 = vpop.trf.xlu0 }
 0x4c0   : > { %v2049_v61 = vpack.c.bf16 %v1872_v57, %v1871_v31 }
 0x4c3   : > { %2615 = vadd.xlane.f32.xlu1 %v2614_v18 }
 0x4c7   : > { %2618 = vadd.xlane.f32.xlu1 %v2617_v30 }
 0x4c9   : > { %v1903_v45 = vpop.trf.xlu1 }
 0x4cd   : > { %v1904_v24 = vpop.trf.xlu1 }
 0x4ce   : > { %v2050_v53 = vpack.c.bf16 %v1904_v24, %v1903_v45 }
 0x4d4   : > { %1919 = vxpose.xlu0.b32.start [1/2] (short) (narrow) %v4751_v34, 16 }
 0x4d8   : > { %1920 = vxpose.xlu0.b32.end [2/2] (short) (narrow) %v4753_v35, 16 }
 0x4dc   : > { %1951 = vxpose.xlu0.b32.start [1/2] (short) (narrow) %v4755_v38, 16 }
 0x4e0   : > { %1952 = vxpose.xlu0.b32.end [2/2] (short) (narrow) %v4757_v43, 16 }
 0x4e4   : > { %2015 = vxpose.xlu0.b32.start [1/2] (short) (narrow) %v4617_v33, 16 }
 0x4e8   : > { %2016 = vxpose.xlu0.b32.end [2/2] (short) (narrow) %v4619_v42, 16 }
 0x4fa   : > { %1983 = vxpose.xlu1.b32.start [1/2] (short) (narrow) %v4613_v1, 16 }
 0x4fe   : > { %1984 = vxpose.xlu1.b32.end [2/2] (short) (narrow) %v4615_v6, 16 }
 0x514   : > { %v2574_v58 = vpop.xlane.xlu0 %2573 }
 0x515   : > { %4278 = vrcp.f32 %v2574_v58 }
 0x522   : > { %v4279_v33 = vpop.eup %4278 }
 0x523   : > { %v2621_v6 = vmul.f32 %v4279_v33, %v4763_v32 }
 0x524   : > { %v2577_v34 = vpop.xlane.xlu1 %2576 }
 0x525   : > { %4280 = vrcp.f32 %v2577_v34 }
 0x528   : > { %v2580_v35 = vpop.xlane.xlu0 %2579  ;;  %v2589_v38 = vpop.xlane.xlu1 %2588 }
 0x529   : > { %4282 = vrcp.f32 %v2589_v38 }
 0x52c   : > { %v2586_v43 = vpop.xlane.xlu0 %2585  ;;  %v2598_v56 = vpop.xlane.xlu1 %2597 }
 0x52d   : > { %4284 = vrcp.f32 %v2586_v43 }
 0x52e   : > { %4286 = vrcp.f32 %v2580_v35 }
 0x530   : > { %v2583_v42 = vpop.xlane.xlu1 %2582  ;;  %v2592_v55 = vpop.xlane.xlu0 %2591 }
 0x531   : > { %4288 = vrcp.f32 %v2583_v42 }
 0x532   : > { %v4281_v1 = vpop.eup %4280  ;;  %4290 = vrcp.f32 %v2592_v55 }
 0x533   : > { %v2623_v60 = vmul.f32 %v4281_v1, %v4773_v29 }
 0x534   : > { %v2601_v54 = vpop.xlane.xlu1 %2600 }
 0x535   : > { %v2652_v8 = vpack.c.bf16 %v2623_v60, %v2621_v6 }
 0x536   : > { %v4283_v59 = vpop.eup %4282 }
 0x537   : > { %3841 = vmatmul.mubr.msk.bf16.vlgmr.msra.gmra.mxu0 %vm2055_vm2, %v2652_v8  ;;  %v2631_v29 = vmul.f32 %v4283_v59, %v4778_v41 }
 0x538   : > { %v4850_v25 = vpop.xlane.xlu1 %2609  ;;  %3851 = vmatpush3.bf16.msra.mxu0 %v2049_v61  ;;  %3852 = vmatprep.mubr.msk.bf16.mxu0 %vm4319_vm1, %v4318_v22 }
 0x539   : > { %3862 = vmatprep.subr.bf16.mxu0 %v4318_v22 }
 0x53a   : > { %v4285_v47 = vpop.eup %4284 }
 0x53b   : > { %v2629_v32 = vmul.f32 %v4285_v47, %v4782_v37  ;;  %v4287_v0 = vpop.eup %4286 }
 0x53c   : > { %v2595_v19 = vpop.xlane.xlu1 %2594  ;;  %v2625_v36 = vmul.f32 %v4287_v0, %v4780_v39 }
 0x53d   : > { %4292 = vrcp.f32 %v2595_v19  ;;  %v2654_v7 = vpack.c.bf16 %v2631_v29, %v2629_v32 }
 0x53e   : > { %v4289_v46 = vpop.eup %4288  ;;  %4294 = vrcp.f32 %v2601_v54 }
 0x53f   : > { %3853 = vmatmul.mubr.msk.bf16.vlgmr.msra.gmra.mxu0 %vm2055_vm2, %v2654_v7  ;;  %v2627_v40 = vmul.f32 %v4289_v46, %v4792_v51  ;;  %4296 = vrcp.f32 %v2598_v56  ;;  %v4291_v37 = vpop.eup %4290 }
 0x540   : > { %v2613_v14 = vpop.xlane.xlu1 %2612  ;;  %3864 = vmatprep.mubr.msk.bf16.mxu0 %vm4319_vm1, %v4318_v22  ;;  %v2633_v51 = vmul.f32 %v4291_v37, %v4798_v10 }
 0x541   : > { %v2653_v44 = vpack.c.bf16 %v2627_v40, %v2625_v36 }
 0x543   : > { %3847 = vmatmul.mubr.msk.bf16.vlgmr.msra.gmra.mxu1 %vm2055_vm2, %v2653_v44 }
 0x544   : > { %v2604_v41 = vpop.xlane.xlu1 %2603  ;;  %3857 = vmatpush3.bf16.msra.mxu1 %v2050_v53  ;;  %3858 = vmatprep.mubr.msk.bf16.mxu1 %vm4319_vm1, %v4318_v22 }
 0x545   : > { %3868 = vmatprep.subr.bf16.mxu1 %v4318_v22 }
 0x548   : > { %v2607_v39 = vpop.xlane.xlu1 %2606 }
 0x549   : > { %4298 = vrcp.f32 %v2607_v39 }
 0x54a   : > { %v4293_v49 = vpop.eup %4292  ;;  %4300 = vrcp.f32 %v2604_v41 }
 0x54b   : > { %v2635_v52 = vmul.f32 %v4293_v49, %v4815_v9  ;;  %v4295_v18 = vpop.eup %4294 }
 0x54c   : > { %v2616_v63 = vpop.xlane.xlu1 %2615  ;;  %v4297_v31 = vpop.eup %4296  ;;  %v2639_v57 = vmul.f32 %v4295_v18, %v4805_v15 }
 0x54d   : > { %v2655_v28 = vpack.c.bf16 %v2635_v52, %v2633_v51  ;;  %v2637_v9 = vmul.f32 %v4297_v31, %v4789_v50 }
 0x54f   : > { %3859 = vmatmul.mubr.msk.bf16.vlgmr.msra.gmra.mxu1 %vm2055_vm2, %v2655_v28  ;;  %v2656_v58 = vpack.c.bf16 %v2639_v57, %v2637_v9 }
 0x550   : > { %v1935_v27 = vpop.trf.xlu0  ;;  %3870 = vmatprep.mubr.msk.bf16.mxu1 %vm4319_vm1, %v4318_v22  ;;  %v2619_v30 = vpop.xlane.xlu1 %2618 }
 0x551   : > { %4302 = vrcp.f32 %v2619_v30 }
 0x552   : > { %4304 = vrcp.f32 %v2616_v63 }
 0x553   : > { %4306 = vrcp.f32 %v2613_v14 }
 0x554   : > { %v1936_v45 = vpop.trf.xlu0  ;;  %4308 = vrcp.f32 %v4850_v25 }
 0x555   : > { %v2051_v10 = vpack.c.bf16 %v1936_v45, %v1935_v27 }
 0x556   : > { %v4299_v34 = vpop.eup %4298 }
 0x557   : > { %3863 = vmatpush3.bf16.msra.mxu0 %v2051_v10  ;;  %v4301_v35 = vpop.eup %4300  ;;  %v2643_v43 = vmul.f32 %v4299_v34, %v4827_v21 }
 0x558   : > { %v1967_v24 = vpop.trf.xlu0  ;;  %3874 = vmatprep.subr.bf16.mxu0 %v4318_v22  ;;  %v2641_v56 = vmul.f32 %v4301_v35, %v4823_v20 }
 0x55a   : > { %3865 = vmatmul.mubr.msk.bf16.vlgmr.msra.gmra.mxu0 %vm2055_vm2, %v2656_v58  ;;  %v2657_v33 = vpack.c.bf16 %v2643_v43, %v2641_v56 }
 0x55b   : > { %3876 = vmatprep.mubr.msk.bf16.mxu0 %vm4319_vm1, %v4318_v22 }
 0x55c   : > { %v1968_v38 = vpop.trf.xlu0 }
 0x55d   : > { %v2052_v15 = vpack.c.bf16 %v1968_v38, %v1967_v24 }
 0x55e   : > { %v4303_v42 = vpop.eup %4302 }
 0x55f   : > { %3869 = vmatpush3.bf16.msra.mxu1 %v2052_v15  ;;  %v4305_v1 = vpop.eup %4304  ;;  %v2651_v60 = vmul.f32 %v4303_v42, %v4835_v13 }
 0x560   : > { %v2031_v50 = vpop.trf.xlu0  ;;  %3880 = vmatprep.subr.bf16.mxu1 %v4318_v22  ;;  %v2649_v21 = vmul.f32 %v4305_v1, %v4831_v23  ;;  %v4307_v8 = vpop.eup %4306 }
 0x561   : > { %v4309_v59 = vpop.eup %4308  ;;  %v2647_v47 = vmul.f32 %v4307_v8, %v4819_v62 }
 0x562   : > { %3871 = vmatmul.mubr.msk.bf16.vlgmr.msra.gmra.mxu1 %vm2055_vm2, %v2657_v33  ;;  %v2659_v20 = vpack.c.bf16 %v2651_v60, %v2649_v21  ;;  %v2645_v32 = vmul.f32 %v4309_v59, %v4807_v48 }
 0x563   : > { %3882 = vmatprep.mubr.msk.bf16.mxu1 %vm4319_vm1, %v4318_v22 }
 0x564   : > { %v2032_v6 = vpop.trf.xlu0  ;;  %v2658_v13 = vpack.c.bf16 %v2647_v47, %v2645_v32 }
 0x565   : > { %v2054_v61 = vpack.c.bf16 %v2032_v6, %v2031_v50  ;;  %v4228_v6 = vld [vmem:[%s4949_s11 + $0x8] sm:$0xff]  }
 0x567   : > { %3881 = vmatpush3.bf16.msra.mxu1 %v2054_v61  ;;  %v4229_v61 = vld [vmem:[%s4949_s11] sm:$0xff]  }
 0x56a   : > { %3883 = vmatmul.mubr.msk.bf16.vlgmr.msra.gmra.mxu1 %vm2055_vm2, %v2659_v20 }
 0x576   : > { %v1999_v54 = vpop.trf.xlu1 }
 0x57a   : > { %v2000_v55 = vpop.trf.xlu1 }
 0x57b   : > { %v2053_v22 = vpack.c.bf16 %v2000_v55, %v1999_v54 }
 0x57d   : > { %3875 = vmatpush3.bf16.msra.mxu0 %v2053_v22 }
 0x57e   : > { %3886 = vmatprep.subr.bf16.mxu0 %v4228_v6 }
 0x580   : > { %3877 = vmatmul.mubr.msk.bf16.vlgmr.msra.gmra.mxu0 %vm2055_vm2, %v2658_v13 }
 0x581   : > { %3887 = vmatpush3.bf16.msra.mxu0 %v4228_v6 }
 0x582   : > { %3888 = vmatprep.subr.bf16.mxu0 %v4229_v61 }
 0x585   : > { %3889 = vmatpush3.bf16.msra.mxu0 %v4229_v61 }
 0x5f7   : > { %v2697_v23 = vpop.f32.mrf.mxu0 }
 0x5f9   : > { %v3842_v29 = vpop.f32.mrf.mxu0 }
 0x5fb   : > { %v2700_v19 = vpop.f32.mrf.mxu0 }
 0x5fd   : > { %v3843_v0 = vpop.f32.mrf.mxu0 }
 0x5ff   : > { %v2785_v7 = vpop.f32.mrf.mxu0 }
 0x600   : > { %v4130_v46 = vpack.i.bf16 %v2785_v7, %v2697_v23 }
 0x601   : > { %v3854_v25 = vpop.f32.mrf.mxu0 }
 0x602   : > { %4131 = vxpose.xlu1.b32.start [1/2] (short) (narrow) %v4130_v46, 16 }
 0x603   : > { %v2788_v14 = vpop.f32.mrf.mxu0  ;;  %v2741_v36 = vpop.f32.mrf.mxu1 }
 0x604   : > { %v4132_v40 = vpack.i.bf16 %v2788_v14, %v2700_v19 }
 0x605   : > { %v3855_v44 = vpop.f32.mrf.mxu0  ;;  %v3848_v62 = vpop.f32.mrf.mxu1 }
 0x606   : > { %4133 = vxpose.xlu1.b32.end [2/2] (short) (narrow) %v4132_v40, 16  ;;  %v3404_v62 = vld [vmem:[%s4950_s12] sm:$0x1] }
 0x607   : > { %v2744_v53 = vpop.f32.mrf.mxu1 }
 0x609   : > { %v3849_v48 = vpop.f32.mrf.mxu1 }
 0x60f   : > { %v2829_v41 = vpop.f32.mrf.mxu1 }
 0x610   : > { %v4144_v37 = vpack.i.bf16 %v2829_v41, %v2741_v36 }
 0x611   : > { %v3860_v39 = vpop.f32.mrf.mxu1 }
 0x612   : > { %4145 = vxpose.xlu0.b32.start [1/2] (short) (narrow) %v4144_v37, 16 }
 0x613   : > { %v2832_v49 = vpop.f32.mrf.mxu1 }
 0x614   : > { %v4146_v51 = vpack.i.bf16 %v2832_v49, %v2744_v53  ;;  %v3405_v53 = vunpack.c.l.bf16 %v3404_v62 }
 0x615   : > { %v3861_v52 = vpop.f32.mrf.mxu1 }
 0x616   : > { %4147 = vxpose.xlu0.b32.end [2/2] (short) (narrow) %v4146_v51, 16  ;;  %v3409_v48 = vrot.slane %v3405_v53, %v4544_v26 }
 0x61a   : > { %v2873_v63 = vpop.f32.mrf.mxu0 }
 0x61c   : > { %v3866_v28 = vpop.f32.mrf.mxu0 }
 0x61e   : > { %v2876_v27 = vpop.f32.mrf.mxu0 }
 0x620   : > { %v3867_v18 = vpop.f32.mrf.mxu0 }
 0x622   : > { %v2917_v30 = vpop.f32.mrf.mxu1 }
 0x624   : > { %v3872_v31 = vpop.f32.mrf.mxu1 }
 0x626   : > { %v2920_v45 = vpop.f32.mrf.mxu1 }
 0x628   : > { %v3873_v57 = vpop.f32.mrf.mxu1 }
 0x62a   : > { %v3005_v10 = vpop.f32.mrf.mxu1 }
 0x62b   : > { %v4172_v9 = vpack.i.bf16 %v3005_v10, %v2917_v30 }
 0x62c   : > { %v3884_v24 = vpop.f32.mrf.mxu1 }
 0x62d   : > { %4173 = vxpose.xlu0.b32.start [1/2] (short) (narrow) %v4172_v9, 16 }
 0x62e   : > { %v3008_v58 = vpop.f32.mrf.mxu1 }
 0x62f   : > { %v4174_v34 = vpack.i.bf16 %v3008_v58, %v2920_v45 }
 0x630   : > { %v3885_v35 = vpop.f32.mrf.mxu1 }
 0x631   : > { %4175 = vxpose.xlu0.b32.end [2/2] (short) (narrow) %v4174_v34, 16 }
 0x640   : > { %v2961_v38 = vpop.f32.mrf.mxu0 }
 0x641   : > { %v4158_v43 = vpack.i.bf16 %v2961_v38, %v2873_v63 }
 0x642   : > { %v3878_v15 = vpop.f32.mrf.mxu0 }
 0x643   : > { %4159 = vxpose.xlu1.b32.start [1/2] (short) (narrow) %v4158_v43, 16 }
 0x644   : > { %v2964_v56 = vpop.f32.mrf.mxu0 }
 0x645   : > { %v4160_v50 = vpack.i.bf16 %v2964_v56, %v2876_v27 }
 0x646   : > { %v3879_v33 = vpop.f32.mrf.mxu0 }
 0x647   : > { %4161 = vxpose.xlu1.b32.end [2/2] (short) (narrow) %v4160_v50, 16 }
 0x67e   : > { %v4134_v42 = vpop.trf.xlu1 }
 0x67f   : > { %4187 = vxpose.xlu1.b32.start [1/4] (short) (narrow) %v4134_v42, 16 }
 0x682   : > { %v4139_v1 = vpop.trf.xlu1 }
 0x683   : > { %4189 = vxpose.xlu1.b32.cont [2/4] (short) (narrow) %v4139_v1, 16 }
 0x68e   : > { %v4148_v60 = vpop.trf.xlu0 }
 0x68f   : > { %4191 = vxpose.xlu1.b32.cont [3/4] (short) (narrow) %v4148_v60, 16 }
 0x692   : > { %v4153_v21 = vpop.trf.xlu0 }
 0x693   : > { %4193 = vxpose.xlu1.b32.end [4/4] (short) (narrow) %v4153_v21, 16 }
 0x6a9   : > { %v4176_v20 = vpop.trf.xlu0 }
 0x6ad   : > { %v4181_v54 = vpop.trf.xlu0 }
 0x6bf   : > { %v4162_v8 = vpop.trf.xlu1 }
 0x6c0   : > { %4205 = vxpose.xlu0.b32.start [1/4] (short) (narrow) %v4162_v8, 16 }
 0x6c3   : > { %v4167_v59 = vpop.trf.xlu1 }
 0x6c4   : > { %4207 = vxpose.xlu0.b32.cont [2/4] (short) (narrow) %v4167_v59, 16 }
 0x6c8   : > { %4209 = vxpose.xlu0.b32.cont [3/4] (short) (narrow) %v4176_v20, 16 }
 0x6cc   : > { %4211 = vxpose.xlu0.b32.end [4/4] (short) (narrow) %v4181_v54, 16 }
 0x703   : > { %v4194_v55 = vpop.trf.xlu1 }
 0x704   : > { %v4198_v47 = vunpack.i.h.bf16 %v4194_v55  ;;  %v4195_v22 = vunpack.i.l.bf16 %v4194_v55 }
 0x707   : > { %v4199_v32 = vpop.trf.xlu1 }
 0x708   : > { %v4203_v13 = vunpack.i.h.bf16 %v4199_v32  ;;  %v4200_v23 = vunpack.i.l.bf16 %v4199_v32 }
 0x70a   : > { %v3396_v29 = vpack.c.bf16 %v4200_v23, %v4195_v22  ;;  %v3397_v19 = vpack.c.bf16 %v4203_v13, %v4198_v47 }
 0x70c   : > { %3890 = vmatprep.mubr.msk.bf16.mxu0 %vm468_vm0, %v3396_v29 }
 0x70d   : > { %3891 = vmatmul.mubr.msk.bf16.vlgmr.msra.gmra.mxu0 %vm468_vm0, %v3397_v19 }
 0x73c   : > { %v4212_v0 = vpop.trf.xlu0 }
 0x73d   : > { %v4216_v7 = vunpack.i.h.bf16 %v4212_v0  ;;  %v4213_v46 = vunpack.i.l.bf16 %v4212_v0 }
 0x740   : > { %v4217_v25 = vpop.trf.xlu0 }
 0x741   : > { %v4221_v14 = vunpack.i.h.bf16 %v4217_v25  ;;  %v4218_v36 = vunpack.i.l.bf16 %v4217_v25 }
 0x743   : > { %v3398_v40 = vpack.c.bf16 %v4218_v36, %v4213_v46  ;;  %v3399_v44 = vpack.c.bf16 %v4221_v14, %v4216_v7 }
 0x745   : > { %3894 = vmatprep.mubr.msk.bf16.mxu0 %vm468_vm0, %v3398_v40 }
 0x746   : > { %3895 = vmatmul.mubr.msk.bf16.gmra.mxu0 %vm468_vm0, %v3399_v44 }
 0x7cd   : > { %v3892_v41 = vpop.f32.mrf.mxu0 }
 0x7ce   : > { %v3477_v37 = vadd.f32 %v3892_v41, %v3409_v48 }
 0x7cf   : > { %v3468_v39 = vpop.f32.mrf.mxu0 }
 0x7d0   : > { %v3501_v49 = vadd.f32 %v4430_v16, %v3477_v37  ;;  %v3469_v51 = vadd.f32 %v3468_v39, %v3409_v48 }
 0x7d1   : > { %v3893_v52 = vpop.f32.mrf.mxu0 }
 0x7d2   : > { %v3499_v63 = vadd.f32 %v4422_v11, %v3469_v51  ;;  %v3480_v28 = vadd.f32 %v3893_v52, %v3409_v48  ;;  %v3673_v26 = vpack.c.bf16 %v3501_v49, %v3501_v49 }
 0x7d3   : > { %v3471_v27 = vpop.f32.mrf.mxu0 }
 0x7d4   : > { %v3671_v18 = vpack.c.bf16 %v3499_v63, %v3499_v63  ;;  %v3502_v16 = vadd.f32 %v4432_v17, %v3480_v28  ;;  %v3472_v30 = vadd.f32 %v3471_v27, %v3409_v48  ;;  %3542 = vst.msk [vmem:[%s4911_s30 + $0x8] sm:$0xf] %vm3539_vm3, %v3673_v26 }
 0x7d6   : > { %3540 = vst.msk [vmem:[%s4911_s30] sm:$0xf] %vm3539_vm3, %v3671_v18  ;;  %v3500_v11 = vadd.f32 %v4424_v12, %v3472_v30  ;;  %v3674_v31 = vpack.c.bf16 %v3502_v16, %v3502_v16 }
 0x7d8   : > { %v3672_v45 = vpack.c.bf16 %v3500_v11, %v3500_v11  ;;  %3543 = vst.msk [vmem:[%s4911_s30 + $0xc] sm:$0xf] %vm3539_vm3, %v3674_v31 }
 0x7da   : > { %3541 = vst.msk [vmem:[%s4911_s30 + $0x4] sm:$0xf] %vm3539_vm3, %v3672_v45 }
 0x806   : > { %v3896_v57 = vpop.f32.mrf.mxu0 }
 0x807   : > { %v3493_v10 = vadd.f32 %v3896_v57, %v3409_v48 }
 0x808   : > { %v3484_v9 = vpop.f32.mrf.mxu0 }
 0x809   : > { %v3485_v17 = vadd.f32 %v3484_v9, %v3409_v48  ;;  %v3505_v24 = vadd.f32 %v4408_v3, %v3493_v10 }
 0x80a   : > { %v3897_v58 = vpop.f32.mrf.mxu0 }
 0x80b   : > { %v3503_v12 = vadd.f32 %v4406_v2, %v3485_v17  ;;  %v3496_v34 = vadd.f32 %v3897_v58, %v3409_v48  ;;  %v3677_v15 = vpack.c.bf16 %v3505_v24, %v3505_v24 }
 0x80c   : > { %v3487_v35 = vpop.f32.mrf.mxu0 }
 0x80d   : > { %v3675_v38 = vpack.c.bf16 %v3503_v12, %v3503_v12  ;;  %v3488_v43 = vadd.f32 %v3487_v35, %v3409_v48  ;;  %v3506_v56 = vadd.f32 %v4412_v5, %v3496_v34  ;;  %3546 = vst.msk [vmem:[%s4911_s30 + $0x18] sm:$0xf] %vm3539_vm3, %v3677_v15 }
 0x80f   : > { %3544 = vst.msk [vmem:[%s4911_s30 + $0x10] sm:$0xf] %vm3539_vm3, %v3675_v38  ;;  %v3504_v50 = vadd.f32 %v4410_v4, %v3488_v43  ;;  %v3678_v42 = vpack.c.bf16 %v3506_v56, %v3506_v56 }
 0x811   : > { %v3676_v33 = vpack.c.bf16 %v3504_v50, %v3504_v50  ;;  %3547 = vst.msk [vmem:[%s4911_s30 + $0x1c] sm:$0xf] %vm3539_vm3, %v3678_v42 }
 0x813   : > { %3545 = vst.msk [vmem:[%s4911_s30 + $0x14] sm:$0xf] %vm3539_vm3, %v3676_v33 }
 0x814 PF: > { %s23_s25 = sadd.s32 1, %s4316_s25  }
 0x815   : > { %p20_p4 = scmp.ge.s32.totalorder %s23_s25, 4  }
 0x817   :  { %22 = sbr.rel (!%p20_p4) target bundleno = 1 (0x1), region = 102 }

// kernel: swin_forward.10
= control target key start
LH: loop header
LB: loop body
LE: loop exit
PB: predicated region body
PF: predicated region fallthrough
CT: control target
= control target key end

     0   :  { %s2388_s21 = smov 0   ;;  %s2628_s0 = inlined_call_operand.vmem [shape: bf16[2,16,64], index: 0, kind: input, shape index: {}]   ;;  %s2629_s1 = inlined_call_operand.vmem [shape: f32[1,64], index: 1, kind: input, shape index: {}]   ;;  %s2630_s2 = inlined_call_operand.vmem [shape: f32[1,64], index: 2, kind: input, shape index: {}]   ;;  %s2631_s3 = inlined_call_operand.vmem [shape: bf16[64,64], index: 3, kind: input, shape index: {}]   ;;  %s2632_s4 = inlined_call_operand.vmem [shape: bf16[64,64], index: 4, kind: input, shape index: {}]   ;;  %s2633_s5 = inlined_call_operand.vmem [shape: bf16[64,64], index: 5, kind: input, shape index: {}]   ;;  %s2634_s6 = inlined_call_operand.vmem [shape: bf16[1,64], index: 6, kind: input, shape index: {}]   ;;  %s2635_s7 = inlined_call_operand.vmem [shape: bf16[1,64], index: 7, kind: input, shape index: {}]   ;;  %s2636_s8 = inlined_call_operand.vmem [shape: bf16[1,64], index: 8, kind: input, shape index: {}]   ;;  %s2637_s9 = inlined_call_operand.vmem [shape: f32[4,16,16], index: 9, kind: input, shape index: {}]   ;;  %s2638_s10 = inlined_call_operand.vmem [shape: bf16[64,64], index: 10, kind: input, shape index: {}]   ;;  %s2639_s11 = inlined_call_operand.vmem [shape: bf16[1,64], index: 11, kind: input, shape index: {}]   ;;  %s2640_s12 = inlined_call_operand.vmem [shape: bf16[2,16,64], index: 12, kind: output, shape index: {}]  }
   0x1 LB: > { %s1982_s22 = sadd.s32 4294967295, %s2319_s21   ;;  %p1986_p0 = scmp.ge.s32.totalorder %s2319_s21, 1  ;;  %s2319_s21 = sphi %s2388_s21, %s22_s21  }
   0x2   : > { %p362_p1 = scmp.lt.s32.totalorder %s2319_s21, 3 }
   0x4   : > { %p363_p2 = pnand %p1986_p0, %p362_p1 }
   0x5   : > { %p404_p3 = scmp.lt.s32.totalorder (!%p363_p2), %s1982_s22, 1 }
   0x6   : > { %366 = sbr.rel (%p363_p2) target bundleno = 2224 (0x8b0), region = 68 }
   0xb   : > { %s2642_s22 = smov (!%p404_p3, %s1982_s22), 1  ;;  %vm421_vm0 = vcmask 523264   ;;  %v2261_v15 = vld [vmem:[%s2631_s3 + $0x18] sm:$0xff]   ;;  %v2321_v17 = vmov 0.0   ;;  %v2263_v18 = vld [vmem:[%s2631_s3 + $0x10] sm:$0xff]   ;;  %vm2322_vm1 = vmmov 0   ;;  %v476_v45 = vlaneseq }
   0xc   : > { %s2025_s23 = sshll.u32 %s2642_s22, 3  ;;  %v2262_v16 = vld [vmem:[%s2632_s4 + $0x18] sm:$0xff]   ;;  %2069 = vmatprep.subr.bf16.mxu0 %v2321_v17  ;;  %2081 = vmatprep.subr.bf16.mxu1 %v2321_v17  ;;  %v2264_v19 = vld [vmem:[%s2632_s4 + $0x10] sm:$0xff]   ;;  %v2265_v20 = vld [vmem:[%s2631_s3 + $0x8] sm:$0xff]   ;;  %vm1198_vm2 = vcmask 130048   ;;  %vm1924_vm3 = vcmask 519168  }
   0xd   : > { %s408_s26 = scalar_lea.vmem %s2628_s0, %s2025_s23  ;;  %2070 = vmatpush3.bf16.msra.mxu0 %v2261_v15  ;;  %2082 = vmatpush3.bf16.msra.mxu1 %v2262_v16  ;;  %v2266_v21 = vld [vmem:[%s2632_s4 + $0x8] sm:$0xff]   ;;  %v2267_v22 = vld [vmem:[%s2631_s3] sm:$0xff]   ;;  %v2269_v40 = vld [vmem:[%s2633_s5 + $0x18] sm:$0xff]   ;;  %v477_v46 = vshrl.u32 %v476_v45, 7  ;;  %s413_s29 = scalar_lea.vmem %s2640_s12, %s2025_s23 }
   0xe   : > { %v2030_v0 = vld [vmem:[%s408_s26] sm:$0xff]   ;;  %2071 = vmatprep.subr.bf16.mxu0 %v2321_v17  ;;  %2083 = vmatprep.subr.bf16.mxu1 %v2321_v17  ;;  %v2270_v42 = vld [vmem:[%s2633_s5 + $0x10] sm:$0xff]   ;;  %v2271_v43 = vld [vmem:[%s2633_s5 + $0x8] sm:$0xff]  }
   0xf   : > { %v2404_v1 = vunpack.c.l.bf16 %v2030_v0  ;;  %v2406_v2 = vunpack.c.h.bf16 %v2030_v0  ;;  %2077 = vmatprep.mubr.msk.bf16.mxu0 %vm2322_vm1, %v2321_v17  ;;  %2089 = vmatprep.mubr.msk.bf16.mxu1 %vm2322_vm1, %v2321_v17  ;;  %v2268_v23 = vld [vmem:[%s2632_s4] sm:$0xff]   ;;  %v2491_v50 = vsub.s32 0, %v477_v46 }
  0x10   : > { %v1991_v32 = vld [vmem:[%s2629_s1] ss:$0 sm:$0xff] }
  0x11   : > { %v422_v3 = vsel %vm421_vm0, %v2404_v1, 0.0  ;;  %v425_v4 = vsel %vm421_vm0, %v2406_v2, 0.0  ;;  %2072 = vmatpush3.bf16.msra.mxu0 %v2263_v18  ;;  %2084 = vmatpush3.bf16.msra.mxu1 %v2264_v19  ;;  %v1992_v36 = vld [vmem:[%s2630_s2] ss:$0 sm:$0xff] }
  0x12   : > { %423 = vadd.xlane.f32.xlu0 %v422_v3  ;;  %2073 = vmatprep.subr.bf16.mxu0 %v2321_v17  ;;  %v2272_v44 = vld [vmem:[%s2633_s5] sm:$0xff]  }
  0x13   : > { %2085 = vmatprep.subr.bf16.mxu1 %v2321_v17  ;;  %v474_v47 = vld [vmem:[%s2634_s6] sm:$0x1] }
  0x14   : > { %v720_v48 = vld [vmem:[%s2635_s7] sm:$0x1]  ;;  %v475_v49 = vunpack.c.l.bf16 %v474_v47 }
  0x15   : > { %2074 = vmatpush3.bf16.msra.mxu0 %v2265_v20  ;;  %2086 = vmatpush3.bf16.msra.mxu1 %v2266_v21  ;;  %v721_v51 = vunpack.c.l.bf16 %v720_v48 }
  0x16   : > { %426 = vadd.xlane.f32.xlu0 %v425_v4  ;;  %2075 = vmatprep.subr.bf16.mxu0 %v2321_v17  ;;  %v479_v52 = vrot.slane %v475_v49, %v2491_v50 }
  0x17   : > { %2087 = vmatprep.subr.bf16.mxu1 %v2321_v17  ;;  %v725_v53 = vrot.slane %v721_v51, %v2491_v50 }
  0x19   : > { %2076 = vmatpush3.bf16.msra.mxu0 %v2267_v22  ;;  %2088 = vmatpush3.bf16.msra.mxu1 %v2268_v23 }
  0x1a   : > { %2093 = vmatprep.subr.bf16.mxu0 %v2321_v17  ;;  %2105 = vmatprep.subr.bf16.mxu1 %v2321_v17 }
  0x9b   : > { %v424_v5 = vpop.xlane.xlu0 %423 }
  0x9c   : > { %v429_v6 = vmul.f32 0.015625, %v424_v5 }
  0x9e   : > { %v431_v7 = vsub.f32 %v2404_v1, %v429_v6 }
  0x9f   : > { %v427_v8 = vpop.xlane.xlu0 %426 }
  0xa0   : > { %v430_v9 = vmul.f32 0.015625, %v427_v8  ;;  %v433_v10 = vmul.f32 %v431_v7, %v431_v7 }
  0xa2   : > { %v432_v11 = vsub.f32 %v2406_v2, %v430_v9  ;;  %v435_v12 = vsel %vm421_vm0, %v433_v10, 0.0 }
  0xa3   : > { %436 = vadd.xlane.f32.xlu1 %v435_v12 }
  0xa4   : > { %v434_v13 = vmul.f32 %v432_v11, %v432_v11 }
  0xa6   : > { %v438_v14 = vsel %vm421_vm0, %v434_v13, 0.0 }
  0xa7   : > { %439 = vadd.xlane.f32.xlu1 %v438_v14 }
 0x12c   : > { %v437_v24 = vpop.xlane.xlu1 %436 }
 0x12d   : > { %v441_v25 = vmul.f32 0.015625, %v437_v24 }
 0x12f   : > { %v443_v26 = vadd.f32 1e-05, %v441_v25 }
 0x130   : > { %v440_v27 = vpop.xlane.xlu1 %439 }
 0x131   : > { %2277 = vrsqrt.f32 %v443_v26  ;;  %v442_v28 = vmul.f32 0.015625, %v440_v27 }
 0x133   : > { %v444_v29 = vadd.f32 1e-05, %v442_v28 }
 0x135   : > { %2279 = vrsqrt.f32 %v444_v29 }
 0x13e   : > { %v2278_v30 = vpop.eup %2277 }
 0x13f   : > { %v447_v31 = vmul.f32 %v2278_v30, %v431_v7 }
 0x141   : > { %v455_v35 = vmul.f32 %v1991_v32, %v447_v31 }
 0x142   : > { %v2280_v33 = vpop.eup %2279 }
 0x143   : > { %v448_v34 = vmul.f32 %v2280_v33, %v432_v11  ;;  %v463_v38 = vadd.f32 %v1992_v36, %v455_v35 }
 0x145   : > { %v456_v37 = vmul.f32 %v1991_v32, %v448_v34 }
 0x147   : > { %v464_v39 = vadd.f32 %v1992_v36, %v456_v37 }
 0x149   : > { %v465_v41 = vpack.c.bf16 %v464_v39, %v463_v38 }
 0x14b   : > { %2078 = vmatmul.mubr.msk.bf16.vlgmr.msra.gmra.mxu0 %vm421_vm0, %v465_v41  ;;  %2090 = vmatmul.mubr.msk.bf16.vlgmr.msra.gmra.mxu1 %vm421_vm0, %v465_v41 }
 0x14c   : > { %2094 = vmatpush3.bf16.msra.mxu0 %v2269_v40  ;;  %2101 = vmatprep.mubr.msk.bf16.mxu0 %vm2322_vm1, %v2321_v17 }
 0x14d   : > { %2095 = vmatprep.subr.bf16.mxu0 %v2321_v17  ;;  %2107 = vmatprep.mubr.msk.bf16.mxu1 %vm2322_vm1, %v2321_v17 }
 0x150   : > { %2096 = vmatpush3.bf16.msra.mxu0 %v2270_v42 }
 0x151   : > { %2097 = vmatprep.subr.bf16.mxu0 %v2321_v17 }
 0x154   : > { %2098 = vmatpush3.bf16.msra.mxu0 %v2271_v43 }
 0x155   : > { %2099 = vmatprep.subr.bf16.mxu0 %v2321_v17 }
 0x158   : > { %2100 = vmatpush3.bf16.msra.mxu0 %v2272_v44 }
 0x159   : > { %2129 = vmatprep.subr.bf16.mxu0 %v2321_v17 }
 0x15b   : > { %2102 = vmatmul.mubr.msk.bf16.vlgmr.msra.gmra.mxu0 %vm421_vm0, %v465_v41 }
 0x15c   : > { %2131 = vmatprep.mubr.msk.bf16.mxu0 %vm2322_vm1, %v2321_v17 }
 0x20b   : > { %v541_v54 = vpop.f32.mrf.mxu0  ;;  %v784_v55 = vpop.f32.mrf.mxu1 }
 0x20c   : > { %v542_v56 = vadd.f32 %v541_v54, %v479_v52  ;;  %v785_v57 = vadd.f32 %v784_v55, %v725_v53 }
 0x20d   : > { %v2079_v58 = vpop.f32.mrf.mxu0  ;;  %v2091_v59 = vpop.f32.mrf.mxu1 }
 0x20e   : > { %v2175_v60 = vpack.i.bf16 %v542_v56, %v785_v57 }
 0x20f   : > { %v544_v61 = vpop.f32.mrf.mxu0  ;;  %v787_v62 = vpop.f32.mrf.mxu1 }
 0x210   : > { %v545_v63 = vadd.f32 %v544_v61, %v479_v52  ;;  %v788_v0 = vadd.f32 %v787_v62, %v725_v53  ;;  %2176 = vxpose.xlu0.b32.start [1/2] (short) (narrow) %v2175_v60, 64 }
 0x211   : > { %v2080_v3 = vpop.f32.mrf.mxu0  ;;  %v2092_v4 = vpop.f32.mrf.mxu1 }
 0x212   : > { %v2177_v5 = vpack.i.bf16 %v545_v63, %v788_v0 }
 0x214   : > { %2178 = vxpose.xlu0.b32.end [2/2] (short) (narrow) %v2177_v5, 64 }
 0x21b   : > { %v2495_v6 = vpop.f32.mrf.mxu0 }
 0x21d   : > { %v2103_v7 = vpop.f32.mrf.mxu0 }
 0x21f   : > { %v2497_v8 = vpop.f32.mrf.mxu0 }
 0x221   : > { %v2104_v9 = vpop.f32.mrf.mxu0 }
 0x28c   : > { %v2179_v10 = vpop.trf.xlu0 }
 0x28d   : > { %v2180_v11 = vunpack.i.l.bf16 %v2179_v10  ;;  %v2183_v16 = vunpack.i.h.bf16 %v2179_v10 }
 0x28f   : > { %823 = vxpose.xlu1.b32.start [1/2] (short) (narrow) %v2180_v11, 16 }
 0x290   : > { %v2184_v12 = vpop.trf.xlu0 }
 0x291   : > { %v2185_v13 = vunpack.i.l.bf16 %v2184_v12  ;;  %v2188_v20 = vunpack.i.h.bf16 %v2184_v12 }
 0x293   : > { %824 = vxpose.xlu1.b32.end [2/2] (short) (narrow) %v2185_v13, 16 }
 0x294   : > { %v2189_v14 = vpop.trf.xlu0 }
 0x295   : > { %v2190_v15 = vunpack.i.l.bf16 %v2189_v14  ;;  %v2193_v25 = vunpack.i.h.bf16 %v2189_v14 }
 0x297   : > { %v2219_v18 = vpack.i.bf16 %v2190_v15, %v2183_v16  ;;  %v1387_v16 = vld [vmem:[%s2637_s9] sm:$0xff] }
 0x298   : > { %v2194_v19 = vpop.trf.xlu0 }
 0x299   : > { %v2195_v21 = vunpack.i.l.bf16 %v2194_v19  ;;  %2220 = vxpose.xlu0.b32.start [1/2] (short) (narrow) %v2219_v18, 16  ;;  %v2198_v28 = vunpack.i.h.bf16 %v2194_v19 }
 0x29b   : > { %v2221_v22 = vpack.i.bf16 %v2195_v21, %v2188_v20 }
 0x29c   : > { %v2199_v23 = vpop.trf.xlu0 }
 0x29d   : > { %2222 = vxpose.xlu0.b32.end [2/2] (short) (narrow) %v2221_v22, 16  ;;  %v2200_v24 = vunpack.i.l.bf16 %v2199_v23  ;;  %v2203_v33 = vunpack.i.h.bf16 %v2199_v23 }
 0x29f   : > { %v2233_v26 = vpack.i.bf16 %v2200_v24, %v2193_v25 }
 0x2a0   : > { %v2204_v27 = vpop.trf.xlu0 }
 0x2a1   : > { %v2205_v29 = vunpack.i.l.bf16 %v2204_v27  ;;  %2234 = vxpose.xlu1.b32.start [1/2] (short) (narrow) %v2233_v26, 16  ;;  %v2208_v36 = vunpack.i.h.bf16 %v2204_v27 }
 0x2a3   : > { %v2235_v30 = vpack.i.bf16 %v2205_v29, %v2198_v28  ;;  %v1391_v28 = vld [vmem:[%s2637_s9 + $0x20] sm:$0xff] }
 0x2a4   : > { %v2209_v31 = vpop.trf.xlu0 }
 0x2a5   : > { %2236 = vxpose.xlu1.b32.end [2/2] (short) (narrow) %v2235_v30, 16  ;;  %v2210_v32 = vunpack.i.l.bf16 %v2209_v31  ;;  %v2213_v39 = vunpack.i.h.bf16 %v2209_v31 }
 0x2a7   : > { %v2247_v34 = vpack.i.bf16 %v2210_v32, %v2203_v33 }
 0x2a8   : > { %v2214_v35 = vpop.trf.xlu0 }
 0x2a9   : > { %v2215_v37 = vunpack.i.l.bf16 %v2214_v35  ;;  %2248 = vxpose.xlu1.b32.start [1/2] (short) (narrow) %v2247_v34, 16  ;;  %v2218_v40 = vunpack.i.h.bf16 %v2214_v35  ;;  %v1393_v35 = vld [vmem:[%s2637_s9 + $0x30] sm:$0xff] }
 0x2ab   : > { %v2249_v38 = vpack.i.bf16 %v2215_v37, %v2208_v36 }
 0x2ad   : > { %2250 = vxpose.xlu1.b32.end [2/2] (short) (narrow) %v2249_v38, 16 }
 0x2b1   : > { %676 = vxpose.xlu1.b32.start [1/2] (short) (narrow) %v2213_v39, 16 }
 0x2b5   : > { %677 = vxpose.xlu1.b32.end [2/2] (short) (narrow) %v2218_v40, 16 }
 0x30b   : > { %v839_v41 = vpop.trf.xlu1 }
 0x30f   : > { %v840_v42 = vpop.trf.xlu1 }
 0x310   : > { %v951_v43 = vpack.c.bf16 %v840_v42, %v839_v41  ;;  %v963_v42 = vld [vmem:[%s2636_s8] sm:$0x1] }
 0x312   : > { %v1203_v44 = vsel %vm1198_vm2, %v951_v43, 0  ;;  %v964_v43 = vunpack.c.l.bf16 %v963_v42 }
 0x313   : > { %2106 = vmatpush3.bf16.xpose.msra.mxu1 %v1203_v44 }
 0x314   : > { %2111 = vmatprep.subr.bf16.mxu1 %v2321_v17  ;;  %v968_v44 = vrot.slane %v964_v43, %v2491_v50 }
 0x315   : > { %v2223_v45 = vpop.trf.xlu0 }
 0x316   : > { %v2227_v46 = vunpack.i.h.bf16 %v2223_v45  ;;  %v2224_v47 = vunpack.i.l.bf16 %v2223_v45  ;;  %v1028_v45 = vadd.f32 %v2495_v6, %v968_v44  ;;  %v1388_v6 = vld [vmem:[%s2637_s9 + $0x8] sm:$0xff] }
 0x319   : > { %v2228_v48 = vpop.trf.xlu0 }
 0x31a   : > { %v2232_v49 = vunpack.i.h.bf16 %v2228_v48  ;;  %v2229_v51 = vunpack.i.l.bf16 %v2228_v48 }
 0x31c   : > { %v708_v52 = vpack.c.bf16 %v2229_v51, %v2224_v47  ;;  %v952_v53 = vpack.c.bf16 %v2232_v49, %v2227_v46  ;;  %v1031_v46 = vadd.f32 %v2497_v8, %v968_v44 }
 0x31d   : > { %v2237_v54 = vpop.trf.xlu1 }
 0x31e   : > { %2108 = vmatmul.mubr.msk.bf16.vlgmr.msra.gmra.mxu1 %vm1198_vm2, %v708_v52  ;;  %v1250_v55 = vsel %vm1198_vm2, %v952_v53, 0  ;;  %v2241_v56 = vunpack.i.h.bf16 %v2237_v54  ;;  %v2238_v57 = vunpack.i.l.bf16 %v2237_v54 }
 0x31f   : > { %2113 = vmatprep.mubr.msk.bf16.mxu1 %vm2322_vm1, %v2321_v17  ;;  %2112 = vmatpush3.bf16.xpose.msra.mxu1 %v1250_v55 }
 0x320   : > { %2117 = vmatprep.subr.bf16.mxu1 %v2321_v17 }
 0x321   : > { %v2242_v58 = vpop.trf.xlu1 }
 0x322   : > { %v2246_v59 = vunpack.i.h.bf16 %v2242_v58  ;;  %v2243_v60 = vunpack.i.l.bf16 %v2242_v58 }
 0x324   : > { %v709_v61 = vpack.c.bf16 %v2243_v60, %v2238_v57  ;;  %v953_v62 = vpack.c.bf16 %v2246_v59, %v2241_v56  ;;  %v1389_v57 = vld [vmem:[%s2637_s9 + $0x10] sm:$0xff]  ;;  %v1390_v60 = vld [vmem:[%s2637_s9 + $0x18] sm:$0xff] }
 0x325   : > { %v2251_v63 = vpop.trf.xlu1 }
 0x326   : > { %2114 = vmatmul.mubr.msk.bf16.vlgmr.msra.gmra.mxu1 %vm1198_vm2, %v709_v61  ;;  %v1297_v0 = vsel %vm1198_vm2, %v953_v62, 0  ;;  %v2255_v3 = vunpack.i.h.bf16 %v2251_v63  ;;  %v2252_v4 = vunpack.i.l.bf16 %v2251_v63  ;;  %v1392_v63 = vld [vmem:[%s2637_s9 + $0x28] sm:$0xff] }
 0x327   : > { %2118 = vmatpush3.bf16.xpose.msra.mxu1 %v1297_v0  ;;  %2119 = vmatprep.mubr.msk.bf16.mxu1 %vm2322_vm1, %v2321_v17 }
 0x328   : > { %2123 = vmatprep.subr.bf16.mxu1 %v2321_v17 }
 0x329   : > { %v2256_v5 = vpop.trf.xlu1 }
 0x32a   : > { %v2260_v7 = vunpack.i.h.bf16 %v2256_v5  ;;  %v2257_v9 = vunpack.i.l.bf16 %v2256_v5 }
 0x32c   : > { %v710_v10 = vpack.c.bf16 %v2257_v9, %v2252_v4  ;;  %v954_v11 = vpack.c.bf16 %v2260_v7, %v2255_v3  ;;  %v1394_v4 = vld [vmem:[%s2637_s9 + $0x38] sm:$0xff] }
 0x32d   : > { %v692_v12 = vpop.trf.xlu1 }
 0x32e   : > { %v1344_v13 = vsel %vm1198_vm2, %v954_v11, 0  ;;  %2120 = vmatmul.mubr.msk.bf16.vlgmr.msra.gmra.mxu1 %vm1198_vm2, %v710_v10 }
 0x32f   : > { %2124 = vmatpush3.bf16.xpose.msra.mxu1 %v1344_v13  ;;  %2125 = vmatprep.mubr.msk.bf16.mxu1 %vm2322_vm1, %v2321_v17 }
 0x330   : > { %2135 = vmatprep.subr.bf16.mxu1 %v2321_v17 }
 0x331   : > { %v693_v14 = vpop.trf.xlu1 }
 0x332   : > { %v711_v15 = vpack.c.bf16 %v693_v14, %v692_v12 }
 0x336   : > { %2126 = vmatmul.mubr.msk.bf16.vlgmr.msra.gmra.mxu1 %vm1198_vm2, %v711_v15 }
 0x337   : > { %2137 = vmatprep.mubr.msk.bf16.mxu1 %vm2322_vm1, %v2321_v17 }
 0x3de   : > { %v1239_v18 = vpop.f32.mrf.mxu1 }
 0x3df   : > { %v1395_v19 = vadd.f32 %v1387_v16, %v1239_v18 }
 0x3e0   : > { %v2109_v20 = vpop.f32.mrf.mxu1 }
 0x3e1   : > { %v1403_v21 = vsel %vm1198_vm2, %v1395_v19, -inf }
 0x3e2   : > { %1404 = vmax.xlane.f32.xlu0 %v1403_v21  ;;  %v1242_v22 = vpop.f32.mrf.mxu1 }
 0x3e3   : > { %v1396_v8 = vadd.f32 %v1388_v6, %v1242_v22 }
 0x3e4   : > { %v2110_v23 = vpop.f32.mrf.mxu1 }
 0x3e5   : > { %v1406_v59 = vsel %vm1198_vm2, %v1396_v8, -inf }
 0x3e6   : > { %v1286_v24 = vpop.f32.mrf.mxu1 }
 0x3e7   : > { %v1397_v58 = vadd.f32 %v1389_v57, %v1286_v24 }
 0x3e8   : > { %v2115_v25 = vpop.f32.mrf.mxu1 }
 0x3e9   : > { %v1409_v62 = vsel %vm1198_vm2, %v1397_v58, -inf }
 0x3ea   : > { %v1289_v26 = vpop.f32.mrf.mxu1 }
 0x3eb   : > { %v1398_v61 = vadd.f32 %v1390_v60, %v1289_v26 }
 0x3ec   : > { %v2116_v27 = vpop.f32.mrf.mxu1 }
 0x3ed   : > { %v1412_v3 = vsel %vm1198_vm2, %v1398_v61, -inf }
 0x3ee   : > { %v1333_v29 = vpop.f32.mrf.mxu1 }
 0x3ef   : > { %v2526_v30 = vadd.f32 %v1391_v28, %v1333_v29 }
 0x3f0   : > { %v2121_v31 = vpop.f32.mrf.mxu1 }
 0x3f1   : > { %v1415_v32 = vsel %vm1198_vm2, %v2526_v30, -inf }
 0x3f2   : > { %1416 = vmax.xlane.f32.xlu0 %v1415_v32  ;;  %v1336_v33 = vpop.f32.mrf.mxu1 }
 0x3f3   : > { %v1400_v0 = vadd.f32 %v1392_v63, %v1336_v33 }
 0x3f4   : > { %v2122_v34 = vpop.f32.mrf.mxu1 }
 0x3f5   : > { %v1418_v7 = vsel %vm1198_vm2, %v1400_v0, -inf }
 0x3f6   : > { %v1380_v36 = vpop.f32.mrf.mxu1 }
 0x3f7   : > { %v2533_v37 = vadd.f32 %v1393_v35, %v1380_v36 }
 0x3f8   : > { %v2127_v38 = vpop.f32.mrf.mxu1 }
 0x3f9   : > { %v1421_v39 = vsel %vm1198_vm2, %v2533_v37, -inf }
 0x3fa   : > { %1422 = vmax.xlane.f32.xlu0 %v1421_v39  ;;  %v1383_v40 = vpop.f32.mrf.mxu1 }
 0x3fb   : > { %v1402_v5 = vadd.f32 %v1394_v4, %v1383_v40 }
 0x3fc   : > { %v2128_v41 = vpop.f32.mrf.mxu1 }
 0x3fd   : > { %v1424_v9 = vsel %vm1198_vm2, %v1402_v5, -inf }
 0x427   : > { %1034 = vxpose.xlu0.b32.start [1/2] (short) (narrow) %v1028_v45, 64 }
 0x42b   : > { %1035 = vxpose.xlu0.b32.end [2/2] (short) (narrow) %v1031_v46, 64 }
 0x46b   : > { %v1405_v47 = vpop.xlane.xlu0 %1404 }
 0x46c   : > { %v1427_v48 = vsub.f32 %v1395_v19, %v1405_v47 }
 0x46e   : > { %v1435_v49 = vmul.f32 1.442695, %v1427_v48 }
 0x470   : > { %2281 = vpow2.f32 %v1435_v49 }
 0x47b   : > { %v1417_v53 = vpop.xlane.xlu0 %1416 }
 0x47c   : > { %v1431_v20 = vsub.f32 %v2526_v30, %v1417_v53 }
 0x47d   : > { %v2543_v51 = vpop.eup %2281 }
 0x47e   : > { %v1451_v52 = vsel %vm1198_vm2, %v2543_v51, 0.0  ;;  %v1443_v24 = vmul.f32 1.442695, %v1431_v20 }
 0x47f   : > { %1452 = vadd.xlane.f32.xlu0 %v1451_v52 }
 0x483   : > { %v1423_v54 = vpop.xlane.xlu0 %1422 }
 0x484   : > { %v1433_v25 = vsub.f32 %v2533_v37, %v1423_v54 }
 0x486   : > { %v1447_v29 = vmul.f32 1.442695, %v1433_v25 }
 0x4a3   : > { %v1050_v55 = vpop.trf.xlu0 }
 0x4a4   : > { %1066 = vxpose.xlu1.b32.start [1/2] (short) (narrow) %v1050_v55, 16 }
 0x4a7   : > { %v1051_v56 = vpop.trf.xlu0 }
 0x4a8   : > { %1067 = vxpose.xlu1.b32.end [2/2] (short) (narrow) %v1051_v56, 16 }
 0x4ab   : > { %v1052_v10 = vpop.trf.xlu0 }
 0x4af   : > { %v1053_v11 = vpop.trf.xlu0 }
 0x4b3   : > { %v1054_v12 = vpop.trf.xlu0 }
 0x4b7   : > { %v1055_v13 = vpop.trf.xlu0 }
 0x4bb   : > { %v1056_v53 = vpop.trf.xlu0 }
 0x4bf   : > { %v1057_v54 = vpop.trf.xlu0 }
 0x4cf   : > { %1407 = vmax.xlane.f32.xlu1 %v1406_v59 }
 0x4d3   : > { %1410 = vmax.xlane.f32.xlu1 %v1409_v62 }
 0x4d7   : > { %1413 = vmax.xlane.f32.xlu1 %v1412_v3 }
 0x4db   : > { %1419 = vmax.xlane.f32.xlu1 %v1418_v7 }
 0x4df   : > { %1425 = vmax.xlane.f32.xlu1 %v1424_v9 }
 0x508   : > { %v1453_v6 = vpop.xlane.xlu0 %1452 }
 0x512   : > { %1130 = vxpose.xlu1.b32.start [1/2] (short) (narrow) %v1054_v12, 16 }
 0x516   : > { %1131 = vxpose.xlu1.b32.end [2/2] (short) (narrow) %v1055_v13, 16 }
 0x520   : > { %v1082_v14 = vpop.trf.xlu1 }
 0x524   : > { %v1083_v15 = vpop.trf.xlu1 }
 0x525   : > { %v1194_v16 = vpack.c.bf16 %v1083_v15, %v1082_v14 }
 0x527   : > { %2130 = vmatpush3.bf16.msra.mxu0 %v1194_v16 }
 0x528   : > { %2141 = vmatprep.subr.bf16.mxu0 %v2321_v17 }
 0x558   : > { %v1408_v18 = vpop.xlane.xlu1 %1407 }
 0x559   : > { %v1428_v19 = vsub.f32 %v1396_v8, %v1408_v18 }
 0x55b   : > { %v1437_v21 = vmul.f32 1.442695, %v1428_v19 }
 0x55c   : > { %v1411_v22 = vpop.xlane.xlu1 %1410 }
 0x55d   : > { %2283 = vpow2.f32 %v1437_v21  ;;  %v1429_v23 = vsub.f32 %v1397_v58, %v1411_v22 }
 0x55f   : > { %v1439_v26 = vmul.f32 1.442695, %v1429_v23 }
 0x560   : > { %v1414_v27 = vpop.xlane.xlu1 %1413 }
 0x561   : > { %2285 = vpow2.f32 %v1439_v26  ;;  %v1430_v28 = vsub.f32 %v1398_v61, %v1414_v27 }
 0x562   : > { %2287 = vpow2.f32 %v1443_v24 }
 0x563   : > { %v1441_v31 = vmul.f32 1.442695, %v1430_v28 }
 0x564   : > { %v1420_v32 = vpop.xlane.xlu1 %1419 }
 0x565   : > { %2289 = vpow2.f32 %v1441_v31  ;;  %v1432_v33 = vsub.f32 %v1400_v0, %v1420_v32 }
 0x566   : > { %2291 = vpow2.f32 %v1447_v29 }
 0x567   : > { %v1445_v34 = vmul.f32 1.442695, %v1432_v33 }
 0x568   : > { %v1426_v30 = vpop.xlane.xlu1 %1425 }
 0x569   : > { %2293 = vpow2.f32 %v1445_v34  ;;  %v1434_v35 = vsub.f32 %v1402_v5, %v1426_v30 }
 0x56a   : > { %v2284_v36 = vpop.eup %2283 }
 0x56b   : > { %v1449_v38 = vmul.f32 1.442695, %v1434_v35  ;;  %v1454_v39 = vsel %vm1198_vm2, %v2284_v36, 0.0 }
 0x56c   : > { %1455 = vadd.xlane.f32.xlu1 %v1454_v39 }
 0x56d   : > { %2295 = vpow2.f32 %v1449_v38 }
 0x56e   : > { %v2571_v37 = vpop.eup %2285  ;;  %2297 = vrcp.f32 %v1453_v6 }
 0x56f   : > { %v1457_v40 = vsel %vm1198_vm2, %v2571_v37, 0.0  ;;  %v2288_v41 = vpop.eup %2287 }
 0x570   : > { %1458 = vadd.xlane.f32.xlu0 %v1457_v40  ;;  %v1463_v43 = vsel %vm1198_vm2, %v2288_v41, 0.0 }
 0x572   : > { %v2290_v42 = vpop.eup %2289 }
 0x573   : > { %v1460_v44 = vsel %vm1198_vm2, %v2290_v42, 0.0  ;;  %v2577_v45 = vpop.eup %2291 }
 0x574   : > { %1464 = vadd.xlane.f32.xlu0 %v1463_v43  ;;  %1461 = vadd.xlane.f32.xlu1 %v1460_v44  ;;  %v1469_v47 = vsel %vm1198_vm2, %v2577_v45, 0.0 }
 0x576   : > { %v2294_v46 = vpop.eup %2293 }
 0x577   : > { %v1466_v48 = vsel %vm1198_vm2, %v2294_v46, 0.0 }
 0x578   : > { %1470 = vadd.xlane.f32.xlu0 %v1469_v47  ;;  %1467 = vadd.xlane.f32.xlu1 %v1466_v48  ;;  %v2274_v47 = vld [vmem:[%s2638_s10 + $0x10] sm:$0xff]   ;;  %v2275_v48 = vld [vmem:[%s2638_s10 + $0x8] sm:$0xff]  }
 0x57a   : > { %v2296_v49 = vpop.eup %2295 }
 0x57b   : > { %v1472_v52 = vsel %vm1198_vm2, %v2296_v49, 0.0  ;;  %v2298_v60 = vpop.eup %2297 }
 0x57c   : > { %1473 = vadd.xlane.f32.xlu1 %v1472_v52  ;;  %v1476_v63 = vmul.f32 %v2298_v60, %v2543_v51  ;;  %v1840_v60 = vld [vmem:[%s2639_s11] sm:$0x1] }
 0x58e   : > { %v1146_v55 = vpop.trf.xlu1 }
 0x592   : > { %v1147_v56 = vpop.trf.xlu1 }
 0x593   : > { %v1196_v3 = vpack.c.bf16 %v1147_v56, %v1146_v55 }
 0x5a5   : > { %1098 = vxpose.xlu0.b32.start [1/2] (short) (narrow) %v1052_v10, 16 }
 0x5a9   : > { %1099 = vxpose.xlu0.b32.end [2/2] (short) (narrow) %v1053_v11, 16 }
 0x5af   : > { %1162 = vxpose.xlu1.b32.start [1/2] (short) (narrow) %v1056_v53, 16  ;;  %v2276_v53 = vld [vmem:[%s2638_s10] sm:$0xff]  }
 0x5b3   : > { %1163 = vxpose.xlu1.b32.end [2/2] (short) (narrow) %v1057_v54, 16 }
 0x5f5   : > { %v1456_v8 = vpop.xlane.xlu1 %1455 }
 0x5f6   : > { %2299 = vrcp.f32 %v1456_v8 }
 0x5f9   : > { %v1459_v57 = vpop.xlane.xlu0 %1458 }
 0x5fd   : > { %v1462_v58 = vpop.xlane.xlu1 %1461  ;;  %v1465_v59 = vpop.xlane.xlu0 %1464 }
 0x5fe   : > { %2301 = vrcp.f32 %v1465_v59 }
 0x601   : > { %v1468_v61 = vpop.xlane.xlu1 %1467  ;;  %v1471_v12 = vpop.xlane.xlu0 %1470 }
 0x602   : > { %2303 = vrcp.f32 %v1468_v61  ;;  %v1841_v61 = vunpack.c.l.bf16 %v1840_v60 }
 0x603   : > { %v2300_v62 = vpop.eup %2299  ;;  %2305 = vrcp.f32 %v1462_v58 }
 0x604   : > { %v1478_v0 = vmul.f32 %v2300_v62, %v2284_v36  ;;  %2307 = vrcp.f32 %v1459_v57  ;;  %v1845_v62 = vrot.slane %v1841_v61, %v2491_v50 }
 0x605   : > { %v1474_v51 = vpop.xlane.xlu1 %1473 }
 0x606   : > { %v1491_v4 = vpack.c.bf16 %v1478_v0, %v1476_v63  ;;  %2309 = vrcp.f32 %v1474_v51 }
 0x607   : > { %2311 = vrcp.f32 %v1471_v12 }
 0x608   : > { %2132 = vmatmul.mubr.msk.bf16.vlgmr.msra.gmra.mxu0 %vm1198_vm2, %v1491_v4 }
 0x609   : > { %2142 = vmatpush3.bf16.msra.mxu0 %v1196_v3  ;;  %2143 = vmatprep.mubr.msk.bf16.mxu0 %vm2322_vm1, %v2321_v17 }
 0x60a   : > { %2153 = vmatprep.subr.bf16.mxu0 %v2321_v17 }
 0x60b   : > { %v2302_v5 = vpop.eup %2301 }
 0x60c   : > { %v1484_v9 = vmul.f32 %v2302_v5, %v2288_v41 }
 0x60f   : > { %v2304_v7 = vpop.eup %2303 }
 0x610   : > { %v1486_v10 = vmul.f32 %v2304_v7, %v2294_v46  ;;  %v2306_v14 = vpop.eup %2305  ;;  %v2273_v46 = vld [vmem:[%s2638_s10 + $0x18] sm:$0xff]  }
 0x611   : > { %v2308_v15 = vpop.eup %2307  ;;  %v1482_v18 = vmul.f32 %v2306_v14, %v2290_v42 }
 0x612   : > { %v1493_v11 = vpack.c.bf16 %v1486_v10, %v1484_v9  ;;  %v1480_v20 = vmul.f32 %v2308_v15, %v2571_v37 }
 0x613   : > { %v2310_v23 = vpop.eup %2309 }
 0x614   : > { %2144 = vmatmul.mubr.msk.bf16.vlgmr.msra.gmra.mxu0 %vm1198_vm2, %v1493_v11  ;;  %v1492_v21 = vpack.c.bf16 %v1482_v18, %v1480_v20  ;;  %v2312_v24 = vpop.eup %2311  ;;  %v1490_v26 = vmul.f32 %v2310_v23, %v2296_v49 }
 0x615   : > { %2161 = vmatprep.mubr.msk.bf16.mxu0 %vm2322_vm1, %v2321_v17  ;;  %v1488_v28 = vmul.f32 %v2312_v24, %v2577_v45  ;;  %2154 = vmatpush3.bf16.msra.mxu0 %v2273_v46 }
 0x616   : > { %2155 = vmatprep.subr.bf16.mxu0 %v2321_v17 }
 0x617   : > { %v1494_v29 = vpack.c.bf16 %v1490_v26, %v1488_v28 }
 0x619   : > { %2156 = vmatpush3.bf16.msra.mxu0 %v2274_v47 }
 0x61a   : > { %2157 = vmatprep.subr.bf16.mxu0 %v2321_v17 }
 0x61d   : > { %2158 = vmatpush3.bf16.msra.mxu0 %v2275_v48 }
 0x61e   : > { %2159 = vmatprep.subr.bf16.mxu0 %v2321_v17 }
 0x621   : > { %v1114_v13 = vpop.trf.xlu0  ;;  %2160 = vmatpush3.bf16.msra.mxu0 %v2276_v53 }
 0x625   : > { %v1115_v16 = vpop.trf.xlu0 }
 0x626   : > { %v1195_v19 = vpack.c.bf16 %v1115_v16, %v1114_v13 }
 0x628   : > { %2136 = vmatpush3.bf16.msra.mxu1 %v1195_v19 }
 0x629   : > { %2147 = vmatprep.subr.bf16.mxu1 %v2321_v17 }
 0x62b   : > { %v1178_v22 = vpop.trf.xlu1  ;;  %2138 = vmatmul.mubr.msk.bf16.vlgmr.msra.gmra.mxu1 %vm1198_vm2, %v1492_v21 }
 0x62c   : > { %2149 = vmatprep.mubr.msk.bf16.mxu1 %vm2322_vm1, %v2321_v17 }
 0x62f   : > { %v1179_v25 = vpop.trf.xlu1 }
 0x630   : > { %v1197_v27 = vpack.c.bf16 %v1179_v25, %v1178_v22 }
 0x632   : > { %2148 = vmatpush3.bf16.msra.mxu1 %v1197_v27 }
 0x635   : > { %2150 = vmatmul.mubr.msk.bf16.vlgmr.msra.gmra.mxu1 %vm1198_vm2, %v1494_v29 }
 0x6c8   : > { %v1532_v31 = vpop.f32.mrf.mxu0 }
 0x6c9   : > { %1671 = vxpose.xlu1.b32.start [1/2] (short) (narrow) %v1532_v31, 16 }
 0x6ca   : > { %v2133_v32 = vpop.f32.mrf.mxu0 }
 0x6cc   : > { %v1535_v33 = vpop.f32.mrf.mxu0 }
 0x6cd   : > { %1672 = vxpose.xlu1.b32.end [2/2] (short) (narrow) %v1535_v33, 16 }
 0x6ce   : > { %v2134_v34 = vpop.f32.mrf.mxu0 }
 0x6d4   : > { %v1620_v30 = vpop.f32.mrf.mxu0 }
 0x6d5   : > { %1735 = vxpose.xlu1.b32.start [1/2] (short) (narrow) %v1620_v30, 16 }
 0x6d6   : > { %v2145_v35 = vpop.f32.mrf.mxu0 }
 0x6d8   : > { %v1623_v36 = vpop.f32.mrf.mxu0 }
 0x6d9   : > { %1736 = vxpose.xlu1.b32.end [2/2] (short) (narrow) %v1623_v36, 16 }
 0x6da   : > { %v2146_v38 = vpop.f32.mrf.mxu0 }
 0x6eb   : > { %v1576_v39 = vpop.f32.mrf.mxu1 }
 0x6ec   : > { %1703 = vxpose.xlu0.b32.start [1/2] (short) (narrow) %v1576_v39, 16 }
 0x6ed   : > { %v2139_v37 = vpop.f32.mrf.mxu1 }
 0x6ef   : > { %v1579_v40 = vpop.f32.mrf.mxu1 }
 0x6f0   : > { %1704 = vxpose.xlu0.b32.end [2/2] (short) (narrow) %v1579_v40, 16 }
 0x6f1   : > { %v2140_v41 = vpop.f32.mrf.mxu1 }
 0x6f5   : > { %v1664_v42 = vpop.f32.mrf.mxu1 }
 0x6f6   : > { %1767 = vxpose.xlu0.b32.start [1/2] (short) (narrow) %v1664_v42, 16 }
 0x6f7   : > { %v2151_v43 = vpop.f32.mrf.mxu1 }
 0x6f9   : > { %v1667_v44 = vpop.f32.mrf.mxu1 }
 0x6fa   : > { %1768 = vxpose.xlu0.b32.end [2/2] (short) (narrow) %v1667_v44, 16 }
 0x6fb   : > { %v2152_v45 = vpop.f32.mrf.mxu1 }
 0x745   : > { %v1687_v49 = vpop.trf.xlu1 }
 0x746   : > { %1799 = vxpose.xlu1.b32.start [1/8] (short) (narrow) %v1687_v49, 16 }
 0x749   : > { %v1688_v52 = vpop.trf.xlu1 }
 0x74a   : > { %1800 = vxpose.xlu1.b32.cont [2/8] (short) (narrow) %v1688_v52, 16 }
 0x751   : > { %v1751_v56 = vpop.trf.xlu1 }
 0x755   : > { %v1752_v6 = vpop.trf.xlu1 }
 0x768   : > { %v1719_v54 = vpop.trf.xlu0 }
 0x769   : > { %1801 = vxpose.xlu1.b32.cont [3/8] (short) (narrow) %v1719_v54, 16 }
 0x76c   : > { %v1720_v55 = vpop.trf.xlu0 }
 0x76d   : > { %1802 = vxpose.xlu1.b32.cont [4/8] (short) (narrow) %v1720_v55, 16 }
 0x771   : > { %1803 = vxpose.xlu1.b32.cont [5/8] (short) (narrow) %v1751_v56, 16 }
 0x772   : > { %v1783_v8 = vpop.trf.xlu0 }
 0x775   : > { %1804 = vxpose.xlu1.b32.cont [6/8] (short) (narrow) %v1752_v6, 16 }
 0x776   : > { %v1784_v17 = vpop.trf.xlu0 }
 0x779   : > { %1805 = vxpose.xlu1.b32.cont [7/8] (short) (narrow) %v1783_v8, 16 }
 0x77d   : > { %1806 = vxpose.xlu1.b32.end [8/8] (short) (narrow) %v1784_v17, 16 }
 0x7dd   : > { %v1815_v57 = vpop.trf.xlu1 }
 0x7e1   : > { %v1816_v58 = vpop.trf.xlu1 }
 0x7e2   : > { %v1831_v59 = vpack.c.bf16 %v1816_v58, %v1815_v57 }
 0x7e4   : > { %2162 = vmatmul.mubr.msk.bf16.vlgmr.msra.gmra.mxu0 %vm421_vm0, %v1831_v59 }
 0x8a4   : > { %v1907_v63 = vpop.f32.mrf.mxu0 }
 0x8a5   : > { %v1908_v0 = vadd.f32 %v1907_v63, %v1845_v62 }
 0x8a6   : > { %v2163_v3 = vpop.f32.mrf.mxu0 }
 0x8a7   : > { %v1914_v4 = vadd.f32 %v2404_v1, %v1908_v0 }
 0x8a8   : > { %v1910_v5 = vpop.f32.mrf.mxu0 }
 0x8a9   : > { %v2027_v7 = vpack.c.bf16 %v1914_v4, %v1914_v4  ;;  %v1911_v9 = vadd.f32 %v1910_v5, %v1845_v62 }
 0x8aa   : > { %v2164_v10 = vpop.f32.mrf.mxu0 }
 0x8ab   : > { %1925 = vst.msk [vmem:[%s413_s29] sm:$0xf] %vm1924_vm3, %v2027_v7  ;;  %v1915_v11 = vadd.f32 %v2406_v2, %v1911_v9 }
 0x8ad   : > { %v2028_v51 = vpack.c.bf16 %v1915_v11, %v1915_v11 }
 0x8af   : > { %1926 = vst.msk [vmem:[%s413_s29 + $0x4] sm:$0xf] %vm1924_vm3, %v2028_v51 }
 0x8b0 PF: > { %s22_s21 = sadd.s32 1, %s2319_s21  }
 0x8b1   : > { %p19_p4 = scmp.ge.s32.totalorder %s22_s21, 4  }
 0x8b3   :  { %21 = sbr.rel (!%p19_p4) target bundleno = 1 (0x1), region = 98 }

// kernel: swin_forward.11
= control target key start
LH: loop header
LB: loop body
LE: loop exit
PB: predicated region body
PF: predicated region fallthrough
CT: control target
= control target key end

     0   :  { %s897_s24 = smov 0   ;;  %s1020_s0 = inlined_call_operand.vmem [shape: bf16[32,64], index: 0, kind: input, shape index: {}]   ;;  %s1021_s1 = inlined_call_operand.vmem [shape: f32[1,64], index: 1, kind: input, shape index: {}]   ;;  %s1022_s2 = inlined_call_operand.vmem [shape: f32[1,64], index: 2, kind: input, shape index: {}]   ;;  %s1023_s3 = inlined_call_operand.vmem [shape: bf16[64,256], index: 3, kind: input, shape index: {}]   ;;  %s1024_s4 = inlined_call_operand.vmem [shape: bf16[1,256], index: 4, kind: input, shape index: {}]   ;;  %s1025_s5 = inlined_call_operand.vmem [shape: bf16[256,64], index: 5, kind: input, shape index: {}]   ;;  %s1026_s6 = inlined_call_operand.vmem [shape: bf16[1,64], index: 6, kind: input, shape index: {}]   ;;  %s1027_s7 = inlined_call_operand.vmem [shape: bf16[32,64], index: 7, kind: output, shape index: {}]  }
   0x1 LB: > { %s731_s25 = sadd.s32 4294967295, %s854_s24   ;;  %p735_p0 = scmp.ge.s32.totalorder %s854_s24, 1  ;;  %s854_s24 = sphi %s897_s24, %s17_s24  }
   0x2   : > { %p238_p1 = scmp.lt.s32.totalorder %s854_s24, 3 }
   0x4   : > { %p239_p2 = pnand %p735_p0, %p238_p1 }
   0x5   : > { %s736_s26 = sshll.u32 (!%p239_p2), %s731_s25, 1 }
   0x6   : > { %242 = sbr.rel (%p239_p2) target bundleno = 771 (0x303), region = 48  ;;  %p271_p3 = scmp.lt.s32.totalorder (!%p239_p2), %s736_s26, 3 }
   0xb   : > { %s1029_s26 = smov (!%p271_p3, %s736_s26), 3  ;;  %vm289_vm0 = vcmask 523264   ;;  %v808_v15 = vld [vmem:[%s1023_s3 + $0x34] ss:$8 sps:$4 sm:$0xff]   ;;  %v810_v16 = vld [vmem:[%s1023_s3 + $0x30] ss:$8 sps:$4 sm:$0xff]   ;;  %v345_v57 = vlaneseq }
   0xc   : > { %s737_s27 = sshll.u32 %s1029_s26, 2  ;;  %v811_v17 = vld [vmem:[%s1023_s3 + $0x24] ss:$8 sps:$4 sm:$0xff]   ;;  %414 = vmatprep.subr.bf16.mxu0 %v808_v15  ;;  %v813_v18 = vld [vmem:[%s1023_s3 + $0x20] ss:$8 sps:$4 sm:$0xff]   ;;  %v856_v19 = vmov 0  }
   0xd   : > { %s274_s30 = scalar_lea.vmem %s1020_s0, %s737_s27  ;;  %415 = vmatpush1.bf16.msra.mxu0 %v810_v16  ;;  %438 = vmatprep.mubr.bf16.mxu0 %v856_v19  ;;  %v814_v20 = vld [vmem:[%s1023_s3 + $0x14] ss:$8 sps:$4 sm:$0xff]   ;;  %v816_v21 = vld [vmem:[%s1023_s3 + $0x10] ss:$8 sps:$4 sm:$0xff]   ;;  %v817_v22 = vld [vmem:[%s1023_s3 + $0x4] ss:$8 sps:$4 sm:$0xff]   ;;  %s280_s29 = scalar_lea.vmem %s1027_s7, %s737_s27 }
   0xe   : > { %v774_v0 = vld [vmem:[%s274_s30] sm:$0xff]   ;;  %416 = vmatprep.subr.bf16.mxu0 %v811_v17  ;;  %v820_v41 = vld [vmem:[%s1025_s5 + $0x78] sm:$0xff]   ;;  %v822_v43 = vld [vmem:[%s1025_s5 + $0x70] sm:$0xff]   ;;  %v346_v58 = vshrl.u32 %v345_v57, 7  ;;  %vm672_vm1 = vcmask 519168  }
   0xf   : > { %v913_v1 = vunpack.c.l.bf16 %v774_v0  ;;  %v915_v2 = vunpack.c.h.bf16 %v774_v0  ;;  %v819_v23 = vld [vmem:[%s1023_s3] ss:$8 sps:$4 sm:$0xff]   ;;  %v821_v42 = vld [vmem:[%s1025_s5 + $0x38] sm:$0xff]   ;;  %777 = vmatprep.subr.bf16.mxu1 %v820_v41  ;;  %v823_v44 = vld [vmem:[%s1025_s5 + $0x30] sm:$0xff]  }
  0x10   : > { %v740_v32 = vld [vmem:[%s1021_s1] ss:$0 sm:$0xff]  ;;  %778 = vmatpush3.bf16.msra.mxu1 %v821_v42  ;;  %v824_v45 = vld [vmem:[%s1025_s5 + $0x68] sm:$0xff]   ;;  %v828_v49 = vld [vmem:[%s1025_s5 + $0x58] sm:$0xff]   ;;  %v347_v61 = vsub.s32 0, %v346_v58  ;;  %v351_v62 = vsub.s32 2, %v346_v58 }
  0x11   : > { %v290_v3 = vsel %vm289_vm0, %v913_v1, 0.0  ;;  %v293_v4 = vsel %vm289_vm0, %v915_v2, 0.0  ;;  %417 = vmatpush1.bf16.msra.mxu0 %v813_v18  ;;  %v741_v36 = vld [vmem:[%s1022_s2] ss:$0 sm:$0xff]  ;;  %779 = vmatprep.subr.bf16.mxu1 %v822_v43  ;;  %v825_v46 = vld [vmem:[%s1025_s5 + $0x28] sm:$0xff]   ;;  %v829_v50 = vld [vmem:[%s1025_s5 + $0x18] sm:$0xff]  }
  0x12   : > { %291 = vadd.xlane.f32.xlu0 %v290_v3  ;;  %418 = vmatprep.subr.bf16.mxu0 %v814_v20  ;;  %v826_v47 = vld [vmem:[%s1025_s5 + $0x60] sm:$0xff]   ;;  %v830_v51 = vld [vmem:[%s1025_s5 + $0x50] sm:$0xff]   ;;  %v832_v53 = vld [vmem:[%s1025_s5 + $0x48] sm:$0xff]  }
  0x13   : > { %v827_v48 = vld [vmem:[%s1025_s5 + $0x20] sm:$0xff]   ;;  %v831_v52 = vld [vmem:[%s1025_s5 + $0x10] sm:$0xff]   ;;  %v833_v54 = vld [vmem:[%s1025_s5 + $0x8] sm:$0xff]  }
  0x14   : > { %780 = vmatpush3.bf16.msra.mxu1 %v823_v44  ;;  %v834_v55 = vld [vmem:[%s1025_s5 + $0x40] sm:$0xff]  }
  0x15   : > { %419 = vmatpush1.bf16.msra.mxu0 %v816_v21  ;;  %781 = vmatprep.subr.bf16.mxu1 %v824_v45  ;;  %v835_v56 = vld [vmem:[%s1025_s5] sm:$0xff]  }
  0x16   : > { %294 = vadd.xlane.f32.xlu0 %v293_v4  ;;  %420 = vmatprep.subr.bf16.mxu0 %v817_v22  ;;  %v342_v59 = vld [vmem:[%s1024_s4] sm:$0x3] }
  0x17   : > { %v343_v60 = vunpack.c.l.bf16 %v342_v59 }
  0x18   : > { %782 = vmatpush3.bf16.msra.mxu1 %v825_v46 }
  0x19   : > { %421 = vmatpush1.bf16.msra.mxu0 %v819_v23  ;;  %783 = vmatprep.subr.bf16.mxu1 %v826_v47  ;;  %v348_v63 = vrot.slane %v343_v60, %v347_v61  ;;  %v352_v0 = vrot.slane %v343_v60, %v351_v62 }
  0x1b   : > { %v358_v3 = vrot.slane %v348_v63, %v347_v61  ;;  %v362_v4 = vrot.slane %v352_v0, %v347_v61 }
  0x1c   : > { %784 = vmatpush3.bf16.msra.mxu1 %v827_v48 }
  0x1d   : > { %785 = vmatprep.subr.bf16.mxu1 %v828_v49 }
  0x20   : > { %786 = vmatpush3.bf16.msra.mxu1 %v829_v50 }
  0x21   : > { %787 = vmatprep.subr.bf16.mxu1 %v830_v51  ;;  %v519_v51 = vld [vmem:[%s1026_s6] sm:$0x1] }
  0x24   : > { %788 = vmatpush3.bf16.msra.mxu1 %v831_v52  ;;  %v520_v52 = vunpack.c.l.bf16 %v519_v51 }
  0x25   : > { %789 = vmatprep.subr.bf16.mxu1 %v832_v53 }
  0x28   : > { %790 = vmatpush3.bf16.msra.mxu1 %v833_v54  ;;  %v524_v54 = vrot.slane %v520_v52, %v347_v61 }
  0x29   : > { %791 = vmatprep.subr.bf16.mxu1 %v834_v55 }
  0x2c   : > { %792 = vmatpush3.bf16.msra.mxu1 %v835_v56 }
  0x9b   : > { %v292_v5 = vpop.xlane.xlu0 %291 }
  0x9c   : > { %v297_v6 = vmul.f32 0.015625, %v292_v5 }
  0x9e   : > { %v299_v7 = vsub.f32 %v913_v1, %v297_v6 }
  0x9f   : > { %v295_v8 = vpop.xlane.xlu0 %294 }
  0xa0   : > { %v298_v9 = vmul.f32 0.015625, %v295_v8  ;;  %v301_v10 = vmul.f32 %v299_v7, %v299_v7 }
  0xa2   : > { %v300_v11 = vsub.f32 %v915_v2, %v298_v9  ;;  %v303_v12 = vsel %vm289_vm0, %v301_v10, 0.0 }
  0xa3   : > { %304 = vadd.xlane.f32.xlu1 %v303_v12 }
  0xa4   : > { %v302_v13 = vmul.f32 %v300_v11, %v300_v11 }
  0xa6   : > { %v306_v14 = vsel %vm289_vm0, %v302_v13, 0.0 }
  0xa7   : > { %307 = vadd.xlane.f32.xlu1 %v306_v14 }
 0x12c   : > { %v305_v24 = vpop.xlane.xlu1 %304 }
 0x12d   : > { %v309_v25 = vmul.f32 0.015625, %v305_v24 }
 0x12f   : > { %v311_v26 = vadd.f32 1e-05, %v309_v25 }
 0x130   : > { %v308_v27 = vpop.xlane.xlu1 %307 }
 0x131   : > { %836 = vrsqrt.f32 %v311_v26  ;;  %v310_v28 = vmul.f32 0.015625, %v308_v27 }
 0x133   : > { %v312_v29 = vadd.f32 1e-05, %v310_v28 }
 0x135   : > { %838 = vrsqrt.f32 %v312_v29 }
 0x13e   : > { %v837_v30 = vpop.eup %836 }
 0x13f   : > { %v315_v31 = vmul.f32 %v837_v30, %v299_v7 }
 0x141   : > { %v323_v35 = vmul.f32 %v740_v32, %v315_v31 }
 0x142   : > { %v839_v33 = vpop.eup %838 }
 0x143   : > { %v316_v34 = vmul.f32 %v839_v33, %v300_v11  ;;  %v331_v38 = vadd.f32 %v741_v36, %v323_v35 }
 0x145   : > { %v324_v37 = vmul.f32 %v740_v32, %v316_v34 }
 0x147   : > { %v332_v39 = vadd.f32 %v741_v36, %v324_v37 }
 0x149   : > { %v333_v40 = vpack.c.bf16 %v332_v39, %v331_v38 }
 0x14b   : > { %750 = vmatmul.mubr.msk.bf16.vlgmr.msra.gmra.mxu0 %vm289_vm0, %v333_v40 }
 0x20b   : > { %v440_v5 = vpop.f32.mrf.mxu0 }
 0x20c   : > { %v441_v6 = vadd.f32 %v440_v5, %v358_v3 }
 0x20d   : > { %v442_v7 = vpop.f32.mrf.mxu0 }
 0x20e   : > { %v453_v8 = vmul.f32 0.044715, %v441_v6  ;;  %v443_v9 = vadd.f32 %v442_v7, %v362_v4  ;;  %v449_v44 = vmul.f32 0.5, %v441_v6 }
 0x20f   : > { %v444_v10 = vpop.f32.mrf.mxu0 }
 0x210   : > { %v457_v11 = vmul.f32 %v453_v8, %v441_v6  ;;  %v454_v12 = vmul.f32 0.044715, %v443_v9  ;;  %v445_v13 = vadd.f32 %v444_v10, %v358_v3  ;;  %v450_v41 = vmul.f32 0.5, %v443_v9 }
 0x211   : > { %v446_v14 = vpop.f32.mrf.mxu0 }
 0x212   : > { %v461_v15 = vmul.f32 %v457_v11, %v441_v6  ;;  %v455_v16 = vmul.f32 0.044715, %v445_v13  ;;  %v447_v17 = vadd.f32 %v446_v14, %v362_v4  ;;  %v458_v18 = vmul.f32 %v454_v12, %v443_v9 }
 0x213   : > { %v451_v39 = vmul.f32 0.5, %v445_v13 }
 0x214   : > { %v459_v19 = vmul.f32 %v455_v16, %v445_v13  ;;  %v456_v20 = vmul.f32 0.044715, %v447_v17  ;;  %v462_v21 = vmul.f32 %v458_v18, %v443_v9  ;;  %v465_v22 = vadd.f32 %v461_v15, %v441_v6 }
 0x215   : > { %v452_v42 = vmul.f32 0.5, %v447_v17 }
 0x216   : > { %v463_v23 = vmul.f32 %v459_v19, %v445_v13  ;;  %v460_v24 = vmul.f32 %v456_v20, %v447_v17  ;;  %v466_v25 = vadd.f32 %v462_v21, %v443_v9  ;;  %v469_v26 = vmul.f32 0.7978846, %v465_v22 }
 0x218   : > { %v464_v27 = vmul.f32 %v460_v24, %v447_v17  ;;  %v470_v28 = vmul.f32 0.7978846, %v466_v25  ;;  %v467_v29 = vadd.f32 %v463_v23, %v445_v13 }
 0x21a   : > { %v468_v30 = vadd.f32 %v464_v27, %v447_v17  ;;  %840 = vtanh.f32 %v470_v28  ;;  %v471_v31 = vmul.f32 0.7978846, %v467_v29 }
 0x21b   : > { %842 = vtanh.f32 %v469_v26 }
 0x21c   : > { %v472_v32 = vmul.f32 0.7978846, %v468_v30  ;;  %844 = vtanh.f32 %v471_v31 }
 0x21e   : > { %846 = vtanh.f32 %v472_v32 }
 0x227   : > { %v841_v33 = vpop.eup %840 }
 0x228   : > { %v843_v34 = vpop.eup %842  ;;  %v478_v36 = vadd.f32 1.0, %v841_v33 }
 0x229   : > { %v845_v35 = vpop.eup %844  ;;  %v477_v40 = vadd.f32 1.0, %v843_v34 }
 0x22a   : > { %v479_v37 = vadd.f32 1.0, %v845_v35  ;;  %v482_v46 = vmul.f32 %v478_v36, %v450_v41 }
 0x22b   : > { %v847_v38 = vpop.eup %846  ;;  %v481_v48 = vmul.f32 %v477_v40, %v449_v44 }
 0x22c   : > { %v480_v43 = vadd.f32 1.0, %v847_v38  ;;  %v483_v45 = vmul.f32 %v479_v37, %v451_v39 }
 0x22e   : > { %v484_v47 = vmul.f32 %v480_v43, %v452_v42  ;;  %v485_v50 = vpack.c.bf16 %v483_v45, %v481_v48 }
 0x230   : > { %v486_v49 = vpack.c.bf16 %v484_v47, %v482_v46 }
 0x232   : > { %653 = vmatprep.mubr.bf16.mxu1 %v486_v49 }
 0x233   : > { %654 = vmatmul.mubr.bf16.vlgmr.msra.gmra.mxu1 %v485_v50 }
 0x2f3   : > { %v793_v53 = vpop.f32.mrf.mxu1 }
 0x2f5   : > { %v794_v55 = vpop.f32.mrf.mxu1 }
 0x2f6   : > { %v795_v56 = vadd.f32 %v794_v55, %v793_v53 }
 0x2f7   : > { %v796_v57 = vpop.f32.mrf.mxu1 }
 0x2f8   : > { %v656_v58 = vadd.f32 %v795_v56, %v524_v54 }
 0x2f9   : > { %v797_v59 = vpop.f32.mrf.mxu1 }
 0x2fa   : > { %v662_v60 = vadd.f32 %v913_v1, %v656_v58  ;;  %v798_v62 = vadd.f32 %v797_v59, %v796_v57 }
 0x2fc   : > { %v771_v63 = vpack.c.bf16 %v662_v60, %v662_v60  ;;  %v659_v0 = vadd.f32 %v798_v62, %v524_v54 }
 0x2fe   : > { %673 = vst.msk [vmem:[%s280_s29] sm:$0xf] %vm672_vm1, %v771_v63  ;;  %v663_v3 = vadd.f32 %v915_v2, %v659_v0 }
 0x300   : > { %v772_v61 = vpack.c.bf16 %v663_v3, %v663_v3 }
 0x302   : > { %674 = vst.msk [vmem:[%s280_s29 + $0x4] sm:$0xf] %vm672_vm1, %v772_v61 }
 0x303 PF: > { %s17_s24 = sadd.s32 1, %s854_s24  }
 0x304   : > { %p14_p4 = scmp.ge.s32.totalorder %s17_s24, 4  }
 0x306   :  { %16 = sbr.rel (!%p14_p4) target bundleno = 1 (0x1), region = 78 }

</bundles_post_ra>
